<compile_context>
chip_gen: v5e
topology: v5e:2x2
jax: 0.10.0
libtpu: 0.0.40
codegen_flags: <defaults>
</compile_context>

<pallas_src>
import functools

import jax
import jax.numpy as jnp
from jax.experimental import pallas as pl
from jax.experimental.pallas import tpu as pltpu

LANE = 128
SUBLANE = 8


def _round_up(x, m):
    return (x + m - 1) // m * m


# ---------------------------------------------------------------------------
# Pallas kernel: tiled matmul + bias + ReLU (+ optional fused sigmoid gate)
# ---------------------------------------------------------------------------
def _mm_epilogue_kernel(*refs, relu, gated):
    if gated:
        x_ref, w_ref, b_ref, g_ref, o_ref = refs
    else:
        x_ref, w_ref, b_ref, o_ref = refs

    # bf16 x bf16 -> f32 accumulate on the MXU.
    acc = jnp.dot(x_ref[...], w_ref[...], preferred_element_type=jnp.float32)
    acc = acc + b_ref[...].astype(jnp.float32)
    if relu:
        acc = jnp.maximum(acc, 0.0)
    if gated:
        # KronEmbed: masked_y = sigmoid(out_x) * out_y, fused as an epilogue.
        g = g_ref[...].astype(jnp.float32)
        acc = acc * (1.0 / (1.0 + jnp.exp(-g)))
    o_ref[...] = acc.astype(o_ref.dtype)


# ---------------------------------------------------------------------------
# Tiled fused matmul wrapper
# ---------------------------------------------------------------------------
def _pick_tile_m(m, k, cout_p, out_bytes, gated):
    """Largest M-tile whose double-buffered working set stays ~<=12 MiB."""
    budget = 12 * 1024 * 1024
    fixed = 2 * k * cout_p * 2 + 2 * cout_p * 4        # weights + bias (x2 buffers)
    per_row = 2 * k * 2 + 2 * cout_p * out_bytes       # patch tile + output tile
    if gated:
        per_row += 2 * cout_p * 2                      # gate tile
    tm = max(SUBLANE, (budget - fixed) // per_row)
    tm = min(tm, 2048, _round_up(m, SUBLANE))
    return max(SUBLANE, (tm // SUBLANE) * SUBLANE)


def _fused_matmul(patches, w2, b, *, relu=True, gate=None,
                  out_dtype=jnp.bfloat16):
    """out[:M,:Cout] = epilogue(patches @ w2 + b), tiled over M in Pallas.

    patches: (M, K); w2: (K, Cout); b: (Cout,); gate: optional (M, Cout).
    Cout is zero-padded to a multiple of 128 for lane-dense stores; M is
    zero-padded to a multiple of the M-tile.  Padding is sliced off on return.
    """
    m, k = patches.shape
    cout = w2.shape[1]
    cout_p = _round_up(cout, LANE)
    out_bytes = jnp.dtype(out_dtype).itemsize
    gated = gate is not None

    tm = _pick_tile_m(m, k, cout_p, out_bytes, gated)
    m_p = _round_up(m, tm)

    x_p = jnp.pad(patches.astype(jnp.bfloat16), ((0, m_p - m), (0, 0)))
    w_p = jnp.pad(w2.astype(jnp.bfloat16), ((0, 0), (0, cout_p - cout)))
    b_p = jnp.pad(b.astype(jnp.float32), (0, cout_p - cout)).reshape(1, cout_p)

    in_specs = [
        pl.BlockSpec((tm, k), lambda i: (i, 0)),
        pl.BlockSpec((k, cout_p), lambda i: (0, 0)),
        pl.BlockSpec((1, cout_p), lambda i: (0, 0)),
    ]
    args = [x_p, w_p, b_p]
    if gated:
        g_p = jnp.pad(gate.astype(jnp.bfloat16),
                      ((0, m_p - m), (0, cout_p - gate.shape[1])))
        in_specs.append(pl.BlockSpec((tm, cout_p), lambda i: (i, 0)))
        args.append(g_p)

    cost = pl.CostEstimate(
        flops=2 * m_p * k * cout_p,
        transcendentals=m_p * cout_p if gated else 0,
        bytes_accessed=(m_p * k * 2 + k * cout_p * 2 + m_p * cout_p * out_bytes
                        + (m_p * cout_p * 2 if gated else 0) + cout_p * 4),
    )

    kern = functools.partial(_mm_epilogue_kernel, relu=relu, gated=gated)
    out = pl.pallas_call(
        kern,
        out_shape=jax.ShapeDtypeStruct((m_p, cout_p), out_dtype),
        grid=(m_p // tm,),
        in_specs=in_specs,
        out_specs=pl.BlockSpec((tm, cout_p), lambda i: (i, 0)),
        compiler_params=pltpu.CompilerParams(
            dimension_semantics=("parallel",),
            vmem_limit_bytes=32 * 1024 * 1024,
        ),
        cost_estimate=cost,
    )(*args)
    return out[:m, :cout]


# ---------------------------------------------------------------------------
# Layer wrappers (JAX glue: padding, tap gathers, reshapes)
# ---------------------------------------------------------------------------
def down_layer(x, w, b, *, gate=None, out_dtype=jnp.bfloat16):
    """DownLayer: 3x3 conv, stride 2, pad 1, ReLU.  Optional fused sigmoid gate."""
    n, h, w_sp, cin = x.shape
    ho = (h - 1) // 2 + 1
    wo = (w_sp - 1) // 2 + 1
    xp = jnp.pad(x, ((0, 0), (1, 1), (1, 1), (0, 0)))
    taps = [xp[:, kh:kh + 2 * ho:2, kw:kw + 2 * wo:2, :]
            for kh in range(3) for kw in range(3)]
    pat = jnp.concatenate(taps, axis=-1).reshape(n * ho * wo, 9 * cin)
    cout = w.shape[-1]
    gate2 = None if gate is None else gate.reshape(n * ho * wo, gate.shape[-1])
    out = _fused_matmul(pat, w.reshape(9 * cin, cout), b,
                        relu=True, gate=gate2, out_dtype=out_dtype)
    return out.reshape(n, ho, wo, cout)


def up_layer(x, w, b, *, out_dtype=jnp.bfloat16):
    """UpLayer: nearest 2x upsample + 3x3 conv, stride 1, pad 1, ReLU.

    The upsample is folded into the im2col gather: each tap reads the
    pre-upsample activation directly (no 4x intermediate tensor in HBM).
    """
    n, h, w_sp, cin = x.shape
    ho, wo = 2 * h, 2 * w_sp
    oh = jnp.arange(ho)
    ow = jnp.arange(wo)
    taps = []
    for kh in range(3):
        ih = oh + kh                              # row index in padded upsampled img
        vh = (ih >= 1) & (ih <= ho)               # pad-border validity
        sh = jnp.clip((ih - 1) // 2, 0, h - 1)    # source row in x
        g_h = jnp.take(x, sh, axis=1)
        for kw in range(3):
            iw = ow + kw
            vw = (iw >= 1) & (iw <= wo)
            sw = jnp.clip((iw - 1) // 2, 0, w_sp - 1)
            g = jnp.take(g_h, sw, axis=2)
            mask = (vh[:, None] & vw[None, :])[None, :, :, None]
            taps.append(jnp.where(mask, g, jnp.zeros((), g.dtype)))
    pat = jnp.concatenate(taps, axis=-1).reshape(n * ho * wo, 9 * cin)
    cout = w.shape[-1]
    out = _fused_matmul(pat, w.reshape(9 * cin, cout), b,
                        relu=True, out_dtype=out_dtype)
    return out.reshape(n, ho, wo, cout)


# ---------------------------------------------------------------------------
# Parameter init (deterministic, synthetic)
# ---------------------------------------------------------------------------
def _init_conv(key, cin, cout, kh=3, kw=3):
    k1, k2 = jax.random.split(key)
    fan_in = kh * kw * cin
    w = jax.random.normal(k1, (kh, kw, cin, cout), jnp.float32) / jnp.sqrt(
        jnp.float32(fan_in))
    b = 0.01 * jax.random.normal(k2, (cout,), jnp.float32)
    return w, b


def init_align_net_params(key):
    layer_defs = [
        ("down1x", 3, 16), ("down2x", 16, 64), ("down3x", 64, 128), ("down4x", 128, 256),
        ("down1y", 3, 16), ("down2y", 16, 64), ("down3y", 64, 128), ("down4y", 128, 256),
        ("up1", 256, 128), ("up2", 128, 64), ("up3", 64, 16), ("up4", 16, 3),
    ]
    keys = jax.random.split(key, len(layer_defs))
    return {name: _init_conv(k, cin, cout)
            for k, (name, cin, cout) in zip(keys, layer_defs)}


# ---------------------------------------------------------------------------
# Forward pass (matches AlignNet.forward control flow)
# ---------------------------------------------------------------------------
def align_net_forward(params, img_x, img_y):
    # PyTorch inputs are NCHW; kernels use NHWC, bf16 activations.
    x = jnp.transpose(img_x, (0, 2, 3, 1)).astype(jnp.bfloat16)
    y = jnp.transpose(img_y, (0, 2, 3, 1)).astype(jnp.bfloat16)

    for name in ("down1x", "down2x", "down3x", "down4x"):
        w, b = params[name]
        x = down_layer(x, w, b)

    for name in ("down1y", "down2y", "down3y"):
        w, b = params[name]
        y = down_layer(y, w, b)
    # down4y with the KronEmbed gate fused into its conv epilogue:
    # masked_y = sigmoid(out_x) * relu(conv_y(out_y) + b)
    w, b = params["down4y"]
    out = down_layer(y, w, b, gate=x)

    for name in ("up1", "up2", "up3"):
        w, b = params[name]
        out = up_layer(out, w, b)
    w, b = params["up4"]
    out = up_layer(out, w, b, out_dtype=jnp.float32)

    # back to NCHW for PyTorch parity
    return jnp.transpose(out, (0, 3, 1, 2))


# ---------------------------------------------------------------------------
if __name__ == "__main__":
    key = jax.random.PRNGKey(0)
    k_params, k_x, k_y = jax.random.split(key, 3)

    params = init_align_net_params(k_params)

    # Small shapes: batch=2, RGB, 16x16 spatial (downsamples 16->8->4->2->1).
    img_x = jax.random.normal(k_x, (2, 3, 16, 16), jnp.float32)
    img_y = jax.random.normal(k_y, (2, 3, 16, 16), jnp.float32)

    fwd = jax.jit(align_net_forward)
    out = jax.block_until_ready(fwd(params, img_x, img_y))

    assert out.shape == (2, 3, 16, 16), out.shape
    assert bool(jnp.all(jnp.isfinite(out)))
    print("KERNEL_OK")
</pallas_src>

<mosaic_0001>
module attributes {stable_mosaic.version = 11 : i64} {
  func.func @_mm_epilogue_kernel(%arg0: i32, %arg1: memref<128x27xbf16, #tpu.memory_space<vmem>>, %arg2: memref<27x128xbf16, #tpu.memory_space<vmem>>, %arg3: memref<1x128xf32, #tpu.memory_space<vmem>>, %arg4: memref<128x128xbf16, #tpu.memory_space<vmem>>) attributes {dimension_semantics = [#tpu.dimension_semantics<parallel>], iteration_bounds = array<i64: 1>, scalar_prefetch = 0 : i64, scratch_operands = 0 : i64, tpu.core_type = #tpu.core_type<tc>, window_params = [{transform_indices = @transform_0, window_bounds = array<i64: 128, 27>}, {pipeline_mode = #tpu.pipeline_mode<synchronous>, transform_indices = @transform_1, window_bounds = array<i64: 27, 128>}, {pipeline_mode = #tpu.pipeline_mode<synchronous>, transform_indices = @transform_2, window_bounds = array<i64: 1, 128>}, {transform_indices = @transform_3, window_bounds = array<i64: 128, 128>}]} {
    %c0 = arith.constant 0 : index
    %c0_0 = arith.constant 0 : index
    %0 = vector.load %arg1[%c0, %c0_0] : memref<128x27xbf16, #tpu.memory_space<vmem>>, vector<128x27xbf16>
    %c0_1 = arith.constant 0 : index
    %c0_2 = arith.constant 0 : index
    %1 = vector.load %arg2[%c0_1, %c0_2] : memref<27x128xbf16, #tpu.memory_space<vmem>>, vector<27x128xbf16>
    %cst = arith.constant dense<0.000000e+00> : vector<128x128xf32>
    %2 = tpu.matmul %0, %1, %cst {dimension_numbers = #tpu.dot_dimension_numbers<[1], [0], [0], [1], [0, 0, 1, 1], [], []>} : vector<128x27xbf16>, vector<27x128xbf16>, vector<128x128xf32> -> vector<128x128xf32>
    %c0_3 = arith.constant 0 : index
    %c0_4 = arith.constant 0 : index
    %3 = vector.load %arg3[%c0_3, %c0_4] : memref<1x128xf32, #tpu.memory_space<vmem>>, vector<1x128xf32>
    %4 = vector.broadcast %3 : vector<1x128xf32> to vector<128x128xf32>
    %5 = arith.addf %2, %4 : vector<128x128xf32>
    %cst_5 = arith.constant 0.000000e+00 : f32
    %6 = vector.broadcast %cst_5 : f32 to vector<128x128xf32>
    %7 = arith.maximumf %5, %6 : vector<128x128xf32>
    %8 = arith.truncf %7 : vector<128x128xf32> to vector<128x128xbf16>
    %c0_6 = arith.constant 0 : index
    %c0_7 = arith.constant 0 : index
    %9 = vector.load %arg4[%c0_6, %c0_7] : memref<128x128xbf16, #tpu.memory_space<vmem>>, vector<128x128xbf16>
    tpu.vector_store %arg4[%c0_6, %c0_7], %8 {strides = array<i32>} : memref<128x128xbf16, #tpu.memory_space<vmem>>, vector<128x128xbf16>,
    return
  }
  func.func @transform_0(%arg0: i32) -> (i32, i32) {
    %c0_i32 = arith.constant 0 : i32
    %c0_i32_0 = arith.constant 0 : i32
    return %arg0, %c0_i32 : i32, i32
  }
  func.func @transform_1(%arg0: i32) -> (i32, i32) {
    %c0_i32 = arith.constant 0 : i32
    %c0_i32_0 = arith.constant 0 : i32
    %c0_i32_1 = arith.constant 0 : i32
    return %c0_i32, %c0_i32_0 : i32, i32
  }
  func.func @transform_2(%arg0: i32) -> (i32, i32) {
    %c0_i32 = arith.constant 0 : i32
    %c0_i32_0 = arith.constant 0 : i32
    %c0_i32_1 = arith.constant 0 : i32
    return %c0_i32, %c0_i32_0 : i32, i32
  }
  func.func @transform_3(%arg0: i32) -> (i32, i32) {
    %c0_i32 = arith.constant 0 : i32
    %c0_i32_0 = arith.constant 0 : i32
    return %arg0, %c0_i32 : i32, i32
  }
}

module attributes {stable_mosaic.version = 11 : i64} {
  func.func @_mm_epilogue_kernel(%arg0: i32, %arg1: memref<32x144xbf16, #tpu.memory_space<vmem>>, %arg2: memref<144x128xbf16, #tpu.memory_space<vmem>>, %arg3: memref<1x128xf32, #tpu.memory_space<vmem>>, %arg4: memref<32x128xbf16, #tpu.memory_space<vmem>>) attributes {dimension_semantics = [#tpu.dimension_semantics<parallel>], iteration_bounds = array<i64: 1>, scalar_prefetch = 0 : i64, scratch_operands = 0 : i64, tpu.core_type = #tpu.core_type<tc>, window_params = [{transform_indices = @transform_0, window_bounds = array<i64: 32, 144>}, {pipeline_mode = #tpu.pipeline_mode<synchronous>, transform_indices = @transform_1, window_bounds = array<i64: 144, 128>}, {pipeline_mode = #tpu.pipeline_mode<synchronous>, transform_indices = @transform_2, window_bounds = array<i64: 1, 128>}, {transform_indices = @transform_3, window_bounds = array<i64: 32, 128>}]} {
    %c0 = arith.constant 0 : index
    %c0_0 = arith.constant 0 : index
    %0 = vector.load %arg1[%c0, %c0_0] : memref<32x144xbf16, #tpu.memory_space<vmem>>, vector<32x144xbf16>
    %c0_1 = arith.constant 0 : index
    %c0_2 = arith.constant 0 : index
    %1 = vector.load %arg2[%c0_1, %c0_2] : memref<144x128xbf16, #tpu.memory_space<vmem>>, vector<144x128xbf16>
    %cst = arith.constant dense<0.000000e+00> : vector<32x128xf32>
    %2 = tpu.matmul %0, %1, %cst {dimension_numbers = #tpu.dot_dimension_numbers<[1], [0], [0], [1], [0, 0, 1, 1], [], []>} : vector<32x144xbf16>, vector<144x128xbf16>, vector<32x128xf32> -> vector<32x128xf32>
    %c0_3 = arith.constant 0 : index
    %c0_4 = arith.constant 0 : index
    %3 = vector.load %arg3[%c0_3, %c0_4] : memref<1x128xf32, #tpu.memory_space<vmem>>, vector<1x128xf32>
    %4 = vector.broadcast %3 : vector<1x128xf32> to vector<32x128xf32>
    %5 = arith.addf %2, %4 : vector<32x128xf32>
    %cst_5 = arith.constant 0.000000e+00 : f32
    %6 = vector.broadcast %cst_5 : f32 to vector<32x128xf32>
    %7 = arith.maximumf %5, %6 : vector<32x128xf32>
    %8 = arith.truncf %7 : vector<32x128xf32> to vector<32x128xbf16>
    %c0_6 = arith.constant 0 : index
    %c0_7 = arith.constant 0 : index
    %9 = vector.load %arg4[%c0_6, %c0_7] : memref<32x128xbf16, #tpu.memory_space<vmem>>, vector<32x128xbf16>
    tpu.vector_store %arg4[%c0_6, %c0_7], %8 {strides = array<i32>} : memref<32x128xbf16, #tpu.memory_space<vmem>>, vector<32x128xbf16>,
    return
  }
  func.func @transform_0(%arg0: i32) -> (i32, i32) {
    %c0_i32 = arith.constant 0 : i32
    %c0_i32_0 = arith.constant 0 : i32
    return %arg0, %c0_i32 : i32, i32
  }
  func.func @transform_1(%arg0: i32) -> (i32, i32) {
    %c0_i32 = arith.constant 0 : i32
    %c0_i32_0 = arith.constant 0 : i32
    %c0_i32_1 = arith.constant 0 : i32
    return %c0_i32, %c0_i32_0 : i32, i32
  }
  func.func @transform_2(%arg0: i32) -> (i32, i32) {
    %c0_i32 = arith.constant 0 : i32
    %c0_i32_0 = arith.constant 0 : i32
    %c0_i32_1 = arith.constant 0 : i32
    return %c0_i32, %c0_i32_0 : i32, i32
  }
  func.func @transform_3(%arg0: i32) -> (i32, i32) {
    %c0_i32 = arith.constant 0 : i32
    %c0_i32_0 = arith.constant 0 : i32
    return %arg0, %c0_i32 : i32, i32
  }
}

module attributes {stable_mosaic.version = 11 : i64} {
  func.func @_mm_epilogue_kernel(%arg0: i32, %arg1: memref<8x576xbf16, #tpu.memory_space<vmem>>, %arg2: memref<576x128xbf16, #tpu.memory_space<vmem>>, %arg3: memref<1x128xf32, #tpu.memory_space<vmem>>, %arg4: memref<8x128xbf16, #tpu.memory_space<vmem>>) attributes {dimension_semantics = [#tpu.dimension_semantics<parallel>], iteration_bounds = array<i64: 1>, scalar_prefetch = 0 : i64, scratch_operands = 0 : i64, tpu.core_type = #tpu.core_type<tc>, window_params = [{transform_indices = @transform_0, window_bounds = array<i64: 8, 576>}, {pipeline_mode = #tpu.pipeline_mode<synchronous>, transform_indices = @transform_1, window_bounds = array<i64: 576, 128>}, {pipeline_mode = #tpu.pipeline_mode<synchronous>, transform_indices = @transform_2, window_bounds = array<i64: 1, 128>}, {transform_indices = @transform_3, window_bounds = array<i64: 8, 128>}]} {
    %c0 = arith.constant 0 : index
    %c0_0 = arith.constant 0 : index
    %0 = vector.load %arg1[%c0, %c0_0] : memref<8x576xbf16, #tpu.memory_space<vmem>>, vector<8x576xbf16>
    %c0_1 = arith.constant 0 : index
    %c0_2 = arith.constant 0 : index
    %1 = vector.load %arg2[%c0_1, %c0_2] : memref<576x128xbf16, #tpu.memory_space<vmem>>, vector<576x128xbf16>
    %cst = arith.constant dense<0.000000e+00> : vector<8x128xf32>
    %2 = tpu.matmul %0, %1, %cst {dimension_numbers = #tpu.dot_dimension_numbers<[1], [0], [0], [1], [0, 0, 1, 1], [], []>} : vector<8x576xbf16>, vector<576x128xbf16>, vector<8x128xf32> -> vector<8x128xf32>
    %c0_3 = arith.constant 0 : index
    %c0_4 = arith.constant 0 : index
    %3 = vector.load %arg3[%c0_3, %c0_4] : memref<1x128xf32, #tpu.memory_space<vmem>>, vector<1x128xf32>
    %4 = vector.broadcast %3 : vector<1x128xf32> to vector<8x128xf32>
    %5 = arith.addf %2, %4 : vector<8x128xf32>
    %cst_5 = arith.constant 0.000000e+00 : f32
    %6 = vector.broadcast %cst_5 : f32 to vector<8x128xf32>
    %7 = arith.maximumf %5, %6 : vector<8x128xf32>
    %8 = arith.truncf %7 : vector<8x128xf32> to vector<8x128xbf16>
    %c0_6 = arith.constant 0 : index
    %c0_7 = arith.constant 0 : index
    %9 = vector.load %arg4[%c0_6, %c0_7] : memref<8x128xbf16, #tpu.memory_space<vmem>>, vector<8x128xbf16>
    tpu.vector_store %arg4[%c0_6, %c0_7], %8 {strides = array<i32>} : memref<8x128xbf16, #tpu.memory_space<vmem>>, vector<8x128xbf16>,
    return
  }
  func.func @transform_0(%arg0: i32) -> (i32, i32) {
    %c0_i32 = arith.constant 0 : i32
    %c0_i32_0 = arith.constant 0 : i32
    return %arg0, %c0_i32 : i32, i32
  }
  func.func @transform_1(%arg0: i32) -> (i32, i32) {
    %c0_i32 = arith.constant 0 : i32
    %c0_i32_0 = arith.constant 0 : i32
    %c0_i32_1 = arith.constant 0 : i32
    return %c0_i32, %c0_i32_0 : i32, i32
  }
  func.func @transform_2(%arg0: i32) -> (i32, i32) {
    %c0_i32 = arith.constant 0 : i32
    %c0_i32_0 = arith.constant 0 : i32
    %c0_i32_1 = arith.constant 0 : i32
    return %c0_i32, %c0_i32_0 : i32, i32
  }
  func.func @transform_3(%arg0: i32) -> (i32, i32) {
    %c0_i32 = arith.constant 0 : i32
    %c0_i32_0 = arith.constant 0 : i32
    return %arg0, %c0_i32 : i32, i32
  }
}

module attributes {stable_mosaic.version = 11 : i64} {
  func.func @_mm_epilogue_kernel(%arg0: i32, %arg1: memref<8x1152xbf16, #tpu.memory_space<vmem>>, %arg2: memref<1152x256xbf16, #tpu.memory_space<vmem>>, %arg3: memref<1x256xf32, #tpu.memory_space<vmem>>, %arg4: memref<8x256xbf16, #tpu.memory_space<vmem>>, %arg5: memref<8x256xbf16, #tpu.memory_space<vmem>>) attributes {dimension_semantics = [#tpu.dimension_semantics<parallel>], iteration_bounds = array<i64: 1>, scalar_prefetch = 0 : i64, scratch_operands = 0 : i64, tpu.core_type = #tpu.core_type<tc>, window_params = [{transform_indices = @transform_0, window_bounds = array<i64: 8, 1152>}, {pipeline_mode = #tpu.pipeline_mode<synchronous>, transform_indices = @transform_1, window_bounds = array<i64: 1152, 256>}, {pipeline_mode = #tpu.pipeline_mode<synchronous>, transform_indices = @transform_2, window_bounds = array<i64: 1, 256>}, {transform_indices = @transform_3, window_bounds = array<i64: 8, 256>}, {transform_indices = @transform_4, window_bounds = array<i64: 8, 256>}]} {
    %c0 = arith.constant 0 : index
    %c0_0 = arith.constant 0 : index
    %0 = vector.load %arg1[%c0, %c0_0] : memref<8x1152xbf16, #tpu.memory_space<vmem>>, vector<8x1152xbf16>
    %c0_1 = arith.constant 0 : index
    %c0_2 = arith.constant 0 : index
    %1 = vector.load %arg2[%c0_1, %c0_2] : memref<1152x256xbf16, #tpu.memory_space<vmem>>, vector<1152x256xbf16>
    %cst = arith.constant dense<0.000000e+00> : vector<8x256xf32>
    %2 = tpu.matmul %0, %1, %cst {dimension_numbers = #tpu.dot_dimension_numbers<[1], [0], [0], [1], [0, 0, 1, 1], [], []>} : vector<8x1152xbf16>, vector<1152x256xbf16>, vector<8x256xf32> -> vector<8x256xf32>
    %c0_3 = arith.constant 0 : index
    %c0_4 = arith.constant 0 : index
    %3 = vector.load %arg3[%c0_3, %c0_4] : memref<1x256xf32, #tpu.memory_space<vmem>>, vector<1x256xf32>
    %4 = vector.broadcast %3 : vector<1x256xf32> to vector<8x256xf32>
    %5 = arith.addf %2, %4 : vector<8x256xf32>
    %cst_5 = arith.constant 0.000000e+00 : f32
    %6 = vector.broadcast %cst_5 : f32 to vector<8x256xf32>
    %7 = arith.maximumf %5, %6 : vector<8x256xf32>
    %c0_6 = arith.constant 0 : index
    %c0_7 = arith.constant 0 : index
    %8 = vector.load %arg4[%c0_6, %c0_7] : memref<8x256xbf16, #tpu.memory_space<vmem>>, vector<8x256xbf16>
    %9 = arith.extf %8 : vector<8x256xbf16> to vector<8x256xf32>
    %cst_8 = arith.constant 0.000000e+00 : f32
    %10 = vector.broadcast %cst_8 : f32 to vector<8x256xf32>
    %11 = arith.subf %10, %9 : vector<8x256xf32>
    %12 = math.exp %11 : vector<8x256xf32>
    %cst_9 = arith.constant 1.000000e+00 : f32
    %13 = vector.broadcast %cst_9 : f32 to vector<8x256xf32>
    %14 = arith.addf %13, %12 : vector<8x256xf32>
    %cst_10 = arith.constant 1.000000e+00 : f32
    %15 = vector.broadcast %cst_10 : f32 to vector<8x256xf32>
    %16 = arith.divf %15, %14 : vector<8x256xf32>
    %17 = arith.mulf %7, %16 : vector<8x256xf32>
    %18 = arith.truncf %17 : vector<8x256xf32> to vector<8x256xbf16>
    %c0_11 = arith.constant 0 : index
    %c0_12 = arith.constant 0 : index
    %19 = vector.load %arg5[%c0_11, %c0_12] : memref<8x256xbf16, #tpu.memory_space<vmem>>, vector<8x256xbf16>
    tpu.vector_store %arg5[%c0_11, %c0_12], %18 {strides = array<i32>} : memref<8x256xbf16, #tpu.memory_space<vmem>>, vector<8x256xbf16>,
    return
  }
  func.func @transform_0(%arg0: i32) -> (i32, i32) {
    %c0_i32 = arith.constant 0 : i32
    %c0_i32_0 = arith.constant 0 : i32
    return %arg0, %c0_i32 : i32, i32
  }
  func.func @transform_1(%arg0: i32) -> (i32, i32) {
    %c0_i32 = arith.constant 0 : i32
    %c0_i32_0 = arith.constant 0 : i32
    %c0_i32_1 = arith.constant 0 : i32
    return %c0_i32, %c0_i32_0 : i32, i32
  }
  func.func @transform_2(%arg0: i32) -> (i32, i32) {
    %c0_i32 = arith.constant 0 : i32
    %c0_i32_0 = arith.constant 0 : i32
    %c0_i32_1 = arith.constant 0 : i32
    return %c0_i32, %c0_i32_0 : i32, i32
  }
  func.func @transform_3(%arg0: i32) -> (i32, i32) {
    %c0_i32 = arith.constant 0 : i32
    %c0_i32_0 = arith.constant 0 : i32
    return %arg0, %c0_i32 : i32, i32
  }
  func.func @transform_4(%arg0: i32) -> (i32, i32) {
    %c0_i32 = arith.constant 0 : i32
    %c0_i32_0 = arith.constant 0 : i32
    return %arg0, %c0_i32 : i32, i32
  }
}

module attributes {stable_mosaic.version = 11 : i64} {
  func.func @_mm_epilogue_kernel(%arg0: i32, %arg1: memref<8x1152xbf16, #tpu.memory_space<vmem>>, %arg2: memref<1152x256xbf16, #tpu.memory_space<vmem>>, %arg3: memref<1x256xf32, #tpu.memory_space<vmem>>, %arg4: memref<8x256xbf16, #tpu.memory_space<vmem>>) attributes {dimension_semantics = [#tpu.dimension_semantics<parallel>], iteration_bounds = array<i64: 1>, scalar_prefetch = 0 : i64, scratch_operands = 0 : i64, tpu.core_type = #tpu.core_type<tc>, window_params = [{transform_indices = @transform_0, window_bounds = array<i64: 8, 1152>}, {pipeline_mode = #tpu.pipeline_mode<synchronous>, transform_indices = @transform_1, window_bounds = array<i64: 1152, 256>}, {pipeline_mode = #tpu.pipeline_mode<synchronous>, transform_indices = @transform_2, window_bounds = array<i64: 1, 256>}, {transform_indices = @transform_3, window_bounds = array<i64: 8, 256>}]} {
    %c0 = arith.constant 0 : index
    %c0_0 = arith.constant 0 : index
    %0 = vector.load %arg1[%c0, %c0_0] : memref<8x1152xbf16, #tpu.memory_space<vmem>>, vector<8x1152xbf16>
    %c0_1 = arith.constant 0 : index
    %c0_2 = arith.constant 0 : index
    %1 = vector.load %arg2[%c0_1, %c0_2] : memref<1152x256xbf16, #tpu.memory_space<vmem>>, vector<1152x256xbf16>
    %cst = arith.constant dense<0.000000e+00> : vector<8x256xf32>
    %2 = tpu.matmul %0, %1, %cst {dimension_numbers = #tpu.dot_dimension_numbers<[1], [0], [0], [1], [0, 0, 1, 1], [], []>} : vector<8x1152xbf16>, vector<1152x256xbf16>, vector<8x256xf32> -> vector<8x256xf32>
    %c0_3 = arith.constant 0 : index
    %c0_4 = arith.constant 0 : index
    %3 = vector.load %arg3[%c0_3, %c0_4] : memref<1x256xf32, #tpu.memory_space<vmem>>, vector<1x256xf32>
    %4 = vector.broadcast %3 : vector<1x256xf32> to vector<8x256xf32>
    %5 = arith.addf %2, %4 : vector<8x256xf32>
    %cst_5 = arith.constant 0.000000e+00 : f32
    %6 = vector.broadcast %cst_5 : f32 to vector<8x256xf32>
    %7 = arith.maximumf %5, %6 : vector<8x256xf32>
    %8 = arith.truncf %7 : vector<8x256xf32> to vector<8x256xbf16>
    %c0_6 = arith.constant 0 : index
    %c0_7 = arith.constant 0 : index
    %9 = vector.load %arg4[%c0_6, %c0_7] : memref<8x256xbf16, #tpu.memory_space<vmem>>, vector<8x256xbf16>
    tpu.vector_store %arg4[%c0_6, %c0_7], %8 {strides = array<i32>} : memref<8x256xbf16, #tpu.memory_space<vmem>>, vector<8x256xbf16>,
    return
  }
  func.func @transform_0(%arg0: i32) -> (i32, i32) {
    %c0_i32 = arith.constant 0 : i32
    %c0_i32_0 = arith.constant 0 : i32
    return %arg0, %c0_i32 : i32, i32
  }
  func.func @transform_1(%arg0: i32) -> (i32, i32) {
    %c0_i32 = arith.constant 0 : i32
    %c0_i32_0 = arith.constant 0 : i32
    %c0_i32_1 = arith.constant 0 : i32
    return %c0_i32, %c0_i32_0 : i32, i32
  }
  func.func @transform_2(%arg0: i32) -> (i32, i32) {
    %c0_i32 = arith.constant 0 : i32
    %c0_i32_0 = arith.constant 0 : i32
    %c0_i32_1 = arith.constant 0 : i32
    return %c0_i32, %c0_i32_0 : i32, i32
  }
  func.func @transform_3(%arg0: i32) -> (i32, i32) {
    %c0_i32 = arith.constant 0 : i32
    %c0_i32_0 = arith.constant 0 : i32
    return %arg0, %c0_i32 : i32, i32
  }
}

module attributes {stable_mosaic.version = 11 : i64} {
  func.func @_mm_epilogue_kernel(%arg0: i32, %arg1: memref<8x2304xbf16, #tpu.memory_space<vmem>>, %arg2: memref<2304x128xbf16, #tpu.memory_space<vmem>>, %arg3: memref<1x128xf32, #tpu.memory_space<vmem>>, %arg4: memref<8x128xbf16, #tpu.memory_space<vmem>>) attributes {dimension_semantics = [#tpu.dimension_semantics<parallel>], iteration_bounds = array<i64: 1>, scalar_prefetch = 0 : i64, scratch_operands = 0 : i64, tpu.core_type = #tpu.core_type<tc>, window_params = [{transform_indices = @transform_0, window_bounds = array<i64: 8, 2304>}, {pipeline_mode = #tpu.pipeline_mode<synchronous>, transform_indices = @transform_1, window_bounds = array<i64: 2304, 128>}, {pipeline_mode = #tpu.pipeline_mode<synchronous>, transform_indices = @transform_2, window_bounds = array<i64: 1, 128>}, {transform_indices = @transform_3, window_bounds = array<i64: 8, 128>}]} {
    %c0 = arith.constant 0 : index
    %c0_0 = arith.constant 0 : index
    %0 = vector.load %arg1[%c0, %c0_0] : memref<8x2304xbf16, #tpu.memory_space<vmem>>, vector<8x2304xbf16>
    %c0_1 = arith.constant 0 : index
    %c0_2 = arith.constant 0 : index
    %1 = vector.load %arg2[%c0_1, %c0_2] : memref<2304x128xbf16, #tpu.memory_space<vmem>>, vector<2304x128xbf16>
    %cst = arith.constant dense<0.000000e+00> : vector<8x128xf32>
    %2 = tpu.matmul %0, %1, %cst {dimension_numbers = #tpu.dot_dimension_numbers<[1], [0], [0], [1], [0, 0, 1, 1], [], []>} : vector<8x2304xbf16>, vector<2304x128xbf16>, vector<8x128xf32> -> vector<8x128xf32>
    %c0_3 = arith.constant 0 : index
    %c0_4 = arith.constant 0 : index
    %3 = vector.load %arg3[%c0_3, %c0_4] : memref<1x128xf32, #tpu.memory_space<vmem>>, vector<1x128xf32>
    %4 = vector.broadcast %3 : vector<1x128xf32> to vector<8x128xf32>
    %5 = arith.addf %2, %4 : vector<8x128xf32>
    %cst_5 = arith.constant 0.000000e+00 : f32
    %6 = vector.broadcast %cst_5 : f32 to vector<8x128xf32>
    %7 = arith.maximumf %5, %6 : vector<8x128xf32>
    %8 = arith.truncf %7 : vector<8x128xf32> to vector<8x128xbf16>
    %c0_6 = arith.constant 0 : index
    %c0_7 = arith.constant 0 : index
    %9 = vector.load %arg4[%c0_6, %c0_7] : memref<8x128xbf16, #tpu.memory_space<vmem>>, vector<8x128xbf16>
    tpu.vector_store %arg4[%c0_6, %c0_7], %8 {strides = array<i32>} : memref<8x128xbf16, #tpu.memory_space<vmem>>, vector<8x128xbf16>,
    return
  }
  func.func @transform_0(%arg0: i32) -> (i32, i32) {
    %c0_i32 = arith.constant 0 : i32
    %c0_i32_0 = arith.constant 0 : i32
    return %arg0, %c0_i32 : i32, i32
  }
  func.func @transform_1(%arg0: i32) -> (i32, i32) {
    %c0_i32 = arith.constant 0 : i32
    %c0_i32_0 = arith.constant 0 : i32
    %c0_i32_1 = arith.constant 0 : i32
    return %c0_i32, %c0_i32_0 : i32, i32
  }
  func.func @transform_2(%arg0: i32) -> (i32, i32) {
    %c0_i32 = arith.constant 0 : i32
    %c0_i32_0 = arith.constant 0 : i32
    %c0_i32_1 = arith.constant 0 : i32
    return %c0_i32, %c0_i32_0 : i32, i32
  }
  func.func @transform_3(%arg0: i32) -> (i32, i32) {
    %c0_i32 = arith.constant 0 : i32
    %c0_i32_0 = arith.constant 0 : i32
    return %arg0, %c0_i32 : i32, i32
  }
}

module attributes {stable_mosaic.version = 11 : i64} {
  func.func @_mm_epilogue_kernel(%arg0: i32, %arg1: memref<32x1152xbf16, #tpu.memory_space<vmem>>, %arg2: memref<1152x128xbf16, #tpu.memory_space<vmem>>, %arg3: memref<1x128xf32, #tpu.memory_space<vmem>>, %arg4: memref<32x128xbf16, #tpu.memory_space<vmem>>) attributes {dimension_semantics = [#tpu.dimension_semantics<parallel>], iteration_bounds = array<i64: 1>, scalar_prefetch = 0 : i64, scratch_operands = 0 : i64, tpu.core_type = #tpu.core_type<tc>, window_params = [{transform_indices = @transform_0, window_bounds = array<i64: 32, 1152>}, {pipeline_mode = #tpu.pipeline_mode<synchronous>, transform_indices = @transform_1, window_bounds = array<i64: 1152, 128>}, {pipeline_mode = #tpu.pipeline_mode<synchronous>, transform_indices = @transform_2, window_bounds = array<i64: 1, 128>}, {transform_indices = @transform_3, window_bounds = array<i64: 32, 128>}]} {
    %c0 = arith.constant 0 : index
    %c0_0 = arith.constant 0 : index
    %0 = vector.load %arg1[%c0, %c0_0] : memref<32x1152xbf16, #tpu.memory_space<vmem>>, vector<32x1152xbf16>
    %c0_1 = arith.constant 0 : index
    %c0_2 = arith.constant 0 : index
    %1 = vector.load %arg2[%c0_1, %c0_2] : memref<1152x128xbf16, #tpu.memory_space<vmem>>, vector<1152x128xbf16>
    %cst = arith.constant dense<0.000000e+00> : vector<32x128xf32>
    %2 = tpu.matmul %0, %1, %cst {dimension_numbers = #tpu.dot_dimension_numbers<[1], [0], [0], [1], [0, 0, 1, 1], [], []>} : vector<32x1152xbf16>, vector<1152x128xbf16>, vector<32x128xf32> -> vector<32x128xf32>
    %c0_3 = arith.constant 0 : index
    %c0_4 = arith.constant 0 : index
    %3 = vector.load %arg3[%c0_3, %c0_4] : memref<1x128xf32, #tpu.memory_space<vmem>>, vector<1x128xf32>
    %4 = vector.broadcast %3 : vector<1x128xf32> to vector<32x128xf32>
    %5 = arith.addf %2, %4 : vector<32x128xf32>
    %cst_5 = arith.constant 0.000000e+00 : f32
    %6 = vector.broadcast %cst_5 : f32 to vector<32x128xf32>
    %7 = arith.maximumf %5, %6 : vector<32x128xf32>
    %8 = arith.truncf %7 : vector<32x128xf32> to vector<32x128xbf16>
    %c0_6 = arith.constant 0 : index
    %c0_7 = arith.constant 0 : index
    %9 = vector.load %arg4[%c0_6, %c0_7] : memref<32x128xbf16, #tpu.memory_space<vmem>>, vector<32x128xbf16>
    tpu.vector_store %arg4[%c0_6, %c0_7], %8 {strides = array<i32>} : memref<32x128xbf16, #tpu.memory_space<vmem>>, vector<32x128xbf16>,
    return
  }
  func.func @transform_0(%arg0: i32) -> (i32, i32) {
    %c0_i32 = arith.constant 0 : i32
    %c0_i32_0 = arith.constant 0 : i32
    return %arg0, %c0_i32 : i32, i32
  }
  func.func @transform_1(%arg0: i32) -> (i32, i32) {
    %c0_i32 = arith.constant 0 : i32
    %c0_i32_0 = arith.constant 0 : i32
    %c0_i32_1 = arith.constant 0 : i32
    return %c0_i32, %c0_i32_0 : i32, i32
  }
  func.func @transform_2(%arg0: i32) -> (i32, i32) {
    %c0_i32 = arith.constant 0 : i32
    %c0_i32_0 = arith.constant 0 : i32
    %c0_i32_1 = arith.constant 0 : i32
    return %c0_i32, %c0_i32_0 : i32, i32
  }
  func.func @transform_3(%arg0: i32) -> (i32, i32) {
    %c0_i32 = arith.constant 0 : i32
    %c0_i32_0 = arith.constant 0 : i32
    return %arg0, %c0_i32 : i32, i32
  }
}

module attributes {stable_mosaic.version = 11 : i64} {
  func.func @_mm_epilogue_kernel(%arg0: i32, %arg1: memref<128x576xbf16, #tpu.memory_space<vmem>>, %arg2: memref<576x128xbf16, #tpu.memory_space<vmem>>, %arg3: memref<1x128xf32, #tpu.memory_space<vmem>>, %arg4: memref<128x128xbf16, #tpu.memory_space<vmem>>) attributes {dimension_semantics = [#tpu.dimension_semantics<parallel>], iteration_bounds = array<i64: 1>, scalar_prefetch = 0 : i64, scratch_operands = 0 : i64, tpu.core_type = #tpu.core_type<tc>, window_params = [{transform_indices = @transform_0, window_bounds = array<i64: 128, 576>}, {pipeline_mode = #tpu.pipeline_mode<synchronous>, transform_indices = @transform_1, window_bounds = array<i64: 576, 128>}, {pipeline_mode = #tpu.pipeline_mode<synchronous>, transform_indices = @transform_2, window_bounds = array<i64: 1, 128>}, {transform_indices = @transform_3, window_bounds = array<i64: 128, 128>}]} {
    %c0 = arith.constant 0 : index
    %c0_0 = arith.constant 0 : index
    %0 = vector.load %arg1[%c0, %c0_0] : memref<128x576xbf16, #tpu.memory_space<vmem>>, vector<128x576xbf16>
    %c0_1 = arith.constant 0 : index
    %c0_2 = arith.constant 0 : index
    %1 = vector.load %arg2[%c0_1, %c0_2] : memref<576x128xbf16, #tpu.memory_space<vmem>>, vector<576x128xbf16>
    %cst = arith.constant dense<0.000000e+00> : vector<128x128xf32>
    %2 = tpu.matmul %0, %1, %cst {dimension_numbers = #tpu.dot_dimension_numbers<[1], [0], [0], [1], [0, 0, 1, 1], [], []>} : vector<128x576xbf16>, vector<576x128xbf16>, vector<128x128xf32> -> vector<128x128xf32>
    %c0_3 = arith.constant 0 : index
    %c0_4 = arith.constant 0 : index
    %3 = vector.load %arg3[%c0_3, %c0_4] : memref<1x128xf32, #tpu.memory_space<vmem>>, vector<1x128xf32>
    %4 = vector.broadcast %3 : vector<1x128xf32> to vector<128x128xf32>
    %5 = arith.addf %2, %4 : vector<128x128xf32>
    %cst_5 = arith.constant 0.000000e+00 : f32
    %6 = vector.broadcast %cst_5 : f32 to vector<128x128xf32>
    %7 = arith.maximumf %5, %6 : vector<128x128xf32>
    %8 = arith.truncf %7 : vector<128x128xf32> to vector<128x128xbf16>
    %c0_6 = arith.constant 0 : index
    %c0_7 = arith.constant 0 : index
    %9 = vector.load %arg4[%c0_6, %c0_7] : memref<128x128xbf16, #tpu.memory_space<vmem>>, vector<128x128xbf16>
    tpu.vector_store %arg4[%c0_6, %c0_7], %8 {strides = array<i32>} : memref<128x128xbf16, #tpu.memory_space<vmem>>, vector<128x128xbf16>,
    return
  }
  func.func @transform_0(%arg0: i32) -> (i32, i32) {
    %c0_i32 = arith.constant 0 : i32
    %c0_i32_0 = arith.constant 0 : i32
    return %arg0, %c0_i32 : i32, i32
  }
  func.func @transform_1(%arg0: i32) -> (i32, i32) {
    %c0_i32 = arith.constant 0 : i32
    %c0_i32_0 = arith.constant 0 : i32
    %c0_i32_1 = arith.constant 0 : i32
    return %c0_i32, %c0_i32_0 : i32, i32
  }
  func.func @transform_2(%arg0: i32) -> (i32, i32) {
    %c0_i32 = arith.constant 0 : i32
    %c0_i32_0 = arith.constant 0 : i32
    %c0_i32_1 = arith.constant 0 : i32
    return %c0_i32, %c0_i32_0 : i32, i32
  }
  func.func @transform_3(%arg0: i32) -> (i32, i32) {
    %c0_i32 = arith.constant 0 : i32
    %c0_i32_0 = arith.constant 0 : i32
    return %arg0, %c0_i32 : i32, i32
  }
}

module attributes {stable_mosaic.version = 11 : i64} {
  func.func @_mm_epilogue_kernel(%arg0: i32, %arg1: memref<512x144xbf16, #tpu.memory_space<vmem>>, %arg2: memref<144x128xbf16, #tpu.memory_space<vmem>>, %arg3: memref<1x128xf32, #tpu.memory_space<vmem>>, %arg4: memref<512x128xf32, #tpu.memory_space<vmem>>) attributes {dimension_semantics = [#tpu.dimension_semantics<parallel>], iteration_bounds = array<i64: 1>, scalar_prefetch = 0 : i64, scratch_operands = 0 : i64, tpu.core_type = #tpu.core_type<tc>, window_params = [{transform_indices = @transform_0, window_bounds = array<i64: 512, 144>}, {pipeline_mode = #tpu.pipeline_mode<synchronous>, transform_indices = @transform_1, window_bounds = array<i64: 144, 128>}, {pipeline_mode = #tpu.pipeline_mode<synchronous>, transform_indices = @transform_2, window_bounds = array<i64: 1, 128>}, {transform_indices = @transform_3, window_bounds = array<i64: 512, 128>}]} {
    %c0 = arith.constant 0 : index
    %c0_0 = arith.constant 0 : index
    %0 = vector.load %arg1[%c0, %c0_0] : memref<512x144xbf16, #tpu.memory_space<vmem>>, vector<512x144xbf16>
    %c0_1 = arith.constant 0 : index
    %c0_2 = arith.constant 0 : index
    %1 = vector.load %arg2[%c0_1, %c0_2] : memref<144x128xbf16, #tpu.memory_space<vmem>>, vector<144x128xbf16>
    %cst = arith.constant dense<0.000000e+00> : vector<512x128xf32>
    %2 = tpu.matmul %0, %1, %cst {dimension_numbers = #tpu.dot_dimension_numbers<[1], [0], [0], [1], [0, 0, 1, 1], [], []>} : vector<512x144xbf16>, vector<144x128xbf16>, vector<512x128xf32> -> vector<512x128xf32>
    %c0_3 = arith.constant 0 : index
    %c0_4 = arith.constant 0 : index
    %3 = vector.load %arg3[%c0_3, %c0_4] : memref<1x128xf32, #tpu.memory_space<vmem>>, vector<1x128xf32>
    %4 = vector.broadcast %3 : vector<1x128xf32> to vector<512x128xf32>
    %5 = arith.addf %2, %4 : vector<512x128xf32>
    %cst_5 = arith.constant 0.000000e+00 : f32
    %6 = vector.broadcast %cst_5 : f32 to vector<512x128xf32>
    %7 = arith.maximumf %5, %6 : vector<512x128xf32>
    %c0_6 = arith.constant 0 : index
    %c0_7 = arith.constant 0 : index
    %8 = vector.load %arg4[%c0_6, %c0_7] : memref<512x128xf32, #tpu.memory_space<vmem>>, vector<512x128xf32>
    tpu.vector_store %arg4[%c0_6, %c0_7], %7 {strides = array<i32>} : memref<512x128xf32, #tpu.memory_space<vmem>>, vector<512x128xf32>,
    return
  }
  func.func @transform_0(%arg0: i32) -> (i32, i32) {
    %c0_i32 = arith.constant 0 : i32
    %c0_i32_0 = arith.constant 0 : i32
    return %arg0, %c0_i32 : i32, i32
  }
  func.func @transform_1(%arg0: i32) -> (i32, i32) {
    %c0_i32 = arith.constant 0 : i32
    %c0_i32_0 = arith.constant 0 : i32
    %c0_i32_1 = arith.constant 0 : i32
    return %c0_i32, %c0_i32_0 : i32, i32
  }
  func.func @transform_2(%arg0: i32) -> (i32, i32) {
    %c0_i32 = arith.constant 0 : i32
    %c0_i32_0 = arith.constant 0 : i32
    %c0_i32_1 = arith.constant 0 : i32
    return %c0_i32, %c0_i32_0 : i32, i32
  }
  func.func @transform_3(%arg0: i32) -> (i32, i32) {
    %c0_i32 = arith.constant 0 : i32
    %c0_i32_0 = arith.constant 0 : i32
    return %arg0, %c0_i32 : i32, i32
  }
}

</mosaic_0001>

<bundles_post_ra>
// kernel: align_net_forward.12
= control target key start
LH: loop header
LB: loop body
LE: loop exit
PB: predicated region body
PF: predicated region fallthrough
CT: control target
= control target key end

     0   :  { %vm115_vm0 = vcmask 1044480   ;;  %vm116_vm1 = vcmask 1045504   ;;  %v336_v2 = vmov 65535   ;;  %vm90_vm2 = vcmask 220160   ;;  %s425_s1 = inlined_call_operand.vmem [shape: bf16[27,128], index: 1, kind: input, shape index: {}]   ;;  %s426_s2 = inlined_call_operand.vmem [shape: f32[1,128], index: 2, kind: input, shape index: {}]   ;;  %s427_s0 = inlined_call_operand.vmem [shape: bf16[128,27], index: 0, kind: input, shape index: {}]   ;;  %s428_s3 = inlined_call_operand.vmem [shape: bf16[128,128], index: 3, kind: output, shape index: {}]  }
   0x1   :  { %v261_v0 = vld [vmem:[%s425_s1 + $0x8] sm:$0xf]  ;;  %v280_v1 = vld [vmem:[%s425_s1 + $0x8] sm:$0x30]  ;;  %v117_v3 = vsel %vm115_vm0, 4294967295, %v336_v2  ;;  %v279_v7 = vld [vmem:[%s425_s1] sm:$0xff] }
   0x2   :  { %v262_v4 = vor.u32 %v280_v1, %v261_v0  ;;  %v118_v5 = vsel %vm116_vm1, %v117_v3, 0  ;;  %v271_v8 = vld [vmem:[%s427_s0] sm:$0xff]  ;;  %v273_v9 = vld [vmem:[%s427_s0 + $0x10] sm:$0xff]  ;;  %v272_v12 = vld [vmem:[%s427_s0 + $0x8] sm:$0xff] }
   0x3   :  { %v275_v10 = vld [vmem:[%s427_s0 + $0x20] sm:$0xff]  ;;  %v277_v11 = vld [vmem:[%s427_s0 + $0x30] sm:$0xff]  ;;  %v274_v13 = vld [vmem:[%s427_s0 + $0x18] sm:$0xff] }
   0x4   :  { %v120_v6 = vand.u32 %v262_v4, %v118_v5  ;;  %v276_v14 = vld [vmem:[%s427_s0 + $0x28] sm:$0xff]  ;;  %v278_v15 = vld [vmem:[%s427_s0 + $0x38] sm:$0xff]  ;;  %v335_v18 = vld [vmem:[%s426_s2] ss:$0 sm:$0xff] }
   0x6   :  { %128 = vmatpush.bf16.msra.mxu0 %v120_v6  ;;  %328 = vmatpush.bf16.msra.mxu1 %v120_v6 }
   0x7   :  { %329 = vmatpush.bf16.msra.mxu2 %v120_v6  ;;  %330 = vmatpush.bf16.msra.mxu3 %v120_v6 }
   0xa   :  { %129 = vmatpush.bf16.msra.mxu0 %v279_v7  ;;  %331 = vmatpush.bf16.msra.mxu1 %v279_v7 }
   0xb   :  { %332 = vmatpush.bf16.msra.mxu2 %v279_v7  ;;  %333 = vmatpush.bf16.msra.mxu3 %v279_v7 }
   0xd   :  { %263 = vmatmul.msk.bf16.vlgmr.msra.gmra.mxu0 %vm90_vm2, %v271_v8  ;;  %265 = vmatmul.msk.bf16.vlgmr.msra.gmra.mxu1 %vm90_vm2, %v273_v9 }
   0xe   :  { %267 = vmatmul.msk.bf16.vlgmr.msra.gmra.mxu2 %vm90_vm2, %v275_v10  ;;  %269 = vmatmul.msk.bf16.vlgmr.msra.gmra.mxu3 %vm90_vm2, %v277_v11 }
  0x1d   :  { %264 = vmatmul.msk.bf16.gmra.mxu0 %vm90_vm2, %v272_v12  ;;  %266 = vmatmul.msk.bf16.gmra.mxu1 %vm90_vm2, %v274_v13 }
  0x1e   :  { %268 = vmatmul.msk.bf16.gmra.mxu2 %vm90_vm2, %v276_v14  ;;  %270 = vmatmul.msk.bf16.gmra.mxu3 %vm90_vm2, %v278_v15 }
  0x8a   :  { %v131_v16 = vpop.f32.mrf.mxu0  ;;  %v141_v17 = vpop.f32.mrf.mxu1 }
  0x8b   :  { %v132_v19 = vadd.f32 %v335_v18, %v131_v16  ;;  %v142_v20 = vadd.f32 %v335_v18, %v141_v17 }
  0x8d   :  { %v171_v27 = vmax.f32 %v132_v19, 0.0  ;;  %v175_v28 = vmax.f32 %v142_v20, 0.0 }
  0x91   :  { %v151_v21 = vpop.f32.mrf.mxu2  ;;  %v161_v22 = vpop.f32.mrf.mxu3 }
  0x92   :  { %v133_v23 = vpop.f32.mrf.mxu0  ;;  %v143_v24 = vpop.f32.mrf.mxu1  ;;  %v152_v33 = vadd.f32 %v335_v18, %v151_v21  ;;  %v162_v34 = vadd.f32 %v335_v18, %v161_v22 }
  0x93   :  { %v134_v25 = vadd.f32 %v335_v18, %v133_v23  ;;  %v144_v26 = vadd.f32 %v335_v18, %v143_v24 }
  0x94   :  { %v179_v41 = vmax.f32 %v152_v33, 0.0  ;;  %v183_v42 = vmax.f32 %v162_v34, 0.0 }
  0x95   :  { %v172_v29 = vmax.f32 %v134_v25, 0.0  ;;  %v176_v30 = vmax.f32 %v144_v26, 0.0 }
  0x97   :  { %v284_v31 = vpack.c.bf16 %v172_v29, %v171_v27  ;;  %v294_v32 = vpack.c.bf16 %v176_v30, %v175_v28 }
  0x99   :  { %285 = vst [vmem:[%s428_s3] sm:$0xff] %v284_v31   ;;  %v153_v35 = vpop.f32.mrf.mxu2  ;;  %v163_v36 = vpop.f32.mrf.mxu3 }
  0x9a   :  { %322 = vst [vmem:[%s428_s3 + $0x10] sm:$0xff] %v294_v32   ;;  %v154_v37 = vadd.f32 %v335_v18, %v153_v35  ;;  %v164_v38 = vadd.f32 %v335_v18, %v163_v36  ;;  %v136_v39 = vpop.f32.mrf.mxu0  ;;  %v146_v40 = vpop.f32.mrf.mxu1 }
  0x9b   :  { %v137_v47 = vadd.f32 %v335_v18, %v136_v39  ;;  %v147_v48 = vadd.f32 %v335_v18, %v146_v40 }
  0x9c   :  { %v180_v43 = vmax.f32 %v154_v37, 0.0  ;;  %v184_v44 = vmax.f32 %v164_v38, 0.0 }
  0x9d   :  { %v173_v55 = vmax.f32 %v137_v47, 0.0  ;;  %v177_v56 = vmax.f32 %v147_v48, 0.0 }
  0x9e   :  { %v304_v45 = vpack.c.bf16 %v180_v43, %v179_v41  ;;  %v314_v46 = vpack.c.bf16 %v184_v44, %v183_v42 }
  0xa0   :  { %324 = vst [vmem:[%s428_s3 + $0x20] sm:$0xff] %v304_v45  }
  0xa1   :  { %326 = vst [vmem:[%s428_s3 + $0x30] sm:$0xff] %v314_v46   ;;  %v156_v49 = vpop.f32.mrf.mxu2  ;;  %v166_v50 = vpop.f32.mrf.mxu3 }
  0xa2   :  { %v138_v51 = vpop.f32.mrf.mxu0  ;;  %v148_v52 = vpop.f32.mrf.mxu1  ;;  %v157_v61 = vadd.f32 %v335_v18, %v156_v49  ;;  %v167_v62 = vadd.f32 %v335_v18, %v166_v50 }
  0xa3   :  { %v139_v53 = vadd.f32 %v335_v18, %v138_v51  ;;  %v149_v54 = vadd.f32 %v335_v18, %v148_v52 }
  0xa4   :  { %v181_v3 = vmax.f32 %v157_v61, 0.0  ;;  %v185_v4 = vmax.f32 %v167_v62, 0.0 }
  0xa5   :  { %v174_v57 = vmax.f32 %v139_v53, 0.0  ;;  %v178_v58 = vmax.f32 %v149_v54, 0.0 }
  0xa7   :  { %v289_v59 = vpack.c.bf16 %v174_v57, %v173_v55  ;;  %v299_v60 = vpack.c.bf16 %v178_v58, %v177_v56 }
  0xa9   :  { %321 = vst [vmem:[%s428_s3 + $0x8] sm:$0xff] %v289_v59   ;;  %v158_v63 = vpop.f32.mrf.mxu2  ;;  %v168_v0 = vpop.f32.mrf.mxu3 }
  0xaa   :  { %323 = vst [vmem:[%s428_s3 + $0x18] sm:$0xff] %v299_v60   ;;  %v159_v1 = vadd.f32 %v335_v18, %v158_v63  ;;  %v169_v2 = vadd.f32 %v335_v18, %v168_v0 }
  0xac   :  { %v182_v5 = vmax.f32 %v159_v1, 0.0  ;;  %v186_v6 = vmax.f32 %v169_v2, 0.0 }
  0xae   :  { %v309_v7 = vpack.c.bf16 %v182_v5, %v181_v3  ;;  %v319_v8 = vpack.c.bf16 %v186_v6, %v185_v4 }
  0xb0   :  { %325 = vst [vmem:[%s428_s3 + $0x28] sm:$0xff] %v309_v7  }
  0xb1   :  { %327 = vst [vmem:[%s428_s3 + $0x38] sm:$0xff] %v319_v8  }

// kernel: align_net_forward.13
= control target key start
LH: loop header
LB: loop body
LE: loop exit
PB: predicated region body
PF: predicated region fallthrough
CT: control target
= control target key end

     0   :  { %vm113_vm0 = vcmask 130048   ;;  %s343_s1 = inlined_call_operand.vmem [shape: bf16[144,128], index: 1, kind: input, shape index: {}]   ;;  %s344_s0 = inlined_call_operand.vmem [shape: bf16[32,144], index: 0, kind: input, shape index: {}]   ;;  %s345_s2 = inlined_call_operand.vmem [shape: f32[1,128], index: 2, kind: input, shape index: {}]   ;;  %s346_s3 = inlined_call_operand.vmem [shape: bf16[32,128], index: 3, kind: output, shape index: {}]  }
   0x1   :  { %v239_v0 = vld [vmem:[%s343_s1 + $0x38] sm:$0xff]  ;;  %v240_v1 = vld [vmem:[%s343_s1 + $0x40] sm:$0xff]  ;;  %v238_v3 = vld [vmem:[%s343_s1 + $0x30] sm:$0xff] }
   0x2   :  { %v228_v2 = vld [vmem:[%s344_s0 + $0x4] sm:$0xf]  ;;  %120 = vmatpush.bf16.msra.mxu0 %v239_v0  ;;  %252 = vmatpush.bf16.msra.mxu2 %v239_v0  ;;  %v178_v4 = vld [vmem:[%s344_s0 + $0x8] sm:$0xf0]  ;;  %v235_v8 = vld [vmem:[%s343_s1 + $0x18] sm:$0xff] }
   0x3   :  { %146 = vmatpush.bf16.msra.mxu1 %v240_v1  ;;  %v181_v5 = vor.u32 %v228_v2, %v178_v4  ;;  %v237_v6 = vld [vmem:[%s343_s1 + $0x28] sm:$0xff]  ;;  %v236_v7 = vld [vmem:[%s343_s1 + $0x20] sm:$0xff]  ;;  %v230_v9 = vld [vmem:[%s344_s0 + $0x14] sm:$0xf] }
   0x4   :  { %v186_v10 = vld [vmem:[%s344_s0 + $0x18] sm:$0xf0]  ;;  %v234_v11 = vld [vmem:[%s343_s1 + $0x10] sm:$0xff]  ;;  %v233_v13 = vld [vmem:[%s343_s1 + $0x8] sm:$0xff] }
   0x5   :  { %v189_v12 = vor.u32 %v230_v9, %v186_v10  ;;  %v232_v14 = vld [vmem:[%s343_s1] sm:$0xff]  ;;  %v229_v16 = vld [vmem:[%s344_s0 + $0x4] sm:$0xf0]  ;;  %v184_v17 = vld [vmem:[%s344_s0 + $0x10] sm:$0xf] }
   0x6   :  { %121 = vmatpush.bf16.msra.mxu0 %v238_v3  ;;  %253 = vmatpush.bf16.msra.mxu2 %v238_v3  ;;  %v176_v15 = vld [vmem:[%s344_s0] sm:$0xf]  ;;  %v231_v18 = vld [vmem:[%s344_s0 + $0x14] sm:$0xf0] }
   0x7   :  { %226 = vmatmul.msk.bf16.vlgmr.msra.gmra.mxu1 %vm113_vm0, %v181_v5  ;;  %v177_v19 = vor.u32 %v229_v16, %v176_v15  ;;  %v185_v20 = vor.u32 %v231_v18, %v184_v17  ;;  %v260_v24 = vld [vmem:[%s345_s2] ss:$0 sm:$0xff] }
   0xa   :  { %122 = vmatpush.bf16.msra.mxu0 %v237_v6  ;;  %254 = vmatpush.bf16.msra.mxu2 %v237_v6 }
   0xe   :  { %123 = vmatpush.bf16.msra.mxu0 %v236_v7  ;;  %255 = vmatpush.bf16.msra.mxu2 %v236_v7 }
  0x12   :  { %124 = vmatpush.bf16.msra.mxu0 %v235_v8  ;;  %256 = vmatpush.bf16.msra.mxu2 %v235_v8 }
  0x16   :  { %125 = vmatpush.bf16.msra.mxu0 %v234_v11  ;;  %257 = vmatpush.bf16.msra.mxu2 %v234_v11 }
  0x17   :  { %227 = vmatmul.msk.bf16.gmra.mxu1 %vm113_vm0, %v189_v12 }
  0x1a   :  { %126 = vmatpush.bf16.msra.mxu0 %v233_v13  ;;  %258 = vmatpush.bf16.msra.mxu2 %v233_v13 }
  0x1e   :  { %127 = vmatpush.bf16.msra.mxu0 %v232_v14  ;;  %259 = vmatpush.bf16.msra.mxu2 %v232_v14 }
  0x21   :  { %128 = vmatmul.bf16.vlgmr.msra.gmra.mxu0 %v177_v19  ;;  %133 = vmatmul.bf16.vlgmr.msra.gmra.mxu2 %v185_v20 }
  0x84   :  { %v148_v21 = vpop.f32.mrf.mxu1 }
  0x8c   :  { %v150_v22 = vpop.f32.mrf.mxu1 }
  0x94   :  { %v153_v26 = vpop.f32.mrf.mxu1 }
  0x9c   :  { %v155_v39 = vpop.f32.mrf.mxu1 }
  0x9e   :  { %v129_v23 = vpop.f32.mrf.mxu0 }
  0x9f   :  { %v130_v25 = vadd.f32 %v260_v24, %v129_v23 }
  0xa1   :  { %v149_v29 = vadd.f32 %v148_v21, %v130_v25 }
  0xa3   :  { %v158_v33 = vmax.f32 %v149_v29, 0.0 }
  0xa4   :  { %v134_v27 = vpop.f32.mrf.mxu2 }
  0xa5   :  { %v135_v31 = vadd.f32 %v260_v24, %v134_v27 }
  0xa6   :  { %v131_v28 = vpop.f32.mrf.mxu0 }
  0xa7   :  { %v132_v30 = vadd.f32 %v260_v24, %v131_v28  ;;  %v154_v36 = vadd.f32 %v153_v26, %v135_v31 }
  0xa9   :  { %v151_v32 = vadd.f32 %v150_v22, %v132_v30  ;;  %v160_v41 = vmax.f32 %v154_v36, 0.0 }
  0xab   :  { %v159_v34 = vmax.f32 %v151_v32, 0.0 }
  0xac   :  { %v136_v35 = vpop.f32.mrf.mxu2 }
  0xad   :  { %v244_v37 = vpack.c.bf16 %v159_v34, %v158_v33  ;;  %v137_v38 = vadd.f32 %v260_v24, %v136_v35 }
  0xaf   :  { %245 = vst [vmem:[%s346_s3] sm:$0xff] %v244_v37   ;;  %v156_v40 = vadd.f32 %v155_v39, %v137_v38 }
  0xb1   :  { %v161_v42 = vmax.f32 %v156_v40, 0.0 }
  0xb3   :  { %v249_v43 = vpack.c.bf16 %v161_v42, %v160_v41 }
  0xb5   :  { %251 = vst [vmem:[%s346_s3 + $0x8] sm:$0xff] %v249_v43  }

// kernel: align_net_forward.14
= control target key start
LH: loop header
LB: loop body
LE: loop exit
PB: predicated region body
PF: predicated region fallthrough
CT: control target
= control target key end

     0   :  { %vm327_vm0 = vcmask 523264   ;;  %s728_s1 = inlined_call_operand.vmem [shape: bf16[576,128], index: 1, kind: input, shape index: {}]   ;;  %s729_s2 = inlined_call_operand.vmem [shape: f32[1,128], index: 2, kind: input, shape index: {}]   ;;  %s730_s0 = inlined_call_operand.vmem [shape: bf16[8,576], index: 0, kind: input, shape index: {}]   ;;  %s731_s3 = inlined_call_operand.vmem [shape: bf16[8,128], index: 3, kind: output, shape index: {}]  }
   0x1   :  { %v555_v0 = vld [vmem:[%s728_s1 + $0x38] sm:$0xff]  ;;  %v554_v4 = vld [vmem:[%s728_s1 + $0x30] sm:$0xff]  ;;  %v553_v8 = vld [vmem:[%s728_s1 + $0x28] sm:$0xff] }
   0x2   :  { %v571_v1 = vld [vmem:[%s728_s1 + $0xb8] sm:$0xff]  ;;  %331 = vmatpush.bf16.msra.mxu0 %v555_v0  ;;  %v570_v5 = vld [vmem:[%s728_s1 + $0xb0] sm:$0xff]  ;;  %v569_v9 = vld [vmem:[%s728_s1 + $0xa8] sm:$0xff] }
   0x3   :  { %v579_v2 = vld [vmem:[%s728_s1 + $0xf8] sm:$0xff]  ;;  %357 = vmatpush.bf16.msra.mxu2 %v571_v1  ;;  %v578_v6 = vld [vmem:[%s728_s1 + $0xf0] sm:$0xff]  ;;  %v577_v10 = vld [vmem:[%s728_s1 + $0xe8] sm:$0xff] }
   0x4   :  { %v563_v3 = vld [vmem:[%s728_s1 + $0x78] sm:$0xff]  ;;  %370 = vmatpush.bf16.msra.mxu3 %v579_v2  ;;  %v562_v7 = vld [vmem:[%s728_s1 + $0x70] sm:$0xff]  ;;  %v561_v11 = vld [vmem:[%s728_s1 + $0x68] sm:$0xff] }
   0x5   :  { %344 = vmatpush.bf16.msra.mxu1 %v563_v3  ;;  %v552_v12 = vld [vmem:[%s728_s1 + $0x20] sm:$0xff]  ;;  %v551_v16 = vld [vmem:[%s728_s1 + $0x18] sm:$0xff]  ;;  %v550_v20 = vld [vmem:[%s728_s1 + $0x10] sm:$0xff] }
   0x6   :  { %332 = vmatpush.bf16.msra.mxu0 %v554_v4  ;;  %v568_v13 = vld [vmem:[%s728_s1 + $0xa0] sm:$0xff]  ;;  %v567_v17 = vld [vmem:[%s728_s1 + $0x98] sm:$0xff]  ;;  %v566_v21 = vld [vmem:[%s728_s1 + $0x90] sm:$0xff] }
   0x7   :  { %358 = vmatpush.bf16.msra.mxu2 %v570_v5  ;;  %v576_v14 = vld [vmem:[%s728_s1 + $0xe0] sm:$0xff]  ;;  %v575_v18 = vld [vmem:[%s728_s1 + $0xd8] sm:$0xff]  ;;  %v574_v22 = vld [vmem:[%s728_s1 + $0xd0] sm:$0xff] }
   0x8   :  { %371 = vmatpush.bf16.msra.mxu3 %v578_v6  ;;  %v560_v15 = vld [vmem:[%s728_s1 + $0x60] sm:$0xff]  ;;  %v559_v19 = vld [vmem:[%s728_s1 + $0x58] sm:$0xff]  ;;  %v558_v23 = vld [vmem:[%s728_s1 + $0x50] sm:$0xff] }
   0x9   :  { %345 = vmatpush.bf16.msra.mxu1 %v562_v7  ;;  %v549_v24 = vld [vmem:[%s728_s1 + $0x8] sm:$0xff]  ;;  %v15_v26 = vld [vmem:[%s730_s0] sm:$0xff]  ;;  %v583_v38 = vld [vmem:[%s728_s1 + $0x118] sm:$0xff] }
   0xa   :  { %333 = vmatpush.bf16.msra.mxu0 %v553_v8  ;;  %v565_v25 = vld [vmem:[%s728_s1 + $0x88] sm:$0xff]  ;;  %v97_v30 = vunpack.c.l.b16 %v15_v26  ;;  %v548_v32 = vld [vmem:[%s728_s1] sm:$0xff]  ;;  %v98_v35 = vunpack.c.h.b16 %v15_v26  ;;  %v582_v43 = vld [vmem:[%s728_s1 + $0x110] sm:$0xff] }
   0xb   :  { %359 = vmatpush.bf16.msra.mxu2 %v569_v9  ;;  %v16_v27 = vld [vmem:[%s730_s0 + $0x8] sm:$0xff]  ;;  %v564_v33 = vld [vmem:[%s728_s1 + $0x80] sm:$0xff]  ;;  %v17_v45 = vld [vmem:[%s730_s0 + $0x10] sm:$0xf] }
   0xc   :  { %372 = vmatpush.bf16.msra.mxu3 %v577_v10  ;;  %v573_v28 = vld [vmem:[%s728_s1 + $0xc8] sm:$0xff]  ;;  %v99_v31 = vunpack.c.l.b16 %v16_v27  ;;  %v100_v34 = vunpack.c.h.b16 %v16_v27  ;;  %v572_v36 = vld [vmem:[%s728_s1 + $0xc0] sm:$0xff]  ;;  %v102_v39 = vpack.c.b16 %v97_v30, %v97_v30  ;;  %v103_v42 = vpack.c.b16 %v98_v35, %v98_v35 }
   0xd   :  { %346 = vmatpush.bf16.msra.mxu1 %v561_v11  ;;  %v557_v29 = vld [vmem:[%s728_s1 + $0x48] sm:$0xff]  ;;  %v556_v37 = vld [vmem:[%s728_s1 + $0x40] sm:$0xff]  ;;  %v101_v47 = vunpack.c.l.b16 %v17_v45 }
   0xe   :  { %334 = vmatpush.bf16.msra.mxu0 %v552_v12  ;;  %v104_v40 = vpack.c.b16 %v99_v31, %v99_v31  ;;  %v105_v41 = vpack.c.b16 %v100_v34, %v100_v34  ;;  %v581_v44 = vld [vmem:[%s728_s1 + $0x108] sm:$0xff]  ;;  %v580_v46 = vld [vmem:[%s728_s1 + $0x100] sm:$0xff] }
   0xf   :  { %360 = vmatpush.bf16.msra.mxu2 %v568_v13  ;;  %v106_v48 = vpack.c.b16 %v101_v47, %v101_v47  ;;  %v584_v50 = vld [vmem:[%s729_s2] ss:$0 sm:$0xff] }
  0x10   :  { %373 = vmatpush.bf16.msra.mxu3 %v576_v14 }
  0x11   :  { %347 = vmatpush.bf16.msra.mxu1 %v560_v15 }
  0x12   :  { %335 = vmatpush.bf16.msra.mxu0 %v551_v16 }
  0x13   :  { %361 = vmatpush.bf16.msra.mxu2 %v567_v17 }
  0x14   :  { %374 = vmatpush.bf16.msra.mxu3 %v575_v18 }
  0x15   :  { %348 = vmatpush.bf16.msra.mxu1 %v559_v19 }
  0x16   :  { %336 = vmatpush.bf16.msra.mxu0 %v550_v20 }
  0x17   :  { %362 = vmatpush.bf16.msra.mxu2 %v566_v21 }
  0x18   :  { %375 = vmatpush.bf16.msra.mxu3 %v574_v22 }
  0x19   :  { %349 = vmatpush.bf16.msra.mxu1 %v558_v23 }
  0x1a   :  { %337 = vmatpush.bf16.msra.mxu0 %v549_v24 }
  0x1b   :  { %363 = vmatpush.bf16.msra.mxu2 %v565_v25 }
  0x1c   :  { %376 = vmatpush.bf16.msra.mxu3 %v573_v28 }
  0x1d   :  { %350 = vmatpush.bf16.msra.mxu1 %v557_v29 }
  0x1e   :  { %338 = vmatpush.bf16.msra.mxu0 %v548_v32 }
  0x1f   :  { %364 = vmatpush.bf16.msra.mxu2 %v564_v33 }
  0x20   :  { %377 = vmatpush.bf16.msra.mxu3 %v572_v36 }
  0x21   :  { %351 = vmatpush.bf16.msra.mxu1 %v556_v37  ;;  %339 = vmatmul.bf16.vlgmr.msra.gmra.mxu0 %v102_v39 }
  0x22   :  { %387 = vmatpush.bf16.msrb.mxu0 %v583_v38  ;;  %365 = vmatmul.bf16.vlgmr.msra.gmra.mxu2 %v104_v40 }
  0x23   :  { %378 = vmatmul.bf16.vlgmr.msra.gmra.mxu3 %v105_v41 }
  0x24   :  { %352 = vmatmul.bf16.vlgmr.msra.gmra.mxu1 %v103_v42 }
  0x26   :  { %388 = vmatpush.bf16.msrb.mxu0 %v582_v43 }
  0x2a   :  { %389 = vmatpush.bf16.msrb.mxu0 %v581_v44 }
  0x2e   :  { %390 = vmatpush.bf16.msrb.mxu0 %v580_v46 }
  0x31   :  { %547 = vmatmul.msk.bf16.vlgmr.msrb.gmra.mxu0 %vm327_vm0, %v106_v48 }
  0x9e   :  { %v340_v49 = vpop.f32.mrf.mxu0 }
  0x9f   :  { %v341_v52 = vadd.f32 %v584_v50, %v340_v49 }
  0xa1   :  { %v353_v51 = vpop.f32.mrf.mxu1 }
  0xa2   :  { %v354_v56 = vadd.f32 %v353_v51, %v341_v52 }
  0xa5   :  { %v366_v53 = vpop.f32.mrf.mxu2 }
  0xa6   :  { %v379_v54 = vpop.f32.mrf.mxu3  ;;  %v342_v55 = vpop.f32.mrf.mxu0  ;;  %v367_v58 = vadd.f32 %v366_v53, %v354_v56 }
  0xa8   :  { %v380_v60 = vadd.f32 %v379_v54, %v367_v58 }
  0xa9   :  { %v355_v57 = vpop.f32.mrf.mxu1 }
  0xad   :  { %v368_v59 = vpop.f32.mrf.mxu2 }
  0xae   :  { %v381_v61 = vpop.f32.mrf.mxu3  ;;  %v392_v62 = vpop.f32.mrf.mxu0 }
  0xaf   :  { %v393_v63 = vadd.f32 %v392_v62, %v380_v60 }
  0xb1   :  { %v396_v0 = vmax.f32 %v393_v63, 0.0 }
  0xb3   :  { %v397_v1 = vpack.c.bf16 %v396_v0, %v396_v0 }
  0xb5   :  { %398 = vst [vmem:[%s731_s3] sm:$0xf] %v397_v1 }
  0xb6   :  { %v394_v2 = vpop.f32.mrf.mxu0 }

// kernel: align_net_forward.19
= control target key start
LH: loop header
LB: loop body
LE: loop exit
PB: predicated region body
PF: predicated region fallthrough
CT: control target
= control target key end

     0   :  { %s2901_s1 = inlined_call_operand.vmem [shape: bf16[1152,256], index: 1, kind: input, shape index: {}]   ;;  %s2902_s0 = inlined_call_operand.vmem [shape: bf16[8,1152], index: 0, kind: input, shape index: {}]   ;;  %s2903_s2 = inlined_call_operand.vmem [shape: f32[1,256], index: 2, kind: input, shape index: {}]   ;;  %s2904_s3 = inlined_call_operand.vmem [shape: bf16[8,256], index: 3, kind: input, shape index: {}]   ;;  %s2905_s4 = inlined_call_operand.vmem [shape: bf16[8,256], index: 4, kind: output, shape index: {}]  }
   0x1   :  { %v1267_v0 = vld [vmem:[%s2901_s1 + $0x70] sm:$0xf]  ;;  %v1800_v1 = vld [vmem:[%s2901_s1 + $0x74] sm:$0xf0]  ;;  %v1259_v9 = vld [vmem:[%s2901_s1 + $0x60] sm:$0xf] }
   0x2   :  { %v1331_v2 = vld [vmem:[%s2901_s1 + $0xf0] sm:$0xf]  ;;  %v1268_v3 = vor.u32 %v1800_v1, %v1267_v0  ;;  %v1816_v4 = vld [vmem:[%s2901_s1 + $0xf4] sm:$0xf0]  ;;  %v1798_v10 = vld [vmem:[%s2901_s1 + $0x64] sm:$0xf0] }
   0x3   :  { %v1395_v5 = vld [vmem:[%s2901_s1 + $0x170] sm:$0xf]  ;;  %v1832_v6 = vld [vmem:[%s2901_s1 + $0x174] sm:$0xf0]  ;;  %v1332_v7 = vor.u32 %v1816_v4, %v1331_v2  ;;  %v1323_v11 = vld [vmem:[%s2901_s1 + $0xe0] sm:$0xf]  ;;  %v1260_v12 = vor.u32 %v1798_v10, %v1259_v9 }
   0x4   :  { %v1396_v8 = vor.u32 %v1832_v6, %v1395_v5  ;;  %924 = vmatpush.bf16.msra.mxu0 %v1268_v3  ;;  %v1814_v13 = vld [vmem:[%s2901_s1 + $0xe4] sm:$0xf0]  ;;  %v1459_v14 = vld [vmem:[%s2901_s1 + $0x1f0] sm:$0xf]  ;;  %v1848_v15 = vld [vmem:[%s2901_s1 + $0x1f4] sm:$0xf0] }
   0x5   :  { %937 = vmatpush.bf16.msra.mxu1 %v1332_v7  ;;  %v1324_v16 = vor.u32 %v1814_v13, %v1323_v11  ;;  %v1460_v17 = vor.u32 %v1848_v15, %v1459_v14  ;;  %v1387_v18 = vld [vmem:[%s2901_s1 + $0x160] sm:$0xf]  ;;  %v1830_v19 = vld [vmem:[%s2901_s1 + $0x164] sm:$0xf0]  ;;  %v1251_v20 = vld [vmem:[%s2901_s1 + $0x50] sm:$0xf] }
   0x6   :  { %950 = vmatpush.bf16.msra.mxu2 %v1396_v8  ;;  %v1388_v21 = vor.u32 %v1830_v19, %v1387_v18  ;;  %v1796_v22 = vld [vmem:[%s2901_s1 + $0x54] sm:$0xf0]  ;;  %v1315_v23 = vld [vmem:[%s2901_s1 + $0xd0] sm:$0xf]  ;;  %v1451_v25 = vld [vmem:[%s2901_s1 + $0x1e0] sm:$0xf] }
   0x7   :  { %v1812_v24 = vld [vmem:[%s2901_s1 + $0xd4] sm:$0xf0]  ;;  %963 = vmatpush.bf16.msra.mxu3 %v1460_v17  ;;  %v1846_v26 = vld [vmem:[%s2901_s1 + $0x1e4] sm:$0xf0]  ;;  %v1379_v27 = vld [vmem:[%s2901_s1 + $0x150] sm:$0xf]  ;;  %v1252_v28 = vor.u32 %v1796_v22, %v1251_v20 }
   0x8   :  { %925 = vmatpush.bf16.msra.mxu0 %v1260_v12  ;;  %v1452_v29 = vor.u32 %v1846_v26, %v1451_v25  ;;  %v1828_v30 = vld [vmem:[%s2901_s1 + $0x154] sm:$0xf0]  ;;  %v1243_v31 = vld [vmem:[%s2901_s1 + $0x40] sm:$0xf]  ;;  %v1794_v32 = vld [vmem:[%s2901_s1 + $0x44] sm:$0xf0]  ;;  %v1316_v33 = vor.u32 %v1812_v24, %v1315_v23 }
   0x9   :  { %938 = vmatpush.bf16.msra.mxu1 %v1324_v16  ;;  %v1380_v34 = vor.u32 %v1828_v30, %v1379_v27  ;;  %v1307_v35 = vld [vmem:[%s2901_s1 + $0xc0] sm:$0xf]  ;;  %v1810_v36 = vld [vmem:[%s2901_s1 + $0xc4] sm:$0xf0]  ;;  %v1443_v37 = vld [vmem:[%s2901_s1 + $0x1d0] sm:$0xf]  ;;  %v1244_v42 = vor.u32 %v1794_v32, %v1243_v31 }
   0xa   :  { %951 = vmatpush.bf16.msra.mxu2 %v1388_v21  ;;  %v1844_v38 = vld [vmem:[%s2901_s1 + $0x1d4] sm:$0xf0]  ;;  %v1371_v39 = vld [vmem:[%s2901_s1 + $0x140] sm:$0xf]  ;;  %v1826_v40 = vld [vmem:[%s2901_s1 + $0x144] sm:$0xf0]  ;;  %v1308_v45 = vor.u32 %v1810_v36, %v1307_v35 }
   0xb   :  { %964 = vmatpush.bf16.msra.mxu3 %v1452_v29  ;;  %v1444_v41 = vor.u32 %v1844_v38, %v1443_v37  ;;  %v1435_v43 = vld [vmem:[%s2901_s1 + $0x1c0] sm:$0xf]  ;;  %v1842_v44 = vld [vmem:[%s2901_s1 + $0x1c4] sm:$0xf0]  ;;  %v1372_v46 = vor.u32 %v1826_v40, %v1371_v39  ;;  %v1235_v47 = vld [vmem:[%s2901_s1 + $0x30] sm:$0xf] }
   0xc   :  { %926 = vmatpush.bf16.msra.mxu0 %v1252_v28  ;;  %v1792_v48 = vld [vmem:[%s2901_s1 + $0x34] sm:$0xf0]  ;;  %v1299_v49 = vld [vmem:[%s2901_s1 + $0xb0] sm:$0xf]  ;;  %v1436_v53 = vor.u32 %v1842_v44, %v1435_v43  ;;  %v1227_v59 = vld [vmem:[%s2901_s1 + $0x20] sm:$0xf] }
   0xd   :  { %939 = vmatpush.bf16.msra.mxu1 %v1316_v33  ;;  %v1808_v50 = vld [vmem:[%s2901_s1 + $0xb4] sm:$0xf0]  ;;  %v1363_v51 = vld [vmem:[%s2901_s1 + $0x130] sm:$0xf]  ;;  %v1236_v54 = vor.u32 %v1792_v48, %v1235_v47  ;;  %v1790_v60 = vld [vmem:[%s2901_s1 + $0x24] sm:$0xf0] }
   0xe   :  { %952 = vmatpush.bf16.msra.mxu2 %v1380_v34  ;;  %v1824_v52 = vld [vmem:[%s2901_s1 + $0x134] sm:$0xf0]  ;;  %v1427_v55 = vld [vmem:[%s2901_s1 + $0x1b0] sm:$0xf]  ;;  %v1300_v57 = vor.u32 %v1808_v50, %v1299_v49  ;;  %v1291_v61 = vld [vmem:[%s2901_s1 + $0xa0] sm:$0xf]  ;;  %v1228_v2 = vor.u32 %v1790_v60, %v1227_v59 }
   0xf   :  { %965 = vmatpush.bf16.msra.mxu3 %v1444_v41  ;;  %v1840_v56 = vld [vmem:[%s2901_s1 + $0x1b4] sm:$0xf0]  ;;  %v1364_v58 = vor.u32 %v1824_v52, %v1363_v51  ;;  %v1806_v62 = vld [vmem:[%s2901_s1 + $0xa4] sm:$0xf0]  ;;  %v1355_v63 = vld [vmem:[%s2901_s1 + $0x120] sm:$0xf] }
  0x10   :  { %927 = vmatpush.bf16.msra.mxu0 %v1244_v42  ;;  %v1822_v0 = vld [vmem:[%s2901_s1 + $0x124] sm:$0xf0]  ;;  %v1428_v1 = vor.u32 %v1840_v56, %v1427_v55  ;;  %v1419_v3 = vld [vmem:[%s2901_s1 + $0x1a0] sm:$0xf]  ;;  %v1292_v5 = vor.u32 %v1806_v62, %v1291_v61  ;;  %v1219_v7 = vld [vmem:[%s2901_s1 + $0x10] sm:$0xf] }
  0x11   :  { %940 = vmatpush.bf16.msra.mxu1 %v1308_v45  ;;  %v1838_v4 = vld [vmem:[%s2901_s1 + $0x1a4] sm:$0xf0]  ;;  %v1356_v6 = vor.u32 %v1822_v0, %v1355_v63  ;;  %v1788_v8 = vld [vmem:[%s2901_s1 + $0x14] sm:$0xf0]  ;;  %v1283_v9 = vld [vmem:[%s2901_s1 + $0x90] sm:$0xf] }
  0x12   :  { %953 = vmatpush.bf16.msra.mxu2 %v1372_v46  ;;  %v1804_v10 = vld [vmem:[%s2901_s1 + $0x94] sm:$0xf0]  ;;  %v1347_v11 = vld [vmem:[%s2901_s1 + $0x110] sm:$0xf]  ;;  %v1420_v13 = vor.u32 %v1838_v4, %v1419_v3  ;;  %v1211_v14 = vld [vmem:[%s2901_s1] sm:$0xf]  ;;  %v1220_v15 = vor.u32 %v1788_v8, %v1219_v7 }
  0x13   :  { %966 = vmatpush.bf16.msra.mxu3 %v1436_v53  ;;  %v1820_v12 = vld [vmem:[%s2901_s1 + $0x114] sm:$0xf0]  ;;  %v1786_v16 = vld [vmem:[%s2901_s1 + $0x4] sm:$0xf0]  ;;  %v1411_v17 = vld [vmem:[%s2901_s1 + $0x190] sm:$0xf]  ;;  %v1284_v19 = vor.u32 %v1804_v10, %v1283_v9 }
  0x14   :  { %928 = vmatpush.bf16.msra.mxu0 %v1236_v54  ;;  %v1836_v18 = vld [vmem:[%s2901_s1 + $0x194] sm:$0xf0]  ;;  %v1348_v20 = vor.u32 %v1820_v12, %v1347_v11  ;;  %v1275_v21 = vld [vmem:[%s2901_s1 + $0x80] sm:$0xf]  ;;  %v1802_v22 = vld [vmem:[%s2901_s1 + $0x84] sm:$0xf0]  ;;  %v1212_v31 = vor.u32 %v1786_v16, %v1211_v14 }
  0x15   :  { %941 = vmatpush.bf16.msra.mxu1 %v1300_v57  ;;  %v1523_v23 = vld [vmem:[%s2901_s1 + $0x270] sm:$0xf]  ;;  %v1864_v24 = vld [vmem:[%s2901_s1 + $0x274] sm:$0xf0]  ;;  %v1412_v27 = vor.u32 %v1836_v18, %v1411_v17  ;;  %v1339_v28 = vld [vmem:[%s2901_s1 + $0x100] sm:$0xf]  ;;  %v1276_v35 = vor.u32 %v1802_v22, %v1275_v21 }
  0x16   :  { %954 = vmatpush.bf16.msra.mxu2 %v1364_v58  ;;  %v1587_v25 = vld [vmem:[%s2901_s1 + $0x2f0] sm:$0xf]  ;;  %v1880_v26 = vld [vmem:[%s2901_s1 + $0x2f4] sm:$0xf0]  ;;  %v1818_v29 = vld [vmem:[%s2901_s1 + $0x104] sm:$0xf0]  ;;  %v1524_v36 = vor.u32 %v1864_v24, %v1523_v23 }
  0x17   :  { %967 = vmatpush.bf16.msra.mxu3 %v1428_v1  ;;  %v1651_v30 = vld [vmem:[%s2901_s1 + $0x370] sm:$0xf]  ;;  %v1896_v32 = vld [vmem:[%s2901_s1 + $0x374] sm:$0xf0]  ;;  %v1403_v33 = vld [vmem:[%s2901_s1 + $0x180] sm:$0xf]  ;;  %v1588_v39 = vor.u32 %v1880_v26, %v1587_v25  ;;  %v1340_v40 = vor.u32 %v1818_v29, %v1339_v28 }
  0x18   :  { %929 = vmatpush.bf16.msra.mxu0 %v1228_v2  ;;  %v1834_v34 = vld [vmem:[%s2901_s1 + $0x184] sm:$0xf0]  ;;  %v1715_v37 = vld [vmem:[%s2901_s1 + $0x3f0] sm:$0xf]  ;;  %v1912_v38 = vld [vmem:[%s2901_s1 + $0x3f4] sm:$0xf0]  ;;  %v1652_v43 = vor.u32 %v1896_v32, %v1651_v30 }
  0x19   :  { %942 = vmatpush.bf16.msra.mxu1 %v1292_v5  ;;  %v1515_v41 = vld [vmem:[%s2901_s1 + $0x260] sm:$0xf]  ;;  %v1862_v42 = vld [vmem:[%s2901_s1 + $0x264] sm:$0xf0]  ;;  %v1404_v44 = vor.u32 %v1834_v34, %v1403_v33  ;;  %v1716_v47 = vor.u32 %v1912_v38, %v1715_v37  ;;  %v1507_v54 = vld [vmem:[%s2901_s1 + $0x250] sm:$0xf] }
  0x1a   :  { %955 = vmatpush.bf16.msra.mxu2 %v1356_v6  ;;  %v1579_v45 = vld [vmem:[%s2901_s1 + $0x2e0] sm:$0xf]  ;;  %v1878_v46 = vld [vmem:[%s2901_s1 + $0x2e4] sm:$0xf0]  ;;  %v1516_v50 = vor.u32 %v1862_v42, %v1515_v41  ;;  %v1860_v55 = vld [vmem:[%s2901_s1 + $0x254] sm:$0xf0] }
  0x1b   :  { %968 = vmatpush.bf16.msra.mxu3 %v1420_v13  ;;  %v1643_v48 = vld [vmem:[%s2901_s1 + $0x360] sm:$0xf]  ;;  %v1894_v49 = vld [vmem:[%s2901_s1 + $0x364] sm:$0xf0]  ;;  %v1580_v53 = vor.u32 %v1878_v46, %v1579_v45  ;;  %v1571_v58 = vld [vmem:[%s2901_s1 + $0x2d0] sm:$0xf]  ;;  %v1508_v2 = vor.u32 %v1860_v55, %v1507_v54 }
  0x1c   :  { %930 = vmatpush.bf16.msra.mxu0 %v1220_v15  ;;  %v1707_v51 = vld [vmem:[%s2901_s1 + $0x3e0] sm:$0xf]  ;;  %v1910_v52 = vld [vmem:[%s2901_s1 + $0x3e4] sm:$0xf0]  ;;  %v1644_v57 = vor.u32 %v1894_v49, %v1643_v48  ;;  %v1876_v59 = vld [vmem:[%s2901_s1 + $0x2d4] sm:$0xf0] }
  0x1d   :  { %943 = vmatpush.bf16.msra.mxu1 %v1284_v19  ;;  %v18_v56 = vld [vmem:[%s2902_s0 + $0x8] sm:$0xff]  ;;  %v1708_v62 = vor.u32 %v1910_v52, %v1707_v51  ;;  %v1635_v63 = vld [vmem:[%s2901_s1 + $0x350] sm:$0xf]  ;;  %v1892_v0 = vld [vmem:[%s2901_s1 + $0x354] sm:$0xf0]  ;;  %v1572_v8 = vor.u32 %v1876_v59, %v1571_v58 }
  0x1e   :  { %956 = vmatpush.bf16.msra.mxu2 %v1348_v20  ;;  %v179_v60 = vunpack.c.l.b16 %v18_v56  ;;  %v180_v61 = vunpack.c.h.b16 %v18_v56  ;;  %v17_v1 = vld [vmem:[%s2902_s0] sm:$0xff]  ;;  %v1699_v3 = vld [vmem:[%s2901_s1 + $0x3d0] sm:$0xf]  ;;  %v1908_v4 = vld [vmem:[%s2901_s1 + $0x3d4] sm:$0xf0]  ;;  %v1636_v12 = vor.u32 %v1892_v0, %v1635_v63 }
  0x1f   :  { %969 = vmatpush.bf16.msra.mxu3 %v1412_v27  ;;  %v177_v6 = vunpack.c.l.b16 %v17_v1  ;;  %v1499_v9 = vld [vmem:[%s2901_s1 + $0x240] sm:$0xf]  ;;  %v1858_v10 = vld [vmem:[%s2901_s1 + $0x244] sm:$0xf0]  ;;  %v178_v11 = vunpack.c.h.b16 %v17_v1  ;;  %v1700_v16 = vor.u32 %v1908_v4, %v1699_v3  ;;  %v1491_v24 = vld [vmem:[%s2901_s1 + $0x230] sm:$0xf] }
  0x20   :  { %931 = vmatpush.bf16.msra.mxu0 %v1212_v31  ;;  %v2232_v5 = vpack.c.b16 %v179_v60, %v179_v60  ;;  %v2234_v7 = vpack.c.b16 %v180_v61, %v180_v61  ;;  %v1563_v13 = vld [vmem:[%s2901_s1 + $0x2c0] sm:$0xf]  ;;  %v1874_v14 = vld [vmem:[%s2901_s1 + $0x2c4] sm:$0xf0]  ;;  %v1500_v20 = vor.u32 %v1858_v10, %v1499_v9  ;;  %v1856_v25 = vld [vmem:[%s2901_s1 + $0x234] sm:$0xf0] }
  0x21   :  { %944 = vmatpush.bf16.msra.mxu1 %v1276_v35  ;;  %v2248_v15 = vpack.c.b16 %v177_v6, %v177_v6  ;;  %v1627_v17 = vld [vmem:[%s2901_s1 + $0x340] sm:$0xf]  ;;  %v1890_v18 = vld [vmem:[%s2901_s1 + $0x344] sm:$0xf0]  ;;  %v2258_v19 = vpack.c.b16 %v178_v11, %v178_v11  ;;  %v1564_v23 = vor.u32 %v1874_v14, %v1563_v13  ;;  %v1555_v27 = vld [vmem:[%s2901_s1 + $0x2b0] sm:$0xf]  ;;  %v1492_v32 = vor.u32 %v1856_v25, %v1491_v24 }
  0x22   :  { %957 = vmatpush.bf16.msra.mxu2 %v1340_v40  ;;  %v1691_v21 = vld [vmem:[%s2901_s1 + $0x3c0] sm:$0xf]  ;;  %v1906_v22 = vld [vmem:[%s2901_s1 + $0x3c4] sm:$0xf0]  ;;  %v1628_v26 = vor.u32 %v1890_v18, %v1627_v17  ;;  %v1872_v28 = vld [vmem:[%s2901_s1 + $0x2b4] sm:$0xf0] }
  0x23   :  { %970 = vmatpush.bf16.msra.mxu3 %v1404_v44  ;;  %932 = vmatmul.bf16.vlgmr.msra.gmra.mxu0 %v2248_v15  ;;  %v1692_v29 = vor.u32 %v1906_v22, %v1691_v21  ;;  %v1619_v30 = vld [vmem:[%s2901_s1 + $0x330] sm:$0xf]  ;;  %v1888_v31 = vld [vmem:[%s2901_s1 + $0x334] sm:$0xf0]  ;;  %v1556_v35 = vor.u32 %v1872_v28, %v1555_v27  ;;  %v1854_v37 = vld [vmem:[%s2901_s1 + $0x224] sm:$0xf0] }
  0x24   :  { %976 = vmatpush.bf16.msrb.mxu0 %v1524_v36  ;;  %945 = vmatmul.bf16.vlgmr.msra.gmra.mxu1 %v2258_v19  ;;  %v1683_v33 = vld [vmem:[%s2901_s1 + $0x3b0] sm:$0xf]  ;;  %v1904_v34 = vld [vmem:[%s2901_s1 + $0x3b4] sm:$0xf0]  ;;  %v1483_v36 = vld [vmem:[%s2901_s1 + $0x220] sm:$0xf]  ;;  %v1620_v38 = vor.u32 %v1888_v31, %v1619_v30 }
  0x25   :  { %989 = vmatpush.bf16.msrb.mxu1 %v1588_v39  ;;  %958 = vmatmul.bf16.vlgmr.msra.gmra.mxu2 %v2232_v5  ;;  %v1547_v39 = vld [vmem:[%s2901_s1 + $0x2a0] sm:$0xf]  ;;  %v1870_v40 = vld [vmem:[%s2901_s1 + $0x2a4] sm:$0xf0]  ;;  %v1684_v41 = vor.u32 %v1904_v34, %v1683_v33  ;;  %v1484_v44 = vor.u32 %v1854_v37, %v1483_v36  ;;  %v1475_v48 = vld [vmem:[%s2901_s1 + $0x210] sm:$0xf] }
  0x26   :  { %1002 = vmatpush.bf16.msrb.mxu2 %v1652_v43  ;;  %971 = vmatmul.bf16.vlgmr.msra.gmra.mxu3 %v2234_v7  ;;  %v1611_v42 = vld [vmem:[%s2901_s1 + $0x320] sm:$0xf]  ;;  %v1886_v43 = vld [vmem:[%s2901_s1 + $0x324] sm:$0xf0]  ;;  %v1852_v49 = vld [vmem:[%s2901_s1 + $0x214] sm:$0xf0] }
  0x27   :  { %1015 = vmatpush.bf16.msrb.mxu3 %v1716_v47  ;;  %v1675_v45 = vld [vmem:[%s2901_s1 + $0x3a0] sm:$0xf]  ;;  %v1902_v46 = vld [vmem:[%s2901_s1 + $0x3a4] sm:$0xf0]  ;;  %v1548_v47 = vor.u32 %v1870_v40, %v1547_v39  ;;  %v1539_v51 = vld [vmem:[%s2901_s1 + $0x290] sm:$0xf]  ;;  %v1476_v58 = vor.u32 %v1852_v49, %v1475_v48 }
  0x28   :  { %977 = vmatpush.bf16.msrb.mxu0 %v1516_v50  ;;  %v1612_v50 = vor.u32 %v1886_v43, %v1611_v42  ;;  %v1868_v52 = vld [vmem:[%s2901_s1 + $0x294] sm:$0xf0]  ;;  %v1676_v54 = vor.u32 %v1902_v46, %v1675_v45  ;;  %v1467_v56 = vld [vmem:[%s2901_s1 + $0x200] sm:$0xf]  ;;  %v1866_v60 = vld [vmem:[%s2901_s1 + $0x284] sm:$0xf0] }
  0x29   :  { %990 = vmatpush.bf16.msrb.mxu1 %v1580_v53  ;;  %v1603_v53 = vld [vmem:[%s2901_s1 + $0x310] sm:$0xf]  ;;  %v1884_v55 = vld [vmem:[%s2901_s1 + $0x314] sm:$0xf0]  ;;  %v1531_v59 = vld [vmem:[%s2901_s1 + $0x280] sm:$0xf]  ;;  %v1540_v63 = vor.u32 %v1868_v52, %v1539_v51 }
  0x2a   :  { %1003 = vmatpush.bf16.msrb.mxu2 %v1644_v57  ;;  %v1850_v57 = vld [vmem:[%s2901_s1 + $0x204] sm:$0xf0]  ;;  %v1667_v61 = vld [vmem:[%s2901_s1 + $0x390] sm:$0xf]  ;;  %v1928_v1 = vld [vmem:[%s2901_s1 + $0x474] sm:$0xf0]  ;;  %v1604_v3 = vor.u32 %v1884_v55, %v1603_v53 }
  0x2b   :  { %1016 = vmatpush.bf16.msrb.mxu3 %v1708_v62  ;;  %v1900_v62 = vld [vmem:[%s2901_s1 + $0x394] sm:$0xf0]  ;;  %v1779_v0 = vld [vmem:[%s2901_s1 + $0x470] sm:$0xf]  ;;  %v1799_v4 = vld [vmem:[%s2901_s1 + $0x74] sm:$0xf]  ;;  %v1468_v13 = vor.u32 %v1850_v57, %v1467_v56 }
  0x2c   :  { %978 = vmatpush.bf16.msrb.mxu0 %v1508_v2  ;;  %v19_v2 = vld [vmem:[%s2902_s0 + $0x10] sm:$0xff]  ;;  %v1269_v6 = vld [vmem:[%s2901_s1 + $0x78] sm:$0xf0]  ;;  %v1668_v9 = vor.u32 %v1900_v62, %v1667_v61  ;;  %v1595_v10 = vld [vmem:[%s2901_s1 + $0x300] sm:$0xf]  ;;  %v1780_v21 = vor.u32 %v1928_v1, %v1779_v0 }
  0x2d   :  { %991 = vmatpush.bf16.msrb.mxu1 %v1572_v8  ;;  %v20_v8 = vld [vmem:[%s2902_s0 + $0x18] sm:$0xff]  ;;  %v1882_v11 = vld [vmem:[%s2901_s1 + $0x304] sm:$0xf0]  ;;  %v181_v18 = vunpack.c.l.b16 %v19_v2  ;;  %v1831_v22 = vld [vmem:[%s2901_s1 + $0x174] sm:$0xf]  ;;  %v1272_v25 = vor.u32 %v1799_v4, %v1269_v6  ;;  %v182_v34 = vunpack.c.h.b16 %v19_v2 }
  0x2e   :  { %1004 = vmatpush.bf16.msrb.mxu2 %v1636_v12  ;;  %v1815_v12 = vld [vmem:[%s2901_s1 + $0xf4] sm:$0xf]  ;;  %v1333_v14 = vld [vmem:[%s2901_s1 + $0xf8] sm:$0xf0]  ;;  %v1898_v17 = vld [vmem:[%s2901_s1 + $0x384] sm:$0xf0]  ;;  %v183_v24 = vunpack.c.l.b16 %v20_v8 }
  0x2f   :  { %1017 = vmatpush.bf16.msrb.mxu3 %v1700_v16  ;;  %v1659_v16 = vld [vmem:[%s2901_s1 + $0x380] sm:$0xf]  ;;  %v1926_v28 = vld [vmem:[%s2901_s1 + $0x464] sm:$0xf0]  ;;  %v1336_v30 = vor.u32 %v1815_v12, %v1333_v14  ;;  %v1261_v33 = vld [vmem:[%s2901_s1 + $0x68] sm:$0xf0] }
  0x30   :  { %979 = vmatpush.bf16.msrb.mxu0 %v1500_v20  ;;  %v1532_v20 = vor.u32 %v1866_v60, %v1531_v59  ;;  %v1771_v27 = vld [vmem:[%s2901_s1 + $0x460] sm:$0xf]  ;;  %v1660_v31 = vor.u32 %v1898_v17, %v1659_v16  ;;  %v1813_v36 = vld [vmem:[%s2901_s1 + $0xe4] sm:$0xf]  ;;  %v1325_v37 = vld [vmem:[%s2901_s1 + $0xe8] sm:$0xf0]  ;;  %v2414_v40 = vpack.c.b16 %v183_v24, %v183_v24 }
  0x31   :  { %992 = vmatpush.bf16.msrb.mxu1 %v1564_v23  ;;  %v1397_v23 = vld [vmem:[%s2901_s1 + $0x178] sm:$0xf0]  ;;  %v1772_v39 = vor.u32 %v1926_v28, %v1771_v27  ;;  %v1389_v42 = vld [vmem:[%s2901_s1 + $0x168] sm:$0xf0]  ;;  %v1763_v45 = vld [vmem:[%s2901_s1 + $0x450] sm:$0xf] }
  0x32   :  { %1005 = vmatpush.bf16.msrb.mxu2 %v1628_v26  ;;  %v1596_v26 = vor.u32 %v1882_v11, %v1595_v10  ;;  %v1924_v46 = vld [vmem:[%s2901_s1 + $0x454] sm:$0xf0]  ;;  %v1795_v48 = vld [vmem:[%s2901_s1 + $0x54] sm:$0xf]  ;;  %v1253_v49 = vld [vmem:[%s2901_s1 + $0x58] sm:$0xf0] }
  0x33   :  { %1018 = vmatpush.bf16.msrb.mxu3 %v1692_v29  ;;  %v184_v29 = vunpack.c.h.b16 %v20_v8  ;;  %v1811_v52 = vld [vmem:[%s2901_s1 + $0xd4] sm:$0xf]  ;;  %v1317_v53 = vld [vmem:[%s2901_s1 + $0xd8] sm:$0xf0]  ;;  %v1256_v57 = vor.u32 %v1795_v48, %v1253_v49  ;;  %v1922_v59 = vld [vmem:[%s2901_s1 + $0x444] sm:$0xf0] }
  0x34   :  { %980 = vmatpush.bf16.msrb.mxu0 %v1492_v32  ;;  %v1797_v32 = vld [vmem:[%s2901_s1 + $0x64] sm:$0xf]  ;;  %v1827_v55 = vld [vmem:[%s2901_s1 + $0x154] sm:$0xf]  ;;  %v1381_v56 = vld [vmem:[%s2901_s1 + $0x158] sm:$0xf0]  ;;  %v1320_v60 = vor.u32 %v1811_v52, %v1317_v53 }
  0x35   :  { %993 = vmatpush.bf16.msrb.mxu1 %v1556_v35  ;;  %v1400_v35 = vor.u32 %v1831_v22, %v1397_v23  ;;  %v1264_v43 = vor.u32 %v1797_v32, %v1261_v33  ;;  %v1793_v61 = vld [vmem:[%s2901_s1 + $0x44] sm:$0xf]  ;;  %v1245_v62 = vld [vmem:[%s2901_s1 + $0x48] sm:$0xf0]  ;;  %v1747_v8 = vld [vmem:[%s2901_s1 + $0x430] sm:$0xf] }
  0x36   :  { %1006 = vmatpush.bf16.msrb.mxu2 %v1620_v38  ;;  %v2412_v38 = vpack.c.b16 %v181_v18, %v181_v18  ;;  %v1809_v0 = vld [vmem:[%s2901_s1 + $0xc4] sm:$0xf]  ;;  %v1309_v1 = vld [vmem:[%s2901_s1 + $0xc8] sm:$0xf0]  ;;  %v1248_v6 = vor.u32 %v1793_v61, %v1245_v62  ;;  %v1791_v11 = vld [vmem:[%s2901_s1 + $0x34] sm:$0xf] }
  0x37   :  { %1019 = vmatpush.bf16.msrb.mxu3 %v1684_v41  ;;  %v1829_v41 = vld [vmem:[%s2901_s1 + $0x164] sm:$0xf]  ;;  %v1373_v4 = vld [vmem:[%s2901_s1 + $0x148] sm:$0xf0]  ;;  %v1312_v10 = vor.u32 %v1809_v0, %v1309_v1  ;;  %v1237_v12 = vld [vmem:[%s2901_s1 + $0x38] sm:$0xf0] }
  0x38   :  { %981 = vmatpush.bf16.msrb.mxu0 %v1484_v44  ;;  %v2422_v44 = vpack.c.b16 %v184_v29, %v184_v29  ;;  %v1392_v51 = vor.u32 %v1829_v41, %v1389_v42  ;;  %v1807_v14 = vld [vmem:[%s2901_s1 + $0xb4] sm:$0xf]  ;;  %v1301_v16 = vld [vmem:[%s2901_s1 + $0xb8] sm:$0xf0]  ;;  %v1739_v22 = vld [vmem:[%s2901_s1 + $0x420] sm:$0xf] }
  0x39   :  { %994 = vmatpush.bf16.msrb.mxu1 %v1548_v47  ;;  %v1328_v47 = vor.u32 %v1813_v36, %v1325_v37  ;;  %v1823_v18 = vld [vmem:[%s2901_s1 + $0x134] sm:$0xf]  ;;  %v1918_v23 = vld [vmem:[%s2901_s1 + $0x424] sm:$0xf0]  ;;  %v1304_v24 = vor.u32 %v1807_v14, %v1301_v16  ;;  %v1805_v28 = vld [vmem:[%s2901_s1 + $0xa4] sm:$0xf] }
  0x3a   :  { %1007 = vmatpush.bf16.msrb.mxu2 %v1612_v50  ;;  %v2436_v50 = vpack.c.b16 %v182_v34, %v182_v34  ;;  %v1293_v29 = vld [vmem:[%s2901_s1 + $0xa8] sm:$0xf0]  ;;  %v1731_v34 = vld [vmem:[%s2901_s1 + $0x410] sm:$0xf]  ;;  %v1787_v37 = vld [vmem:[%s2901_s1 + $0x14] sm:$0xf] }
  0x3b   :  { %1020 = vmatpush.bf16.msrb.mxu3 %v1676_v54  ;;  %v1764_v54 = vor.u32 %v1924_v46, %v1763_v45  ;;  %v1357_v32 = vld [vmem:[%s2901_s1 + $0x128] sm:$0xf0]  ;;  %v1296_v36 = vor.u32 %v1805_v28, %v1293_v29  ;;  %v1803_v42 = vld [vmem:[%s2901_s1 + $0x94] sm:$0xf]  ;;  %v1723_v45 = vld [vmem:[%s2901_s1 + $0x400] sm:$0xf] }
  0x3c   :  { %982 = vmatpush.bf16.msrb.mxu0 %v1476_v58  ;;  %v1755_v58 = vld [vmem:[%s2901_s1 + $0x440] sm:$0xf]  ;;  %v1349_v48 = vld [vmem:[%s2901_s1 + $0x118] sm:$0xf0]  ;;  %v1914_v52 = vld [vmem:[%s2901_s1 + $0x404] sm:$0xf0] }
  0x3d   :  { %995 = vmatpush.bf16.msrb.mxu1 %v1540_v63  ;;  %v1384_v63 = vor.u32 %v1827_v55, %v1381_v56  ;;  %v1756_v2 = vor.u32 %v1922_v59, %v1755_v58  ;;  %v21_v49 = vld [vmem:[%s2902_s0 + $0x20] sm:$0xf]  ;;  %v1785_v53 = vld [vmem:[%s2901_s1 + $0x4] sm:$0xf]  ;;  %v1847_v56 = vld [vmem:[%s2901_s1 + $0x1f4] sm:$0xf]  ;;  %v1724_v0 = vor.u32 %v1914_v52, %v1723_v45 }
  0x3e   :  { %1008 = vmatpush.bf16.msrb.mxu2 %v1604_v3  ;;  %v1825_v3 = vld [vmem:[%s2901_s1 + $0x144] sm:$0xf]  ;;  %v1863_v58 = vld [vmem:[%s2901_s1 + $0x274] sm:$0xf]  ;;  %v185_v61 = vunpack.c.l.b16 %v21_v49  ;;  %v1653_v14 = vld [vmem:[%s2901_s1 + $0x378] sm:$0xf0] }
  0x3f   :  { %1021 = vmatpush.bf16.msrb.mxu3 %v1668_v9  ;;  %v1920_v9 = vld [vmem:[%s2901_s1 + $0x434] sm:$0xf0]  ;;  %v1801_v62 = vld [vmem:[%s2901_s1 + $0x84] sm:$0xf]  ;;  %v1879_v1 = vld [vmem:[%s2901_s1 + $0x2f4] sm:$0xf] }
  0x40   :  { %983 = vmatpush.bf16.msrb.mxu0 %v1468_v13  ;;  %v1376_v13 = vor.u32 %v1825_v3, %v1373_v4  ;;  %v1748_v17 = vor.u32 %v1920_v9, %v1747_v8  ;;  %v1341_v8 = vld [vmem:[%s2901_s1 + $0x108] sm:$0xf0]  ;;  %v1845_v9 = vld [vmem:[%s2901_s1 + $0x1e4] sm:$0xf]  ;;  %v2607_v16 = vpack.c.b16 %v185_v61, %v185_v61  ;;  %v1445_v28 = vld [vmem:[%s2901_s1 + $0x1d8] sm:$0xf0] }
  0x41   :  { %996 = vmatpush.bf16.msrb.mxu1 %v1532_v20  ;;  %v1365_v20 = vld [vmem:[%s2901_s1 + $0x138] sm:$0xf0]  ;;  %v1893_v29 = vld [vmem:[%s2901_s1 + $0x364] sm:$0xf]  ;;  %v1839_v52 = vld [vmem:[%s2901_s1 + $0x1b4] sm:$0xf] }
  0x42   :  { %1009 = vmatpush.bf16.msrb.mxu2 %v1596_v26  ;;  %v1229_v26 = vld [vmem:[%s2901_s1 + $0x28] sm:$0xf0]  ;;  %v1368_v27 = vor.u32 %v1823_v18, %v1365_v20  ;;  %v1861_v18 = vld [vmem:[%s2901_s1 + $0x264] sm:$0xf] }
  0x43   :  { %1022 = vmatpush.bf16.msrb.mxu3 %v1660_v31  ;;  %984 = vmatmul.bf16.vlgmr.msrb.gmra.mxu0 %v2412_v38  ;;  %v1821_v31 = vld [vmem:[%s2901_s1 + $0x124] sm:$0xf]  ;;  %v1517_v20 = vld [vmem:[%s2901_s1 + $0x268] sm:$0xf0] }
  0x44   :  { %1028 = vmatpush.bf16.msra.mxu0 %v1780_v21  ;;  %997 = vmatmul.bf16.vlgmr.msrb.gmra.mxu1 %v2436_v50  ;;  %v1240_v21 = vor.u32 %v1791_v11, %v1237_v12  ;;  %v1360_v41 = vor.u32 %v1821_v31, %v1357_v32  ;;  %v1453_v12 = vld [vmem:[%s2901_s1 + $0x1e8] sm:$0xf0]  ;;  %v1859_v32 = vld [vmem:[%s2901_s1 + $0x254] sm:$0xf] }
  0x45   :  { %1041 = vmatpush.bf16.msra.mxu1 %v1272_v25  ;;  %1010 = vmatmul.bf16.vlgmr.msrb.gmra.mxu2 %v2414_v40  ;;  %v1789_v25 = vld [vmem:[%s2901_s1 + $0x24] sm:$0xf] }
  0x46   :  { %1054 = vmatpush.bf16.msra.mxu2 %v1336_v30  ;;  %1023 = vmatmul.bf16.vlgmr.msrb.gmra.mxu3 %v2422_v44  ;;  %v1740_v30 = vor.u32 %v1918_v23, %v1739_v22  ;;  %v1232_v33 = vor.u32 %v1789_v25, %v1229_v26  ;;  %v1877_v22 = vld [vmem:[%s2901_s1 + $0x2e4] sm:$0xf]  ;;  %v1581_v23 = vld [vmem:[%s2901_s1 + $0x2e8] sm:$0xf0]  ;;  %v1843_v26 = vld [vmem:[%s2901_s1 + $0x1d4] sm:$0xf] }
  0x47   :  { %1067 = vmatpush.bf16.msra.mxu3 %v1400_v35  ;;  %v1916_v35 = vld [vmem:[%s2901_s1 + $0x414] sm:$0xf0]  ;;  %v1584_v31 = vor.u32 %v1877_v22, %v1581_v23  ;;  %v1851_v22 = vld [vmem:[%s2901_s1 + $0x214] sm:$0xf]  ;;  %v1477_v23 = vld [vmem:[%s2901_s1 + $0x218] sm:$0xf0] }
  0x48   :  { %1029 = vmatpush.bf16.msra.mxu0 %v1772_v39  ;;  %v1221_v39 = vld [vmem:[%s2901_s1 + $0x18] sm:$0xf0]  ;;  %v1732_v46 = vor.u32 %v1916_v35, %v1731_v34  ;;  %v1875_v34 = vld [vmem:[%s2901_s1 + $0x2d4] sm:$0xf] }
  0x49   :  { %1042 = vmatpush.bf16.msra.mxu1 %v1264_v43  ;;  %v1285_v43 = vld [vmem:[%s2901_s1 + $0x98] sm:$0xf0] }
  0x4a   :  { %1055 = vmatpush.bf16.msra.mxu2 %v1328_v47  ;;  %v1819_v47 = vld [vmem:[%s2901_s1 + $0x114] sm:$0xf]  ;;  %v1288_v55 = vor.u32 %v1803_v42, %v1285_v43  ;;  %v1573_v35 = vld [vmem:[%s2901_s1 + $0x2d8] sm:$0xf0]  ;;  %v1437_v42 = vld [vmem:[%s2901_s1 + $0x1c8] sm:$0xf0] }
  0x4b   :  { %1068 = vmatpush.bf16.msra.mxu3 %v1392_v51  ;;  %v1224_v51 = vor.u32 %v1787_v37, %v1221_v39  ;;  %v1352_v59 = vor.u32 %v1819_v47, %v1349_v48  ;;  %v1841_v39 = vld [vmem:[%s2901_s1 + $0x1c4] sm:$0xf]  ;;  %v1891_v43 = vld [vmem:[%s2901_s1 + $0x354] sm:$0xf]  ;;  %v1576_v45 = vor.u32 %v1875_v34, %v1573_v35  ;;  %v1501_v47 = vld [vmem:[%s2901_s1 + $0x248] sm:$0xf0] }
  0x4c   :  { %1030 = vmatpush.bf16.msra.mxu0 %v1764_v54  ;;  %v1213_v54 = vld [vmem:[%s2901_s1 + $0x8] sm:$0xf0]  ;;  %v1873_v48 = vld [vmem:[%s2901_s1 + $0x2c4] sm:$0xf]  ;;  %v1440_v49 = vor.u32 %v1841_v39, %v1437_v42  ;;  %v1605_v34 = vld [vmem:[%s2901_s1 + $0x318] sm:$0xf0] }
  0x4d   :  { %1043 = vmatpush.bf16.msra.mxu1 %v1256_v57  ;;  %v1461_v57 = vld [vmem:[%s2901_s1 + $0x1f8] sm:$0xf0]  ;;  %v1216_v3 = vor.u32 %v1785_v53, %v1213_v54  ;;  %v1889_v54 = vld [vmem:[%s2901_s1 + $0x344] sm:$0xf]  ;;  %v1927_v39 = vld [vmem:[%s2901_s1 + $0x474] sm:$0xf] }
  0x4e   :  { %1056 = vmatpush.bf16.msra.mxu2 %v1320_v60  ;;  %v1525_v60 = vld [vmem:[%s2901_s1 + $0x278] sm:$0xf0]  ;;  %v1464_v4 = vor.u32 %v1847_v56, %v1461_v57  ;;  %v1855_v57 = vld [vmem:[%s2901_s1 + $0x234] sm:$0xf]  ;;  %v1865_v42 = vld [vmem:[%s2901_s1 + $0x284] sm:$0xf] }
  0x4f   :  { %1069 = vmatpush.bf16.msra.mxu3 %v1384_v63  ;;  %v1277_v63 = vld [vmem:[%s2901_s1 + $0x88] sm:$0xf0] }
  0x50   :  { %1031 = vmatpush.bf16.msra.mxu0 %v1756_v2  ;;  %v1589_v2 = vld [vmem:[%s2901_s1 + $0x2f8] sm:$0xf0]  ;;  %v1280_v11 = vor.u32 %v1801_v62, %v1277_v63  ;;  %v1837_v63 = vld [vmem:[%s2901_s1 + $0x1a4] sm:$0xf] }
  0x51   :  { %1044 = vmatpush.bf16.msra.mxu1 %v1248_v6  ;;  %v1817_v6 = vld [vmem:[%s2901_s1 + $0x104] sm:$0xf] }
  0x52   :  { %1057 = vmatpush.bf16.msra.mxu2 %v1312_v10  ;;  %v1528_v10 = vor.u32 %v1863_v58, %v1525_v60  ;;  %v1493_v58 = vld [vmem:[%s2901_s1 + $0x238] sm:$0xf0] }
  0x53   :  { %1070 = vmatpush.bf16.msra.mxu3 %v1376_v13  ;;  %v1895_v13 = vld [vmem:[%s2901_s1 + $0x374] sm:$0xf]  ;;  %v1557_v60 = vld [vmem:[%s2901_s1 + $0x2b8] sm:$0xf0] }
  0x54   :  { %1032 = vmatpush.bf16.msra.mxu0 %v1748_v17  ;;  %v1592_v17 = vor.u32 %v1879_v1, %v1589_v2  ;;  %v1656_v25 = vor.u32 %v1895_v13, %v1653_v14  ;;  %v1421_v1 = vld [vmem:[%s2901_s1 + $0x1a8] sm:$0xf0]  ;;  %v1887_v2 = vld [vmem:[%s2901_s1 + $0x334] sm:$0xf] }
  0x55   :  { %1045 = vmatpush.bf16.msra.mxu1 %v1240_v21  ;;  %v1344_v21 = vor.u32 %v1817_v6, %v1341_v8  ;;  %v1853_v6 = vld [vmem:[%s2901_s1 + $0x224] sm:$0xf]  ;;  %v1485_v8 = vld [vmem:[%s2901_s1 + $0x228] sm:$0xf0]  ;;  %v1835_v13 = vld [vmem:[%s2901_s1 + $0x194] sm:$0xf] }
  0x56   :  { %1058 = vmatpush.bf16.msra.mxu2 %v1304_v24  ;;  %v1456_v24 = vor.u32 %v1845_v9, %v1453_v12  ;;  %v1869_v9 = vld [vmem:[%s2901_s1 + $0x2a4] sm:$0xf]  ;;  %v1488_v14 = vor.u32 %v1853_v6, %v1485_v8  ;;  %v1749_v6 = vld [vmem:[%s2901_s1 + $0x438] sm:$0xf0] }
  0x57   :  { %1071 = vmatpush.bf16.msra.mxu3 %v1368_v27  ;;  %v1520_v27 = vor.u32 %v1861_v18, %v1517_v20  ;;  %v1885_v18 = vld [vmem:[%s2901_s1 + $0x324] sm:$0xf]  ;;  %v1613_v20 = vld [vmem:[%s2901_s1 + $0x328] sm:$0xf0] }
  0x58   :  { %1033 = vmatpush.bf16.msra.mxu0 %v1740_v30  ;;  %v1645_v30 = vld [vmem:[%s2901_s1 + $0x368] sm:$0xf0] }
  0x59   :  { %1046 = vmatpush.bf16.msra.mxu1 %v1232_v33  ;;  %v1509_v33 = vld [vmem:[%s2901_s1 + $0x258] sm:$0xf0]  ;;  %v1648_v37 = vor.u32 %v1893_v29, %v1645_v30  ;;  %v1405_v29 = vld [vmem:[%s2901_s1 + $0x188] sm:$0xf0]  ;;  %v1849_v30 = vld [vmem:[%s2901_s1 + $0x204] sm:$0xf] }
  0x5a   :  { %1059 = vmatpush.bf16.msra.mxu2 %v1296_v36  ;;  %v1448_v36 = vor.u32 %v1843_v26, %v1445_v28  ;;  %v1833_v28 = vld [vmem:[%s2901_s1 + $0x184] sm:$0xf] }
  0x5b   :  { %1072 = vmatpush.bf16.msra.mxu3 %v1360_v41  ;;  %v1512_v41 = vor.u32 %v1859_v32, %v1509_v33  ;;  %v1469_v32 = vld [vmem:[%s2901_s1 + $0x208] sm:$0xf0]  ;;  %v1883_v33 = vld [vmem:[%s2901_s1 + $0x314] sm:$0xf] }
  0x5c   :  { %1034 = vmatpush.bf16.msra.mxu0 %v1732_v46  ;;  %v1857_v46 = vld [vmem:[%s2901_s1 + $0x244] sm:$0xf] }
  0x5d   :  { %1047 = vmatpush.bf16.msra.mxu1 %v1224_v51  ;;  %v1504_v53 = vor.u32 %v1857_v46, %v1501_v47  ;;  %v1472_v46 = vor.u32 %v1849_v30, %v1469_v32 }
  0x5e   :  { %1060 = vmatpush.bf16.msra.mxu2 %v1288_v55  ;;  %v1629_v55 = vld [vmem:[%s2901_s1 + $0x348] sm:$0xf0] }
  0x5f   :  { %1073 = vmatpush.bf16.msra.mxu3 %v1352_v59  ;;  %v1871_v59 = vld [vmem:[%s2901_s1 + $0x2b4] sm:$0xf]  ;;  %v1632_v62 = vor.u32 %v1889_v54, %v1629_v55  ;;  %v1773_v54 = vld [vmem:[%s2901_s1 + $0x468] sm:$0xf0] }
  0x60   :  { %1035 = vmatpush.bf16.msra.mxu0 %v1724_v0  ;;  %v1496_v0 = vor.u32 %v1855_v57, %v1493_v58  ;;  %v1907_v58 = vld [vmem:[%s2901_s1 + $0x3d4] sm:$0xf] }
  0x61   :  { %1048 = vmatpush.bf16.msra.mxu1 %v1216_v3  ;;  %v1621_v3 = vld [vmem:[%s2901_s1 + $0x338] sm:$0xf0] }
  0x62   :  { %1061 = vmatpush.bf16.msra.mxu2 %v1280_v11  ;;  %v1424_v11 = vor.u32 %v1837_v63, %v1421_v1  ;;  %v1624_v12 = vor.u32 %v1887_v2, %v1621_v3  ;;  %v1903_v3 = vld [vmem:[%s2901_s1 + $0x3b4] sm:$0xf] }
  0x63   :  { %1036 = vmatmul.bf16.vlgmr.msra.gmra.mxu0 %v2607_v16  ;;  %1074 = vmatpush.bf16.msra.mxu3 %v1344_v21 }
  0x64   :  { %1080 = vmatpush.bf16.msrb.mxu0 %v1464_v4  ;;  %1049 = vmatmul.bf16.vlgmr.msra.gmra.mxu1 %v2248_v15  ;;  %v1637_v15 = vld [vmem:[%s2901_s1 + $0x358] sm:$0xf0]  ;;  %v1560_v4 = vor.u32 %v1871_v59, %v1557_v60  ;;  %v1923_v60 = vld [vmem:[%s2901_s1 + $0x454] sm:$0xf] }
  0x65   :  { %1093 = vmatpush.bf16.msrb.mxu1 %v1528_v10  ;;  %1062 = vmatmul.bf16.vlgmr.msra.gmra.mxu2 %v2258_v19  ;;  %v1565_v19 = vld [vmem:[%s2901_s1 + $0x2c8] sm:$0xf0]  ;;  %v1640_v51 = vor.u32 %v1891_v43, %v1637_v15  ;;  %v1408_v15 = vor.u32 %v1833_v28, %v1405_v29  ;;  %v1701_v59 = vld [vmem:[%s2901_s1 + $0x3d8] sm:$0xf0] }
  0x66   :  { %1106 = vmatpush.bf16.msrb.mxu2 %v1592_v17  ;;  %1075 = vmatmul.bf16.vlgmr.msra.gmra.mxu3 %v2232_v5  ;;  %v1429_v5 = vld [vmem:[%s2901_s1 + $0x1b8] sm:$0xf0]  ;;  %v1568_v56 = vor.u32 %v1873_v48, %v1565_v19  ;;  %v1549_v10 = vld [vmem:[%s2901_s1 + $0x2a8] sm:$0xf0]  ;;  %v1881_v48 = vld [vmem:[%s2901_s1 + $0x304] sm:$0xf] }
  0x67   :  { %1119 = vmatpush.bf16.msrb.mxu3 %v1656_v25  ;;  %v1432_v61 = vor.u32 %v1839_v52, %v1429_v5  ;;  %v1413_v17 = vld [vmem:[%s2901_s1 + $0x198] sm:$0xf0]  ;;  %v1552_v21 = vor.u32 %v1869_v9, %v1549_v10  ;;  %v1533_v43 = vld [vmem:[%s2901_s1 + $0x288] sm:$0xf0]  ;;  %v1909_v52 = vld [vmem:[%s2901_s1 + $0x3e4] sm:$0xf] }
  0x68   :  { %1081 = vmatpush.bf16.msrb.mxu0 %v1456_v24  ;;  %v1867_v24 = vld [vmem:[%s2901_s1 + $0x294] sm:$0xf]  ;;  %v1541_v25 = vld [vmem:[%s2901_s1 + $0x298] sm:$0xf0]  ;;  %v1416_v26 = vor.u32 %v1835_v13, %v1413_v17  ;;  %v1597_v19 = vld [vmem:[%s2901_s1 + $0x308] sm:$0xf0] }
  0x69   :  { %1094 = vmatpush.bf16.msrb.mxu1 %v1520_v27  ;;  %v1616_v27 = vor.u32 %v1885_v18, %v1613_v20  ;;  %v1544_v35 = vor.u32 %v1867_v24, %v1541_v25  ;;  %v1925_v5 = vld [vmem:[%s2901_s1 + $0x464] sm:$0xf]  ;;  %v1600_v55 = vor.u32 %v1881_v48, %v1597_v19  ;;  %v1741_v13 = vld [vmem:[%s2901_s1 + $0x428] sm:$0xf0]  ;;  %v1899_v18 = vld [vmem:[%s2901_s1 + $0x394] sm:$0xf] }
  0x6a   :  { %1107 = vmatpush.bf16.msrb.mxu2 %v1584_v31  ;;  %v1480_v31 = vor.u32 %v1851_v22, %v1477_v23  ;;  %v1776_v57 = vor.u32 %v1925_v5, %v1773_v54  ;;  %v1901_v10 = vld [vmem:[%s2901_s1 + $0x3a4] sm:$0xf]  ;;  %v1669_v20 = vld [vmem:[%s2901_s1 + $0x398] sm:$0xf0]  ;;  %v1725_v28 = vld [vmem:[%s2901_s1 + $0x408] sm:$0xf0] }
  0x6b   :  { %1120 = vmatpush.bf16.msrb.mxu3 %v1648_v37  ;;  %v1717_v37 = vld [vmem:[%s2901_s1 + $0x3f8] sm:$0xf0]  ;;  %v1672_v23 = vor.u32 %v1899_v18, %v1669_v20  ;;  %v1897_v25 = vld [vmem:[%s2901_s1 + $0x384] sm:$0xf] }
  0x6c   :  { %1082 = vmatpush.bf16.msrb.mxu0 %v1448_v36  ;;  %v1911_v36 = vld [vmem:[%s2901_s1 + $0x3f4] sm:$0xf]  ;;  %v1733_v22 = vld [vmem:[%s2901_s1 + $0x418] sm:$0xf0] }
  0x6d   :  { %1095 = vmatpush.bf16.msrb.mxu1 %v1512_v41  ;;  %v1781_v41 = vld [vmem:[%s2901_s1 + $0x478] sm:$0xf0]  ;;  %v1720_v47 = vor.u32 %v1911_v36, %v1717_v37 }
  0x6e   :  { %1108 = vmatpush.bf16.msrb.mxu2 %v1576_v45  ;;  %v1608_v45 = vor.u32 %v1883_v33, %v1605_v34 }
  0x6f   :  { %1121 = vmatpush.bf16.msrb.mxu3 %v1640_v51  ;;  %v1536_v51 = vor.u32 %v1865_v42, %v1533_v43 }
  0x70   :  { %1083 = vmatpush.bf16.msrb.mxu0 %v1440_v49  ;;  %v1784_v49 = vor.u32 %v1927_v39, %v1781_v41 }
  0x71   :  { %1096 = vmatpush.bf16.msrb.mxu1 %v1504_v53  ;;  %v1709_v53 = vld [vmem:[%s2901_s1 + $0x3e8] sm:$0xf0] }
  0x72   :  { %1109 = vmatpush.bf16.msrb.mxu2 %v1568_v56  ;;  %v1712_v56 = vor.u32 %v1909_v52, %v1709_v53 }
  0x73   :  { %1122 = vmatpush.bf16.msrb.mxu3 %v1632_v62  ;;  %v1704_v62 = vor.u32 %v1907_v58, %v1701_v59  ;;  %v1160_v58 = vld [vmem:[%s2904_s3] sm:$0xff] }
  0x74   :  { %1084 = vmatpush.bf16.msrb.mxu0 %v1432_v61  ;;  %v1765_v61 = vld [vmem:[%s2901_s1 + $0x458] sm:$0xf0]  ;;  %v1161_v59 = vunpack.c.l.bf16 %v1160_v58 }
  0x75   :  { %1097 = vmatpush.bf16.msrb.mxu1 %v1496_v0  ;;  %v1768_v63 = vor.u32 %v1923_v60, %v1765_v61  ;;  %v1693_v0 = vld [vmem:[%s2901_s1 + $0x3c8] sm:$0xf0] }
  0x76   :  { %1110 = vmatpush.bf16.msrb.mxu2 %v1560_v4  ;;  %v1919_v4 = vld [vmem:[%s2901_s1 + $0x434] sm:$0xf] }
  0x77   :  { %1123 = vmatpush.bf16.msrb.mxu3 %v1624_v12  ;;  %v1752_v9 = vor.u32 %v1919_v4, %v1749_v6  ;;  %v1917_v12 = vld [vmem:[%s2901_s1 + $0x424] sm:$0xf] }
  0x78   :  { %1085 = vmatpush.bf16.msrb.mxu0 %v1424_v11  ;;  %v1677_v11 = vld [vmem:[%s2901_s1 + $0x3a8] sm:$0xf0]  ;;  %v1744_v17 = vor.u32 %v1917_v12, %v1741_v13 }
  0x79   :  { %1098 = vmatpush.bf16.msrb.mxu1 %v1488_v14  ;;  %v1680_v14 = vor.u32 %v1901_v10, %v1677_v11 }
  0x7a   :  { %1111 = vmatpush.bf16.msrb.mxu2 %v1552_v21  ;;  %v1915_v21 = vld [vmem:[%s2901_s1 + $0x414] sm:$0xf] }
  0x7b   :  { %1124 = vmatpush.bf16.msrb.mxu3 %v1616_v27  ;;  %v1736_v24 = vor.u32 %v1915_v21, %v1733_v22  ;;  %v1913_v27 = vld [vmem:[%s2901_s1 + $0x404] sm:$0xf] }
  0x7c   :  { %1086 = vmatpush.bf16.msrb.mxu0 %v1416_v26  ;;  %v1661_v26 = vld [vmem:[%s2901_s1 + $0x388] sm:$0xf0]  ;;  %v1728_v30 = vor.u32 %v1913_v27, %v1725_v28 }
  0x7d   :  { %1099 = vmatpush.bf16.msrb.mxu1 %v1480_v31  ;;  %v1664_v29 = vor.u32 %v1897_v25, %v1661_v26  ;;  %v166_v31 = vld [vmem:[%s2903_s2] sm:$0x3] }
  0x7e   :  { %1112 = vmatpush.bf16.msrb.mxu2 %v1544_v35  ;;  %v168_v32 = vperm.slane %v166_v31, 0 }
  0x7f   :  { %1125 = vmatpush.bf16.msrb.mxu3 %v1608_v45 }
  0x80   :  { %1087 = vmatpush.bf16.msrb.mxu0 %v1408_v15 }
  0x81   :  { %1100 = vmatpush.bf16.msrb.mxu1 %v1472_v46 }
  0x82   :  { %1113 = vmatpush.bf16.msrb.mxu2 %v1536_v51 }
  0x83   :  { %1088 = vmatmul.bf16.vlgmr.msrb.gmra.mxu0 %v2234_v7  ;;  %1126 = vmatpush.bf16.msrb.mxu3 %v1600_v55  ;;  %v1905_v7 = vld [vmem:[%s2901_s1 + $0x3c4] sm:$0xf] }
  0x84   :  { %1132 = vmatpush.bf16.msra.mxu0 %v1720_v47  ;;  %1101 = vmatmul.bf16.vlgmr.msrb.gmra.mxu1 %v2412_v38  ;;  %v1921_v38 = vld [vmem:[%s2901_s1 + $0x444] sm:$0xf]  ;;  %v1696_v1 = vor.u32 %v1905_v7, %v1693_v0  ;;  %v1163_v0 = vsub.f32 0.0, %v1161_v59 }
  0x85   :  { %1145 = vmatpush.bf16.msra.mxu1 %v1784_v49  ;;  %1114 = vmatmul.bf16.vlgmr.msrb.gmra.mxu2 %v2436_v50  ;;  %v1757_v50 = vld [vmem:[%s2901_s1 + $0x448] sm:$0xf0] }
  0x86   :  { %1127 = vmatmul.bf16.vlgmr.msrb.gmra.mxu3 %v2414_v40  ;;  %v1760_v2 = vor.u32 %v1921_v38, %v1757_v50  ;;  %v1685_v40 = vld [vmem:[%s2901_s1 + $0x3b8] sm:$0xf0]  ;;  %v1165_v50 = vmul.f32 1.442695, %v1163_v0 }
  0x87   :  { %v1688_v8 = vor.u32 %v1903_v3, %v1685_v40 }
  0x88   :  { %1133 = vmatpush.bf16.msra.mxu0 %v1712_v56  ;;  %1929 = vpow2.f32 %v1165_v50 }
  0x89   :  { %1146 = vmatpush.bf16.msra.mxu1 %v1776_v57 }
  0x8c   :  { %1134 = vmatpush.bf16.msra.mxu0 %v1704_v62 }
  0x8d   :  { %1147 = vmatpush.bf16.msra.mxu1 %v1768_v63  ;;  %v1162_v63 = vunpack.c.h.bf16 %v1160_v58 }
  0x8e   :  { %v1930_v40 = vpop.eup %1929 }
  0x8f   :  { %v1164_v38 = vsub.f32 0.0, %v1162_v63  ;;  %v1169_v6 = vadd.f32 1.0, %v1930_v40 }
  0x90   :  { %1135 = vmatpush.bf16.msra.mxu0 %v1696_v1 }
  0x91   :  { %1148 = vmatpush.bf16.msra.mxu1 %v1760_v2  ;;  %v1167_v2 = vmul.f32 1.442695, %v1164_v38  ;;  %vm1176_vm0 = vweird.f32 %v1169_v6 }
  0x93   :  { %1931 = vpow2.f32 %v1167_v2 }
  0x94   :  { %1136 = vmatpush.bf16.msra.mxu0 %v1688_v8  ;;  %v169_v8 = vperm.slane %v166_v31, 1  ;;  %1933 = vrcp.f32 %v1169_v6 }
  0x95   :  { %1149 = vmatpush.bf16.msra.mxu1 %v1752_v9 }
  0x98   :  { %1137 = vmatpush.bf16.msra.mxu0 %v1680_v14 }
  0x99   :  { %1150 = vmatpush.bf16.msra.mxu1 %v1744_v17  ;;  %v1932_v4 = vpop.eup %1931 }
  0x9a   :  { %v1170_v11 = vadd.f32 1.0, %v1932_v4  ;;  %v1934_v20 = vpop.eup %1933 }
  0x9b   :  { %vm1177_vm1 = vweird.f32 %v1934_v20 }
  0x9c   :  { %1138 = vmatpush.bf16.msra.mxu0 %v1672_v23  ;;  %1935 = vrcp.f32 %v1170_v11  ;;  %vm1191_vm2 = vweird.f32 %v1170_v11  ;;  %vm2885_vm4 = vmor %vm1176_vm0, %vm1177_vm1 }
  0x9d   :  { %1151 = vmatpush.bf16.msra.mxu1 %v1736_v24  ;;  %v1172_v24 = vmul.f32 %v1934_v20, %v1169_v6 }
  0x9f   :  { %v1173_v28 = vsub.f32 1.0, %v1172_v24 }
  0xa0   :  { %1139 = vmatpush.bf16.msra.mxu0 %v1664_v29  ;;  %v933_v33 = vpop.f32.mrf.mxu0 }
  0xa1   :  { %1152 = vmatpush.bf16.msra.mxu1 %v1728_v30  ;;  %v934_v34 = vadd.f32 %v933_v33, %v168_v32  ;;  %v946_v35 = vpop.f32.mrf.mxu1  ;;  %v1174_v32 = vmul.f32 %v1934_v20, %v1173_v28 }
  0xa2   :  { %v1936_v22 = vpop.eup %1935 }
  0xa3   :  { %1140 = vmatmul.bf16.vlgmr.msra.gmra.mxu0 %v2422_v44  ;;  %v947_v36 = vadd.f32 %v946_v35, %v934_v34  ;;  %v1187_v25 = vmul.f32 %v1936_v22, %v1170_v11  ;;  %vm1192_vm3 = vweird.f32 %v1936_v22  ;;  %v1175_v35 = vadd.f32 %v1934_v20, %v1174_v32 }
  0xa4   :  { %1153 = vmatmul.bf16.vlgmr.msra.gmra.mxu1 %v2607_v16  ;;  %vm2889_vm5 = vmor %vm1191_vm2, %vm1192_vm3 }
  0xa5   :  { %v1188_v30 = vsub.f32 1.0, %v1187_v25 }
  0xa7   :  { %v1189_v33 = vmul.f32 %v1936_v22, %v1188_v30 }
  0xa8   :  { %v959_v39 = vpop.f32.mrf.mxu2  ;;  %v935_v43 = vpop.f32.mrf.mxu0 }
  0xa9   :  { %v972_v37 = vpop.f32.mrf.mxu3  ;;  %v960_v41 = vadd.f32 %v959_v39, %v947_v36  ;;  %v948_v15 = vpop.f32.mrf.mxu1  ;;  %v1182_v36 = vand.u32 2147483648, %v1169_v6  ;;  %v1195_v43 = vand.u32 2147483647, %v1170_v11 }
  0xab   :  { %v973_v42 = vadd.f32 %v972_v37, %v960_v41  ;;  %v1197_v37 = vand.u32 2147483648, %v1170_v11  ;;  %v1180_v41 = vand.u32 2147483647, %v1169_v6  ;;  %vm1196_vm7 = vcmp.eq.f32.partialorder %v1195_v43, 8.507059e+37 }
  0xad   :  { %vm1181_vm6 = vcmp.eq.f32.partialorder %v1180_v41, 8.507059e+37 }
  0xb0   :  { %v961_v46 = vpop.f32.mrf.mxu2 }
  0xb1   :  { %v974_v45 = vpop.f32.mrf.mxu3 }
  0xc0   :  { %v985_v44 = vpop.f32.mrf.mxu0 }
  0xc1   :  { %v986_v47 = vadd.f32 %v985_v44, %v973_v42  ;;  %v998_v16 = vpop.f32.mrf.mxu1  ;;  %v1190_v42 = vadd.f32 %v1936_v22, %v1189_v33  ;;  %v1179_v44 = vsel %vm2885_vm4, %v1934_v20, %v1175_v35 }
  0xc3   :  { %v999_v48 = vadd.f32 %v998_v16, %v986_v47  ;;  %v1183_v47 = vor.u32 1.1754944e-38, %v1182_v36 }
  0xc8   :  { %v1011_v19 = vpop.f32.mrf.mxu2  ;;  %v987_v52 = vpop.f32.mrf.mxu0 }
  0xc9   :  { %v1012_v49 = vadd.f32 %v1011_v19, %v999_v48  ;;  %v1024_v51 = vpop.f32.mrf.mxu3  ;;  %v1000_v5 = vpop.f32.mrf.mxu1  ;;  %v1198_v48 = vor.u32 1.1754944e-38, %v1197_v37 }
  0xcb   :  { %v2880_v53 = vadd.f32 %v1024_v51, %v1012_v49  ;;  %v1194_v51 = vsel %vm2889_vm5, %v1936_v22, %v1190_v42 }
  0xd0   :  { %v1013_v54 = vpop.f32.mrf.mxu2 }
  0xd1   :  { %v1026_v55 = vpop.f32.mrf.mxu3  ;;  %v1184_v54 = vsel %vm1181_vm6, %v1183_v47, %v1179_v44 }
  0xd2   :  { %v1199_v55 = vsel %vm1196_vm7, %v1198_v48, %v1194_v51 }
  0xe0   :  { %v1037_v56 = vpop.f32.mrf.mxu0 }
  0xe1   :  { %v1050_v57 = vpop.f32.mrf.mxu1  ;;  %v1038_v45 = vadd.f32 %v1037_v56, %v2880_v53 }
  0xe2   :  { %v1051_v12 = vadd.f32 %v1050_v57, %v169_v8 }
  0xe3   :  { %v1158_v52 = vmax.f32 %v1038_v45, 0.0 }
  0xe5   :  { %v1201_v53 = vmul.f32 %v1184_v54, %v1158_v52 }
  0xe8   :  { %v1039_v60 = vpop.f32.mrf.mxu0  ;;  %v1063_v61 = vpop.f32.mrf.mxu2 }
  0xe9   :  { %v1052_v62 = vpop.f32.mrf.mxu1  ;;  %v1076_v7 = vpop.f32.mrf.mxu3  ;;  %v1064_v13 = vadd.f32 %v1063_v61, %v1051_v12 }
  0xeb   :  { %v1077_v23 = vadd.f32 %v1076_v7, %v1064_v13 }
  0xf0   :  { %v1065_v1 = vpop.f32.mrf.mxu2 }
  0xf1   :  { %v1078_v3 = vpop.f32.mrf.mxu3 }
 0x100   :  { %v1089_v9 = vpop.f32.mrf.mxu0 }
 0x101   :  { %v1102_v10 = vpop.f32.mrf.mxu1  ;;  %v1090_v26 = vadd.f32 %v1089_v9, %v1077_v23 }
 0x103   :  { %v1103_v31 = vadd.f32 %v1102_v10, %v1090_v26 }
 0x108   :  { %v1115_v14 = vpop.f32.mrf.mxu2  ;;  %v1091_v17 = vpop.f32.mrf.mxu0 }
 0x109   :  { %v1104_v18 = vpop.f32.mrf.mxu1  ;;  %v1128_v21 = vpop.f32.mrf.mxu3  ;;  %v1116_v34 = vadd.f32 %v1115_v14, %v1103_v31 }
 0x10b   :  { %v1129_v46 = vadd.f32 %v1128_v21, %v1116_v34 }
 0x110   :  { %v1117_v27 = vpop.f32.mrf.mxu2 }
 0x111   :  { %v1130_v29 = vpop.f32.mrf.mxu3 }
 0x120   :  { %v1141_v16 = vpop.f32.mrf.mxu0 }
 0x121   :  { %v1142_v19 = vadd.f32 %v1141_v16, %v1129_v46  ;;  %v1154_v49 = vpop.f32.mrf.mxu1 }
 0x123   :  { %v1155_v5 = vadd.f32 %v1154_v49, %v1142_v19 }
 0x125   :  { %v1159_v57 = vmax.f32 %v1155_v5, 0.0 }
 0x127   :  { %v1202_v56 = vmul.f32 %v1199_v55, %v1159_v57 }
 0x128   :  { %v1143_v58 = vpop.f32.mrf.mxu0 }
 0x129   :  { %v1203_v59 = vpack.c.bf16 %v1202_v56, %v1201_v53  ;;  %v1156_v60 = vpop.f32.mrf.mxu1 }
 0x12b   :  { %1204 = vst [vmem:[%s2905_s4] sm:$0xff] %v1203_v59 }

// kernel: align_net_forward.15
= control target key start
LH: loop header
LB: loop body
LE: loop exit
PB: predicated region body
PF: predicated region fallthrough
CT: control target
= control target key end

     0   :  { %s2824_s1 = inlined_call_operand.vmem [shape: bf16[1152,256], index: 1, kind: input, shape index: {}]   ;;  %s2825_s0 = inlined_call_operand.vmem [shape: bf16[8,1152], index: 0, kind: input, shape index: {}]   ;;  %s2826_s2 = inlined_call_operand.vmem [shape: f32[1,256], index: 2, kind: input, shape index: {}]   ;;  %s2827_s3 = inlined_call_operand.vmem [shape: bf16[8,256], index: 3, kind: output, shape index: {}]  }
   0x1   :  { %v1221_v0 = vld [vmem:[%s2824_s1 + $0x70] sm:$0xf]  ;;  %v1754_v1 = vld [vmem:[%s2824_s1 + $0x74] sm:$0xf0]  ;;  %v1213_v9 = vld [vmem:[%s2824_s1 + $0x60] sm:$0xf] }
   0x2   :  { %v1285_v2 = vld [vmem:[%s2824_s1 + $0xf0] sm:$0xf]  ;;  %v1222_v3 = vor.u32 %v1754_v1, %v1221_v0  ;;  %v1770_v4 = vld [vmem:[%s2824_s1 + $0xf4] sm:$0xf0]  ;;  %v1752_v10 = vld [vmem:[%s2824_s1 + $0x64] sm:$0xf0] }
   0x3   :  { %v1349_v5 = vld [vmem:[%s2824_s1 + $0x170] sm:$0xf]  ;;  %v1786_v6 = vld [vmem:[%s2824_s1 + $0x174] sm:$0xf0]  ;;  %v1286_v7 = vor.u32 %v1770_v4, %v1285_v2  ;;  %v1277_v11 = vld [vmem:[%s2824_s1 + $0xe0] sm:$0xf]  ;;  %v1214_v12 = vor.u32 %v1752_v10, %v1213_v9 }
   0x4   :  { %v1350_v8 = vor.u32 %v1786_v6, %v1349_v5  ;;  %921 = vmatpush.bf16.msra.mxu0 %v1222_v3  ;;  %v1768_v13 = vld [vmem:[%s2824_s1 + $0xe4] sm:$0xf0]  ;;  %v1413_v14 = vld [vmem:[%s2824_s1 + $0x1f0] sm:$0xf]  ;;  %v1802_v15 = vld [vmem:[%s2824_s1 + $0x1f4] sm:$0xf0] }
   0x5   :  { %934 = vmatpush.bf16.msra.mxu1 %v1286_v7  ;;  %v1278_v16 = vor.u32 %v1768_v13, %v1277_v11  ;;  %v1414_v17 = vor.u32 %v1802_v15, %v1413_v14  ;;  %v1341_v18 = vld [vmem:[%s2824_s1 + $0x160] sm:$0xf]  ;;  %v1784_v19 = vld [vmem:[%s2824_s1 + $0x164] sm:$0xf0]  ;;  %v1205_v20 = vld [vmem:[%s2824_s1 + $0x50] sm:$0xf] }
   0x6   :  { %947 = vmatpush.bf16.msra.mxu2 %v1350_v8  ;;  %v1342_v21 = vor.u32 %v1784_v19, %v1341_v18  ;;  %v1750_v22 = vld [vmem:[%s2824_s1 + $0x54] sm:$0xf0]  ;;  %v1269_v23 = vld [vmem:[%s2824_s1 + $0xd0] sm:$0xf]  ;;  %v1405_v25 = vld [vmem:[%s2824_s1 + $0x1e0] sm:$0xf] }
   0x7   :  { %v1766_v24 = vld [vmem:[%s2824_s1 + $0xd4] sm:$0xf0]  ;;  %960 = vmatpush.bf16.msra.mxu3 %v1414_v17  ;;  %v1800_v26 = vld [vmem:[%s2824_s1 + $0x1e4] sm:$0xf0]  ;;  %v1333_v27 = vld [vmem:[%s2824_s1 + $0x150] sm:$0xf]  ;;  %v1206_v28 = vor.u32 %v1750_v22, %v1205_v20 }
   0x8   :  { %922 = vmatpush.bf16.msra.mxu0 %v1214_v12  ;;  %v1406_v29 = vor.u32 %v1800_v26, %v1405_v25  ;;  %v1782_v30 = vld [vmem:[%s2824_s1 + $0x154] sm:$0xf0]  ;;  %v1197_v31 = vld [vmem:[%s2824_s1 + $0x40] sm:$0xf]  ;;  %v1748_v32 = vld [vmem:[%s2824_s1 + $0x44] sm:$0xf0]  ;;  %v1270_v33 = vor.u32 %v1766_v24, %v1269_v23 }
   0x9   :  { %935 = vmatpush.bf16.msra.mxu1 %v1278_v16  ;;  %v1334_v34 = vor.u32 %v1782_v30, %v1333_v27  ;;  %v1261_v35 = vld [vmem:[%s2824_s1 + $0xc0] sm:$0xf]  ;;  %v1764_v36 = vld [vmem:[%s2824_s1 + $0xc4] sm:$0xf0]  ;;  %v1397_v37 = vld [vmem:[%s2824_s1 + $0x1d0] sm:$0xf]  ;;  %v1198_v42 = vor.u32 %v1748_v32, %v1197_v31 }
   0xa   :  { %948 = vmatpush.bf16.msra.mxu2 %v1342_v21  ;;  %v1798_v38 = vld [vmem:[%s2824_s1 + $0x1d4] sm:$0xf0]  ;;  %v1325_v39 = vld [vmem:[%s2824_s1 + $0x140] sm:$0xf]  ;;  %v1780_v40 = vld [vmem:[%s2824_s1 + $0x144] sm:$0xf0]  ;;  %v1262_v45 = vor.u32 %v1764_v36, %v1261_v35 }
   0xb   :  { %961 = vmatpush.bf16.msra.mxu3 %v1406_v29  ;;  %v1398_v41 = vor.u32 %v1798_v38, %v1397_v37  ;;  %v1389_v43 = vld [vmem:[%s2824_s1 + $0x1c0] sm:$0xf]  ;;  %v1796_v44 = vld [vmem:[%s2824_s1 + $0x1c4] sm:$0xf0]  ;;  %v1326_v46 = vor.u32 %v1780_v40, %v1325_v39  ;;  %v1189_v47 = vld [vmem:[%s2824_s1 + $0x30] sm:$0xf] }
   0xc   :  { %923 = vmatpush.bf16.msra.mxu0 %v1206_v28  ;;  %v1746_v48 = vld [vmem:[%s2824_s1 + $0x34] sm:$0xf0]  ;;  %v1253_v49 = vld [vmem:[%s2824_s1 + $0xb0] sm:$0xf]  ;;  %v1390_v53 = vor.u32 %v1796_v44, %v1389_v43  ;;  %v1181_v59 = vld [vmem:[%s2824_s1 + $0x20] sm:$0xf] }
   0xd   :  { %936 = vmatpush.bf16.msra.mxu1 %v1270_v33  ;;  %v1762_v50 = vld [vmem:[%s2824_s1 + $0xb4] sm:$0xf0]  ;;  %v1317_v51 = vld [vmem:[%s2824_s1 + $0x130] sm:$0xf]  ;;  %v1190_v54 = vor.u32 %v1746_v48, %v1189_v47  ;;  %v1744_v60 = vld [vmem:[%s2824_s1 + $0x24] sm:$0xf0] }
   0xe   :  { %949 = vmatpush.bf16.msra.mxu2 %v1334_v34  ;;  %v1778_v52 = vld [vmem:[%s2824_s1 + $0x134] sm:$0xf0]  ;;  %v1381_v55 = vld [vmem:[%s2824_s1 + $0x1b0] sm:$0xf]  ;;  %v1254_v57 = vor.u32 %v1762_v50, %v1253_v49  ;;  %v1245_v61 = vld [vmem:[%s2824_s1 + $0xa0] sm:$0xf]  ;;  %v1182_v2 = vor.u32 %v1744_v60, %v1181_v59 }
   0xf   :  { %962 = vmatpush.bf16.msra.mxu3 %v1398_v41  ;;  %v1794_v56 = vld [vmem:[%s2824_s1 + $0x1b4] sm:$0xf0]  ;;  %v1318_v58 = vor.u32 %v1778_v52, %v1317_v51  ;;  %v1760_v62 = vld [vmem:[%s2824_s1 + $0xa4] sm:$0xf0]  ;;  %v1309_v63 = vld [vmem:[%s2824_s1 + $0x120] sm:$0xf] }
  0x10   :  { %924 = vmatpush.bf16.msra.mxu0 %v1198_v42  ;;  %v1776_v0 = vld [vmem:[%s2824_s1 + $0x124] sm:$0xf0]  ;;  %v1382_v1 = vor.u32 %v1794_v56, %v1381_v55  ;;  %v1373_v3 = vld [vmem:[%s2824_s1 + $0x1a0] sm:$0xf]  ;;  %v1246_v5 = vor.u32 %v1760_v62, %v1245_v61  ;;  %v1173_v7 = vld [vmem:[%s2824_s1 + $0x10] sm:$0xf] }
  0x11   :  { %937 = vmatpush.bf16.msra.mxu1 %v1262_v45  ;;  %v1792_v4 = vld [vmem:[%s2824_s1 + $0x1a4] sm:$0xf0]  ;;  %v1310_v6 = vor.u32 %v1776_v0, %v1309_v63  ;;  %v1742_v8 = vld [vmem:[%s2824_s1 + $0x14] sm:$0xf0]  ;;  %v1237_v9 = vld [vmem:[%s2824_s1 + $0x90] sm:$0xf] }
  0x12   :  { %950 = vmatpush.bf16.msra.mxu2 %v1326_v46  ;;  %v1758_v10 = vld [vmem:[%s2824_s1 + $0x94] sm:$0xf0]  ;;  %v1301_v11 = vld [vmem:[%s2824_s1 + $0x110] sm:$0xf]  ;;  %v1374_v13 = vor.u32 %v1792_v4, %v1373_v3  ;;  %v1165_v14 = vld [vmem:[%s2824_s1] sm:$0xf]  ;;  %v1174_v15 = vor.u32 %v1742_v8, %v1173_v7 }
  0x13   :  { %963 = vmatpush.bf16.msra.mxu3 %v1390_v53  ;;  %v1774_v12 = vld [vmem:[%s2824_s1 + $0x114] sm:$0xf0]  ;;  %v1740_v16 = vld [vmem:[%s2824_s1 + $0x4] sm:$0xf0]  ;;  %v1365_v17 = vld [vmem:[%s2824_s1 + $0x190] sm:$0xf]  ;;  %v1238_v19 = vor.u32 %v1758_v10, %v1237_v9 }
  0x14   :  { %925 = vmatpush.bf16.msra.mxu0 %v1190_v54  ;;  %v1790_v18 = vld [vmem:[%s2824_s1 + $0x194] sm:$0xf0]  ;;  %v1302_v20 = vor.u32 %v1774_v12, %v1301_v11  ;;  %v1229_v21 = vld [vmem:[%s2824_s1 + $0x80] sm:$0xf]  ;;  %v1756_v22 = vld [vmem:[%s2824_s1 + $0x84] sm:$0xf0]  ;;  %v1166_v31 = vor.u32 %v1740_v16, %v1165_v14 }
  0x15   :  { %938 = vmatpush.bf16.msra.mxu1 %v1254_v57  ;;  %v1477_v23 = vld [vmem:[%s2824_s1 + $0x270] sm:$0xf]  ;;  %v1818_v24 = vld [vmem:[%s2824_s1 + $0x274] sm:$0xf0]  ;;  %v1366_v27 = vor.u32 %v1790_v18, %v1365_v17  ;;  %v1293_v28 = vld [vmem:[%s2824_s1 + $0x100] sm:$0xf]  ;;  %v1230_v35 = vor.u32 %v1756_v22, %v1229_v21 }
  0x16   :  { %951 = vmatpush.bf16.msra.mxu2 %v1318_v58  ;;  %v1541_v25 = vld [vmem:[%s2824_s1 + $0x2f0] sm:$0xf]  ;;  %v1834_v26 = vld [vmem:[%s2824_s1 + $0x2f4] sm:$0xf0]  ;;  %v1772_v29 = vld [vmem:[%s2824_s1 + $0x104] sm:$0xf0]  ;;  %v1478_v36 = vor.u32 %v1818_v24, %v1477_v23 }
  0x17   :  { %964 = vmatpush.bf16.msra.mxu3 %v1382_v1  ;;  %v1605_v30 = vld [vmem:[%s2824_s1 + $0x370] sm:$0xf]  ;;  %v1850_v32 = vld [vmem:[%s2824_s1 + $0x374] sm:$0xf0]  ;;  %v1357_v33 = vld [vmem:[%s2824_s1 + $0x180] sm:$0xf]  ;;  %v1542_v39 = vor.u32 %v1834_v26, %v1541_v25  ;;  %v1294_v40 = vor.u32 %v1772_v29, %v1293_v28 }
  0x18   :  { %926 = vmatpush.bf16.msra.mxu0 %v1182_v2  ;;  %v1788_v34 = vld [vmem:[%s2824_s1 + $0x184] sm:$0xf0]  ;;  %v1669_v37 = vld [vmem:[%s2824_s1 + $0x3f0] sm:$0xf]  ;;  %v1866_v38 = vld [vmem:[%s2824_s1 + $0x3f4] sm:$0xf0]  ;;  %v1606_v43 = vor.u32 %v1850_v32, %v1605_v30 }
  0x19   :  { %939 = vmatpush.bf16.msra.mxu1 %v1246_v5  ;;  %v1469_v41 = vld [vmem:[%s2824_s1 + $0x260] sm:$0xf]  ;;  %v1816_v42 = vld [vmem:[%s2824_s1 + $0x264] sm:$0xf0]  ;;  %v1358_v44 = vor.u32 %v1788_v34, %v1357_v33  ;;  %v1670_v47 = vor.u32 %v1866_v38, %v1669_v37  ;;  %v1461_v54 = vld [vmem:[%s2824_s1 + $0x250] sm:$0xf] }
  0x1a   :  { %952 = vmatpush.bf16.msra.mxu2 %v1310_v6  ;;  %v1533_v45 = vld [vmem:[%s2824_s1 + $0x2e0] sm:$0xf]  ;;  %v1832_v46 = vld [vmem:[%s2824_s1 + $0x2e4] sm:$0xf0]  ;;  %v1470_v50 = vor.u32 %v1816_v42, %v1469_v41  ;;  %v1814_v55 = vld [vmem:[%s2824_s1 + $0x254] sm:$0xf0] }
  0x1b   :  { %965 = vmatpush.bf16.msra.mxu3 %v1374_v13  ;;  %v1597_v48 = vld [vmem:[%s2824_s1 + $0x360] sm:$0xf]  ;;  %v1848_v49 = vld [vmem:[%s2824_s1 + $0x364] sm:$0xf0]  ;;  %v1534_v53 = vor.u32 %v1832_v46, %v1533_v45  ;;  %v1525_v58 = vld [vmem:[%s2824_s1 + $0x2d0] sm:$0xf]  ;;  %v1462_v4 = vor.u32 %v1814_v55, %v1461_v54 }
  0x1c   :  { %927 = vmatpush.bf16.msra.mxu0 %v1174_v15  ;;  %v1661_v51 = vld [vmem:[%s2824_s1 + $0x3e0] sm:$0xf]  ;;  %v1864_v52 = vld [vmem:[%s2824_s1 + $0x3e4] sm:$0xf0]  ;;  %v1598_v57 = vor.u32 %v1848_v49, %v1597_v48  ;;  %v1830_v59 = vld [vmem:[%s2824_s1 + $0x2d4] sm:$0xf0] }
  0x1d   :  { %940 = vmatpush.bf16.msra.mxu1 %v1238_v19  ;;  %v15_v56 = vld [vmem:[%s2825_s0 + $0x8] sm:$0xff]  ;;  %v14_v61 = vld [vmem:[%s2825_s0] sm:$0xff]  ;;  %v1662_v63 = vor.u32 %v1864_v52, %v1661_v51  ;;  %v1589_v0 = vld [vmem:[%s2824_s1 + $0x350] sm:$0xf]  ;;  %v1526_v9 = vor.u32 %v1830_v59, %v1525_v58 }
  0x1e   :  { %953 = vmatpush.bf16.msra.mxu2 %v1302_v20  ;;  %v176_v60 = vunpack.c.l.b16 %v15_v56  ;;  %v177_v62 = vunpack.c.h.b16 %v15_v56  ;;  %v1846_v1 = vld [vmem:[%s2824_s1 + $0x354] sm:$0xf0]  ;;  %v174_v2 = vunpack.c.l.b16 %v14_v61  ;;  %v175_v3 = vunpack.c.h.b16 %v14_v61  ;;  %v1653_v5 = vld [vmem:[%s2824_s1 + $0x3d0] sm:$0xf]  ;;  %v1453_v10 = vld [vmem:[%s2824_s1 + $0x240] sm:$0xf] }
  0x1f   :  { %966 = vmatpush.bf16.msra.mxu3 %v1366_v27  ;;  %v1862_v6 = vld [vmem:[%s2824_s1 + $0x3d4] sm:$0xf0]  ;;  %v1812_v11 = vld [vmem:[%s2824_s1 + $0x244] sm:$0xf0]  ;;  %v1590_v14 = vor.u32 %v1846_v1, %v1589_v0  ;;  %v1517_v15 = vld [vmem:[%s2824_s1 + $0x2c0] sm:$0xf] }
  0x20   :  { %928 = vmatpush.bf16.msra.mxu0 %v1166_v31  ;;  %v2173_v7 = vpack.c.b16 %v176_v60, %v176_v60  ;;  %v2175_v8 = vpack.c.b16 %v177_v62, %v177_v62  ;;  %v2183_v12 = vpack.c.b16 %v174_v2, %v174_v2  ;;  %v2185_v13 = vpack.c.b16 %v175_v3, %v175_v3  ;;  %v1828_v16 = vld [vmem:[%s2824_s1 + $0x2c4] sm:$0xf0]  ;;  %v1581_v18 = vld [vmem:[%s2824_s1 + $0x340] sm:$0xf]  ;;  %v1445_v24 = vld [vmem:[%s2824_s1 + $0x230] sm:$0xf] }
  0x21   :  { %941 = vmatpush.bf16.msra.mxu1 %v1230_v35  ;;  %v1654_v17 = vor.u32 %v1862_v6, %v1653_v5  ;;  %v1844_v19 = vld [vmem:[%s2824_s1 + $0x344] sm:$0xf0]  ;;  %v1454_v20 = vor.u32 %v1812_v11, %v1453_v10  ;;  %v1645_v21 = vld [vmem:[%s2824_s1 + $0x3c0] sm:$0xf]  ;;  %v1518_v23 = vor.u32 %v1828_v16, %v1517_v15  ;;  %v1810_v25 = vld [vmem:[%s2824_s1 + $0x234] sm:$0xf0] }
  0x22   :  { %954 = vmatpush.bf16.msra.mxu2 %v1294_v40  ;;  %v1860_v22 = vld [vmem:[%s2824_s1 + $0x3c4] sm:$0xf0]  ;;  %v1582_v26 = vor.u32 %v1844_v19, %v1581_v18  ;;  %v1509_v27 = vld [vmem:[%s2824_s1 + $0x2b0] sm:$0xf]  ;;  %v1826_v28 = vld [vmem:[%s2824_s1 + $0x2b4] sm:$0xf0]  ;;  %v1446_v32 = vor.u32 %v1810_v25, %v1445_v24 }
  0x23   :  { %967 = vmatpush.bf16.msra.mxu3 %v1358_v44  ;;  %929 = vmatmul.bf16.vlgmr.msra.gmra.mxu0 %v2183_v12  ;;  %v1646_v29 = vor.u32 %v1860_v22, %v1645_v21  ;;  %v1573_v30 = vld [vmem:[%s2824_s1 + $0x330] sm:$0xf]  ;;  %v1842_v31 = vld [vmem:[%s2824_s1 + $0x334] sm:$0xf0]  ;;  %v1510_v35 = vor.u32 %v1826_v28, %v1509_v27  ;;  %v1808_v37 = vld [vmem:[%s2824_s1 + $0x224] sm:$0xf0] }
  0x24   :  { %973 = vmatpush.bf16.msrb.mxu0 %v1478_v36  ;;  %942 = vmatmul.bf16.vlgmr.msra.gmra.mxu1 %v2185_v13  ;;  %v1637_v33 = vld [vmem:[%s2824_s1 + $0x3b0] sm:$0xf]  ;;  %v1858_v34 = vld [vmem:[%s2824_s1 + $0x3b4] sm:$0xf0]  ;;  %v1437_v36 = vld [vmem:[%s2824_s1 + $0x220] sm:$0xf]  ;;  %v1574_v38 = vor.u32 %v1842_v31, %v1573_v30 }
  0x25   :  { %986 = vmatpush.bf16.msrb.mxu1 %v1542_v39  ;;  %955 = vmatmul.bf16.vlgmr.msra.gmra.mxu2 %v2173_v7  ;;  %v1501_v39 = vld [vmem:[%s2824_s1 + $0x2a0] sm:$0xf]  ;;  %v1824_v40 = vld [vmem:[%s2824_s1 + $0x2a4] sm:$0xf0]  ;;  %v1638_v41 = vor.u32 %v1858_v34, %v1637_v33  ;;  %v1438_v44 = vor.u32 %v1808_v37, %v1437_v36  ;;  %v1429_v48 = vld [vmem:[%s2824_s1 + $0x210] sm:$0xf] }
  0x26   :  { %999 = vmatpush.bf16.msrb.mxu2 %v1606_v43  ;;  %968 = vmatmul.bf16.vlgmr.msra.gmra.mxu3 %v2175_v8  ;;  %v1565_v42 = vld [vmem:[%s2824_s1 + $0x320] sm:$0xf]  ;;  %v1840_v43 = vld [vmem:[%s2824_s1 + $0x324] sm:$0xf0]  ;;  %v1806_v49 = vld [vmem:[%s2824_s1 + $0x214] sm:$0xf0] }
  0x27   :  { %1012 = vmatpush.bf16.msrb.mxu3 %v1670_v47  ;;  %v1629_v45 = vld [vmem:[%s2824_s1 + $0x3a0] sm:$0xf]  ;;  %v1856_v46 = vld [vmem:[%s2824_s1 + $0x3a4] sm:$0xf0]  ;;  %v1502_v47 = vor.u32 %v1824_v40, %v1501_v39  ;;  %v1493_v51 = vld [vmem:[%s2824_s1 + $0x290] sm:$0xf]  ;;  %v1430_v58 = vor.u32 %v1806_v49, %v1429_v48 }
  0x28   :  { %974 = vmatpush.bf16.msrb.mxu0 %v1470_v50  ;;  %v1566_v50 = vor.u32 %v1840_v43, %v1565_v42  ;;  %v1822_v52 = vld [vmem:[%s2824_s1 + $0x294] sm:$0xf0]  ;;  %v1630_v54 = vor.u32 %v1856_v46, %v1629_v45  ;;  %v1421_v56 = vld [vmem:[%s2824_s1 + $0x200] sm:$0xf]  ;;  %v1820_v60 = vld [vmem:[%s2824_s1 + $0x284] sm:$0xf0] }
  0x29   :  { %987 = vmatpush.bf16.msrb.mxu1 %v1534_v53  ;;  %v1557_v53 = vld [vmem:[%s2824_s1 + $0x310] sm:$0xf]  ;;  %v1838_v55 = vld [vmem:[%s2824_s1 + $0x314] sm:$0xf0]  ;;  %v1485_v59 = vld [vmem:[%s2824_s1 + $0x280] sm:$0xf] }
  0x2a   :  { %1000 = vmatpush.bf16.msrb.mxu2 %v1598_v57  ;;  %v1804_v57 = vld [vmem:[%s2824_s1 + $0x204] sm:$0xf0]  ;;  %v1621_v61 = vld [vmem:[%s2824_s1 + $0x390] sm:$0xf]  ;;  %v1854_v62 = vld [vmem:[%s2824_s1 + $0x394] sm:$0xf0]  ;;  %v1558_v3 = vor.u32 %v1838_v55, %v1557_v53 }
  0x2b   :  { %1013 = vmatpush.bf16.msrb.mxu3 %v1662_v63  ;;  %v1494_v63 = vor.u32 %v1822_v52, %v1493_v51  ;;  %v1733_v0 = vld [vmem:[%s2824_s1 + $0x470] sm:$0xf]  ;;  %v1882_v1 = vld [vmem:[%s2824_s1 + $0x474] sm:$0xf0]  ;;  %v1223_v5 = vld [vmem:[%s2824_s1 + $0x78] sm:$0xf0]  ;;  %v1422_v15 = vor.u32 %v1804_v57, %v1421_v56 }
  0x2c   :  { %975 = vmatpush.bf16.msrb.mxu0 %v1462_v4  ;;  %v16_v2 = vld [vmem:[%s2825_s0 + $0x10] sm:$0xff]  ;;  %v17_v6 = vld [vmem:[%s2825_s0 + $0x18] sm:$0xff]  ;;  %v1549_v10 = vld [vmem:[%s2824_s1 + $0x300] sm:$0xf]  ;;  %v1734_v21 = vor.u32 %v1882_v1, %v1733_v0 }
  0x2d   :  { %988 = vmatpush.bf16.msrb.mxu1 %v1526_v9  ;;  %v1753_v4 = vld [vmem:[%s2824_s1 + $0x74] sm:$0xf]  ;;  %v1622_v9 = vor.u32 %v1854_v62, %v1621_v61  ;;  %v1836_v11 = vld [vmem:[%s2824_s1 + $0x304] sm:$0xf0]  ;;  %v1287_v16 = vld [vmem:[%s2824_s1 + $0xf8] sm:$0xf0]  ;;  %v178_v19 = vunpack.c.l.b16 %v16_v2  ;;  %v180_v24 = vunpack.c.l.b16 %v17_v6  ;;  %v179_v34 = vunpack.c.h.b16 %v16_v2 }
  0x2e   :  { %1001 = vmatpush.bf16.msrb.mxu2 %v1590_v14  ;;  %v1769_v14 = vld [vmem:[%s2824_s1 + $0xf4] sm:$0xf]  ;;  %v1852_v18 = vld [vmem:[%s2824_s1 + $0x384] sm:$0xf0]  ;;  %v1226_v25 = vor.u32 %v1753_v4, %v1223_v5  ;;  %v1725_v27 = vld [vmem:[%s2824_s1 + $0x460] sm:$0xf] }
  0x2f   :  { %1014 = vmatpush.bf16.msrb.mxu3 %v1654_v17  ;;  %v1613_v17 = vld [vmem:[%s2824_s1 + $0x380] sm:$0xf]  ;;  %v1785_v22 = vld [vmem:[%s2824_s1 + $0x174] sm:$0xf]  ;;  %v1880_v28 = vld [vmem:[%s2824_s1 + $0x464] sm:$0xf0]  ;;  %v1290_v30 = vor.u32 %v1769_v14, %v1287_v16  ;;  %v2355_v40 = vpack.c.b16 %v180_v24, %v180_v24 }
  0x30   :  { %976 = vmatpush.bf16.msrb.mxu0 %v1454_v20  ;;  %v1486_v20 = vor.u32 %v1820_v60, %v1485_v59  ;;  %v1614_v31 = vor.u32 %v1852_v18, %v1613_v17  ;;  %v1215_v33 = vld [vmem:[%s2824_s1 + $0x68] sm:$0xf0]  ;;  %v1767_v36 = vld [vmem:[%s2824_s1 + $0xe4] sm:$0xf]  ;;  %v1726_v39 = vor.u32 %v1880_v28, %v1725_v27  ;;  %v1717_v45 = vld [vmem:[%s2824_s1 + $0x450] sm:$0xf] }
  0x31   :  { %989 = vmatpush.bf16.msrb.mxu1 %v1518_v23  ;;  %v1351_v23 = vld [vmem:[%s2824_s1 + $0x178] sm:$0xf0]  ;;  %v1279_v37 = vld [vmem:[%s2824_s1 + $0xe8] sm:$0xf0]  ;;  %v1878_v46 = vld [vmem:[%s2824_s1 + $0x454] sm:$0xf0] }
  0x32   :  { %1002 = vmatpush.bf16.msrb.mxu2 %v1582_v26  ;;  %v1550_v26 = vor.u32 %v1836_v11, %v1549_v10  ;;  %v1343_v42 = vld [vmem:[%s2824_s1 + $0x168] sm:$0xf0]  ;;  %v1749_v48 = vld [vmem:[%s2824_s1 + $0x54] sm:$0xf]  ;;  %v1207_v49 = vld [vmem:[%s2824_s1 + $0x58] sm:$0xf0] }
  0x33   :  { %1015 = vmatpush.bf16.msrb.mxu3 %v1646_v29  ;;  %v181_v29 = vunpack.c.h.b16 %v17_v6  ;;  %v1765_v52 = vld [vmem:[%s2824_s1 + $0xd4] sm:$0xf]  ;;  %v1271_v53 = vld [vmem:[%s2824_s1 + $0xd8] sm:$0xf0]  ;;  %v1210_v57 = vor.u32 %v1749_v48, %v1207_v49  ;;  %v1876_v59 = vld [vmem:[%s2824_s1 + $0x444] sm:$0xf0] }
  0x34   :  { %977 = vmatpush.bf16.msrb.mxu0 %v1446_v32  ;;  %v1751_v32 = vld [vmem:[%s2824_s1 + $0x64] sm:$0xf]  ;;  %v1781_v55 = vld [vmem:[%s2824_s1 + $0x154] sm:$0xf]  ;;  %v1335_v56 = vld [vmem:[%s2824_s1 + $0x158] sm:$0xf0]  ;;  %v1274_v60 = vor.u32 %v1765_v52, %v1271_v53 }
  0x35   :  { %990 = vmatpush.bf16.msrb.mxu1 %v1510_v35  ;;  %v1354_v35 = vor.u32 %v1785_v22, %v1351_v23  ;;  %v1218_v43 = vor.u32 %v1751_v32, %v1215_v33  ;;  %v1747_v61 = vld [vmem:[%s2824_s1 + $0x44] sm:$0xf]  ;;  %v1199_v62 = vld [vmem:[%s2824_s1 + $0x48] sm:$0xf0]  ;;  %v1701_v6 = vld [vmem:[%s2824_s1 + $0x430] sm:$0xf] }
  0x36   :  { %1003 = vmatpush.bf16.msrb.mxu2 %v1574_v38  ;;  %v2353_v38 = vpack.c.b16 %v178_v19, %v178_v19  ;;  %v1763_v0 = vld [vmem:[%s2824_s1 + $0xc4] sm:$0xf]  ;;  %v1263_v1 = vld [vmem:[%s2824_s1 + $0xc8] sm:$0xf0]  ;;  %v1202_v5 = vor.u32 %v1747_v61, %v1199_v62  ;;  %v1745_v11 = vld [vmem:[%s2824_s1 + $0x34] sm:$0xf] }
  0x37   :  { %1016 = vmatpush.bf16.msrb.mxu3 %v1638_v41  ;;  %v1783_v41 = vld [vmem:[%s2824_s1 + $0x164] sm:$0xf]  ;;  %v1327_v4 = vld [vmem:[%s2824_s1 + $0x148] sm:$0xf0]  ;;  %v1266_v10 = vor.u32 %v1763_v0, %v1263_v1  ;;  %v1191_v14 = vld [vmem:[%s2824_s1 + $0x38] sm:$0xf0] }
  0x38   :  { %978 = vmatpush.bf16.msrb.mxu0 %v1438_v44  ;;  %v2363_v44 = vpack.c.b16 %v181_v29, %v181_v29  ;;  %v1346_v51 = vor.u32 %v1783_v41, %v1343_v42  ;;  %v1761_v16 = vld [vmem:[%s2824_s1 + $0xb4] sm:$0xf]  ;;  %v1255_v17 = vld [vmem:[%s2824_s1 + $0xb8] sm:$0xf0]  ;;  %v1693_v22 = vld [vmem:[%s2824_s1 + $0x420] sm:$0xf] }
  0x39   :  { %991 = vmatpush.bf16.msrb.mxu1 %v1502_v47  ;;  %v1282_v47 = vor.u32 %v1767_v36, %v1279_v37  ;;  %v1777_v19 = vld [vmem:[%s2824_s1 + $0x134] sm:$0xf]  ;;  %v1872_v23 = vld [vmem:[%s2824_s1 + $0x424] sm:$0xf0]  ;;  %v1258_v24 = vor.u32 %v1761_v16, %v1255_v17  ;;  %v1759_v28 = vld [vmem:[%s2824_s1 + $0xa4] sm:$0xf] }
  0x3a   :  { %1004 = vmatpush.bf16.msrb.mxu2 %v1566_v50  ;;  %v2377_v50 = vpack.c.b16 %v179_v34, %v179_v34  ;;  %v1247_v29 = vld [vmem:[%s2824_s1 + $0xa8] sm:$0xf0]  ;;  %v1685_v34 = vld [vmem:[%s2824_s1 + $0x410] sm:$0xf]  ;;  %v1741_v37 = vld [vmem:[%s2824_s1 + $0x14] sm:$0xf] }
  0x3b   :  { %1017 = vmatpush.bf16.msrb.mxu3 %v1630_v54  ;;  %v1718_v54 = vor.u32 %v1878_v46, %v1717_v45  ;;  %v1311_v32 = vld [vmem:[%s2824_s1 + $0x128] sm:$0xf0]  ;;  %v1250_v36 = vor.u32 %v1759_v28, %v1247_v29  ;;  %v1757_v42 = vld [vmem:[%s2824_s1 + $0x94] sm:$0xf]  ;;  %v1677_v45 = vld [vmem:[%s2824_s1 + $0x400] sm:$0xf] }
  0x3c   :  { %979 = vmatpush.bf16.msrb.mxu0 %v1430_v58  ;;  %v1709_v58 = vld [vmem:[%s2824_s1 + $0x440] sm:$0xf]  ;;  %v1303_v48 = vld [vmem:[%s2824_s1 + $0x118] sm:$0xf0]  ;;  %v1868_v52 = vld [vmem:[%s2824_s1 + $0x404] sm:$0xf0] }
  0x3d   :  { %992 = vmatpush.bf16.msrb.mxu1 %v1494_v63  ;;  %v1338_v63 = vor.u32 %v1781_v55, %v1335_v56  ;;  %v1710_v2 = vor.u32 %v1876_v59, %v1709_v58  ;;  %v18_v49 = vld [vmem:[%s2825_s0 + $0x20] sm:$0xf]  ;;  %v1739_v53 = vld [vmem:[%s2824_s1 + $0x4] sm:$0xf]  ;;  %v1801_v56 = vld [vmem:[%s2824_s1 + $0x1f4] sm:$0xf]  ;;  %v1678_v0 = vor.u32 %v1868_v52, %v1677_v45 }
  0x3e   :  { %1005 = vmatpush.bf16.msrb.mxu2 %v1558_v3  ;;  %v1779_v3 = vld [vmem:[%s2824_s1 + $0x144] sm:$0xf]  ;;  %v1817_v58 = vld [vmem:[%s2824_s1 + $0x274] sm:$0xf]  ;;  %v1231_v62 = vld [vmem:[%s2824_s1 + $0x88] sm:$0xf0] }
  0x3f   :  { %1018 = vmatpush.bf16.msrb.mxu3 %v1622_v9  ;;  %v1874_v9 = vld [vmem:[%s2824_s1 + $0x434] sm:$0xf0]  ;;  %v1755_v61 = vld [vmem:[%s2824_s1 + $0x84] sm:$0xf]  ;;  %v1833_v1 = vld [vmem:[%s2824_s1 + $0x2f4] sm:$0xf] }
  0x40   :  { %980 = vmatpush.bf16.msrb.mxu0 %v1422_v15  ;;  %v1330_v15 = vor.u32 %v1779_v3, %v1327_v4  ;;  %v1702_v18 = vor.u32 %v1874_v9, %v1701_v6  ;;  %v1295_v6 = vld [vmem:[%s2824_s1 + $0x108] sm:$0xf0]  ;;  %v1799_v9 = vld [vmem:[%s2824_s1 + $0x1e4] sm:$0xf]  ;;  %v1607_v16 = vld [vmem:[%s2824_s1 + $0x378] sm:$0xf0] }
  0x41   :  { %993 = vmatpush.bf16.msrb.mxu1 %v1486_v20  ;;  %v1319_v20 = vld [vmem:[%s2824_s1 + $0x138] sm:$0xf0]  ;;  %v1847_v29 = vld [vmem:[%s2824_s1 + $0x364] sm:$0xf]  ;;  %v1793_v52 = vld [vmem:[%s2824_s1 + $0x1b4] sm:$0xf] }
  0x42   :  { %1006 = vmatpush.bf16.msrb.mxu2 %v1550_v26  ;;  %v1183_v26 = vld [vmem:[%s2824_s1 + $0x28] sm:$0xf0]  ;;  %v1322_v27 = vor.u32 %v1777_v19, %v1319_v20  ;;  %v1815_v19 = vld [vmem:[%s2824_s1 + $0x264] sm:$0xf]  ;;  %v1399_v28 = vld [vmem:[%s2824_s1 + $0x1d8] sm:$0xf0] }
  0x43   :  { %1019 = vmatpush.bf16.msrb.mxu3 %v1614_v31  ;;  %981 = vmatmul.bf16.vlgmr.msrb.gmra.mxu0 %v2353_v38  ;;  %v1775_v31 = vld [vmem:[%s2824_s1 + $0x124] sm:$0xf]  ;;  %v1471_v20 = vld [vmem:[%s2824_s1 + $0x268] sm:$0xf0] }
  0x44   :  { %1025 = vmatpush.bf16.msra.mxu0 %v1734_v21  ;;  %994 = vmatmul.bf16.vlgmr.msrb.gmra.mxu1 %v2377_v50  ;;  %v1194_v21 = vor.u32 %v1745_v11, %v1191_v14  ;;  %v1314_v41 = vor.u32 %v1775_v31, %v1311_v32  ;;  %v1234_v11 = vor.u32 %v1755_v61, %v1231_v62  ;;  %v1407_v14 = vld [vmem:[%s2824_s1 + $0x1e8] sm:$0xf0]  ;;  %v1813_v32 = vld [vmem:[%s2824_s1 + $0x254] sm:$0xf] }
  0x45   :  { %1038 = vmatpush.bf16.msra.mxu1 %v1226_v25  ;;  %1007 = vmatmul.bf16.vlgmr.msrb.gmra.mxu2 %v2355_v40  ;;  %v1743_v25 = vld [vmem:[%s2824_s1 + $0x24] sm:$0xf] }
  0x46   :  { %1051 = vmatpush.bf16.msra.mxu2 %v1290_v30  ;;  %1020 = vmatmul.bf16.vlgmr.msrb.gmra.mxu3 %v2363_v44  ;;  %v1694_v30 = vor.u32 %v1872_v23, %v1693_v22  ;;  %v1186_v33 = vor.u32 %v1743_v25, %v1183_v26  ;;  %v1831_v22 = vld [vmem:[%s2824_s1 + $0x2e4] sm:$0xf]  ;;  %v1535_v23 = vld [vmem:[%s2824_s1 + $0x2e8] sm:$0xf0]  ;;  %v1797_v26 = vld [vmem:[%s2824_s1 + $0x1d4] sm:$0xf] }
  0x47   :  { %1064 = vmatpush.bf16.msra.mxu3 %v1354_v35  ;;  %v1870_v35 = vld [vmem:[%s2824_s1 + $0x414] sm:$0xf0]  ;;  %v1538_v31 = vor.u32 %v1831_v22, %v1535_v23  ;;  %v1805_v22 = vld [vmem:[%s2824_s1 + $0x214] sm:$0xf]  ;;  %v1431_v23 = vld [vmem:[%s2824_s1 + $0x218] sm:$0xf0] }
  0x48   :  { %1026 = vmatpush.bf16.msra.mxu0 %v1726_v39  ;;  %v1175_v39 = vld [vmem:[%s2824_s1 + $0x18] sm:$0xf0]  ;;  %v1686_v46 = vor.u32 %v1870_v35, %v1685_v34  ;;  %v1829_v34 = vld [vmem:[%s2824_s1 + $0x2d4] sm:$0xf] }
  0x49   :  { %1039 = vmatpush.bf16.msra.mxu1 %v1218_v43  ;;  %v1239_v43 = vld [vmem:[%s2824_s1 + $0x98] sm:$0xf0] }
  0x4a   :  { %1052 = vmatpush.bf16.msra.mxu2 %v1282_v47  ;;  %v1773_v47 = vld [vmem:[%s2824_s1 + $0x114] sm:$0xf]  ;;  %v1242_v55 = vor.u32 %v1757_v42, %v1239_v43  ;;  %v1527_v35 = vld [vmem:[%s2824_s1 + $0x2d8] sm:$0xf0]  ;;  %v1391_v42 = vld [vmem:[%s2824_s1 + $0x1c8] sm:$0xf0] }
  0x4b   :  { %1065 = vmatpush.bf16.msra.mxu3 %v1346_v51  ;;  %v1178_v51 = vor.u32 %v1741_v37, %v1175_v39  ;;  %v1306_v59 = vor.u32 %v1773_v47, %v1303_v48  ;;  %v1795_v39 = vld [vmem:[%s2824_s1 + $0x1c4] sm:$0xf]  ;;  %v1845_v43 = vld [vmem:[%s2824_s1 + $0x354] sm:$0xf]  ;;  %v1530_v45 = vor.u32 %v1829_v34, %v1527_v35  ;;  %v1455_v47 = vld [vmem:[%s2824_s1 + $0x248] sm:$0xf0] }
  0x4c   :  { %1027 = vmatpush.bf16.msra.mxu0 %v1718_v54  ;;  %v1167_v54 = vld [vmem:[%s2824_s1 + $0x8] sm:$0xf0]  ;;  %v1827_v48 = vld [vmem:[%s2824_s1 + $0x2c4] sm:$0xf]  ;;  %v1559_v34 = vld [vmem:[%s2824_s1 + $0x318] sm:$0xf0] }
  0x4d   :  { %1040 = vmatpush.bf16.msra.mxu1 %v1210_v57  ;;  %v1415_v57 = vld [vmem:[%s2824_s1 + $0x1f8] sm:$0xf0]  ;;  %v1170_v3 = vor.u32 %v1739_v53, %v1167_v54  ;;  %v1843_v54 = vld [vmem:[%s2824_s1 + $0x344] sm:$0xf] }
  0x4e   :  { %1053 = vmatpush.bf16.msra.mxu2 %v1274_v60  ;;  %v1479_v60 = vld [vmem:[%s2824_s1 + $0x278] sm:$0xf0]  ;;  %v1418_v4 = vor.u32 %v1801_v56, %v1415_v57  ;;  %v1809_v57 = vld [vmem:[%s2824_s1 + $0x234] sm:$0xf] }
  0x4f   :  { %1066 = vmatpush.bf16.msra.mxu3 %v1338_v63  ;;  %v182_v63 = vunpack.c.l.b16 %v18_v49  ;;  %v1394_v49 = vor.u32 %v1795_v39, %v1391_v42  ;;  %v1881_v39 = vld [vmem:[%s2824_s1 + $0x474] sm:$0xf]  ;;  %v1819_v42 = vld [vmem:[%s2824_s1 + $0x284] sm:$0xf] }
  0x50   :  { %1028 = vmatpush.bf16.msra.mxu0 %v1710_v2  ;;  %v1543_v2 = vld [vmem:[%s2824_s1 + $0x2f8] sm:$0xf0] }
  0x51   :  { %1041 = vmatpush.bf16.msra.mxu1 %v1202_v5  ;;  %v1771_v5 = vld [vmem:[%s2824_s1 + $0x104] sm:$0xf]  ;;  %v2548_v17 = vpack.c.b16 %v182_v63, %v182_v63 }
  0x52   :  { %1054 = vmatpush.bf16.msra.mxu2 %v1266_v10  ;;  %v1482_v10 = vor.u32 %v1817_v58, %v1479_v60  ;;  %v1447_v58 = vld [vmem:[%s2824_s1 + $0x238] sm:$0xf0]  ;;  %v1791_v63 = vld [vmem:[%s2824_s1 + $0x1a4] sm:$0xf] }
  0x53   :  { %1067 = vmatpush.bf16.msra.mxu3 %v1330_v15  ;;  %v1849_v15 = vld [vmem:[%s2824_s1 + $0x374] sm:$0xf]  ;;  %v1511_v60 = vld [vmem:[%s2824_s1 + $0x2b8] sm:$0xf0] }
  0x54   :  { %1029 = vmatpush.bf16.msra.mxu0 %v1702_v18  ;;  %v1546_v18 = vor.u32 %v1833_v1, %v1543_v2  ;;  %v1610_v25 = vor.u32 %v1849_v15, %v1607_v16  ;;  %v1375_v1 = vld [vmem:[%s2824_s1 + $0x1a8] sm:$0xf0]  ;;  %v1841_v2 = vld [vmem:[%s2824_s1 + $0x334] sm:$0xf] }
  0x55   :  { %1042 = vmatpush.bf16.msra.mxu1 %v1194_v21  ;;  %v1298_v21 = vor.u32 %v1771_v5, %v1295_v6  ;;  %v1807_v5 = vld [vmem:[%s2824_s1 + $0x224] sm:$0xf]  ;;  %v1439_v6 = vld [vmem:[%s2824_s1 + $0x228] sm:$0xf0]  ;;  %v1789_v15 = vld [vmem:[%s2824_s1 + $0x194] sm:$0xf] }
  0x56   :  { %1055 = vmatpush.bf16.msra.mxu2 %v1258_v24  ;;  %v1410_v24 = vor.u32 %v1799_v9, %v1407_v14  ;;  %v1823_v9 = vld [vmem:[%s2824_s1 + $0x2a4] sm:$0xf]  ;;  %v1442_v16 = vor.u32 %v1807_v5, %v1439_v6  ;;  %v1703_v5 = vld [vmem:[%s2824_s1 + $0x438] sm:$0xf0] }
  0x57   :  { %1068 = vmatpush.bf16.msra.mxu3 %v1322_v27  ;;  %v1474_v27 = vor.u32 %v1815_v19, %v1471_v20  ;;  %v1839_v19 = vld [vmem:[%s2824_s1 + $0x324] sm:$0xf]  ;;  %v1567_v20 = vld [vmem:[%s2824_s1 + $0x328] sm:$0xf0] }
  0x58   :  { %1030 = vmatpush.bf16.msra.mxu0 %v1694_v30  ;;  %v1599_v30 = vld [vmem:[%s2824_s1 + $0x368] sm:$0xf0] }
  0x59   :  { %1043 = vmatpush.bf16.msra.mxu1 %v1186_v33  ;;  %v1463_v33 = vld [vmem:[%s2824_s1 + $0x258] sm:$0xf0]  ;;  %v1602_v37 = vor.u32 %v1847_v29, %v1599_v30  ;;  %v1359_v29 = vld [vmem:[%s2824_s1 + $0x188] sm:$0xf0]  ;;  %v1803_v30 = vld [vmem:[%s2824_s1 + $0x204] sm:$0xf] }
  0x5a   :  { %1056 = vmatpush.bf16.msra.mxu2 %v1250_v36  ;;  %v1402_v36 = vor.u32 %v1797_v26, %v1399_v28  ;;  %v1787_v28 = vld [vmem:[%s2824_s1 + $0x184] sm:$0xf] }
  0x5b   :  { %1069 = vmatpush.bf16.msra.mxu3 %v1314_v41  ;;  %v1466_v41 = vor.u32 %v1813_v32, %v1463_v33  ;;  %v1423_v32 = vld [vmem:[%s2824_s1 + $0x208] sm:$0xf0]  ;;  %v1837_v33 = vld [vmem:[%s2824_s1 + $0x314] sm:$0xf] }
  0x5c   :  { %1031 = vmatpush.bf16.msra.mxu0 %v1686_v46  ;;  %v1811_v46 = vld [vmem:[%s2824_s1 + $0x244] sm:$0xf] }
  0x5d   :  { %1044 = vmatpush.bf16.msra.mxu1 %v1178_v51  ;;  %v1458_v53 = vor.u32 %v1811_v46, %v1455_v47  ;;  %v1426_v46 = vor.u32 %v1803_v30, %v1423_v32 }
  0x5e   :  { %1057 = vmatpush.bf16.msra.mxu2 %v1242_v55  ;;  %v1583_v55 = vld [vmem:[%s2824_s1 + $0x348] sm:$0xf0] }
  0x5f   :  { %1070 = vmatpush.bf16.msra.mxu3 %v1306_v59  ;;  %v1825_v59 = vld [vmem:[%s2824_s1 + $0x2b4] sm:$0xf]  ;;  %v1586_v62 = vor.u32 %v1843_v54, %v1583_v55  ;;  %v1727_v54 = vld [vmem:[%s2824_s1 + $0x468] sm:$0xf0] }
  0x60   :  { %1032 = vmatpush.bf16.msra.mxu0 %v1678_v0  ;;  %v1450_v0 = vor.u32 %v1809_v57, %v1447_v58  ;;  %v1861_v58 = vld [vmem:[%s2824_s1 + $0x3d4] sm:$0xf] }
  0x61   :  { %1045 = vmatpush.bf16.msra.mxu1 %v1170_v3  ;;  %v1575_v3 = vld [vmem:[%s2824_s1 + $0x338] sm:$0xf0] }
  0x62   :  { %1058 = vmatpush.bf16.msra.mxu2 %v1234_v11  ;;  %v1378_v11 = vor.u32 %v1791_v63, %v1375_v1  ;;  %v1578_v14 = vor.u32 %v1841_v2, %v1575_v3  ;;  %v1857_v3 = vld [vmem:[%s2824_s1 + $0x3b4] sm:$0xf] }
  0x63   :  { %1033 = vmatmul.bf16.vlgmr.msra.gmra.mxu0 %v2548_v17  ;;  %1071 = vmatpush.bf16.msra.mxu3 %v1298_v21 }
  0x64   :  { %1077 = vmatpush.bf16.msrb.mxu0 %v1418_v4  ;;  %1046 = vmatmul.bf16.vlgmr.msra.gmra.mxu1 %v2183_v12  ;;  %v1591_v12 = vld [vmem:[%s2824_s1 + $0x358] sm:$0xf0]  ;;  %v1514_v4 = vor.u32 %v1825_v59, %v1511_v60  ;;  %v1877_v60 = vld [vmem:[%s2824_s1 + $0x454] sm:$0xf] }
  0x65   :  { %1090 = vmatpush.bf16.msrb.mxu1 %v1482_v10  ;;  %1059 = vmatmul.bf16.vlgmr.msra.gmra.mxu2 %v2185_v13  ;;  %v1519_v13 = vld [vmem:[%s2824_s1 + $0x2c8] sm:$0xf0]  ;;  %v1594_v51 = vor.u32 %v1845_v43, %v1591_v12  ;;  %v1362_v12 = vor.u32 %v1787_v28, %v1359_v29  ;;  %v1655_v59 = vld [vmem:[%s2824_s1 + $0x3d8] sm:$0xf0] }
  0x66   :  { %1103 = vmatpush.bf16.msrb.mxu2 %v1546_v18  ;;  %1072 = vmatmul.bf16.vlgmr.msra.gmra.mxu3 %v2173_v7  ;;  %v1383_v7 = vld [vmem:[%s2824_s1 + $0x1b8] sm:$0xf0]  ;;  %v1522_v56 = vor.u32 %v1827_v48, %v1519_v13  ;;  %v1503_v10 = vld [vmem:[%s2824_s1 + $0x2a8] sm:$0xf0]  ;;  %v1835_v48 = vld [vmem:[%s2824_s1 + $0x304] sm:$0xf] }
  0x67   :  { %1116 = vmatpush.bf16.msrb.mxu3 %v1610_v25  ;;  %v1386_v61 = vor.u32 %v1793_v52, %v1383_v7  ;;  %v1367_v18 = vld [vmem:[%s2824_s1 + $0x198] sm:$0xf0]  ;;  %v1506_v21 = vor.u32 %v1823_v9, %v1503_v10  ;;  %v1487_v43 = vld [vmem:[%s2824_s1 + $0x288] sm:$0xf0]  ;;  %v1863_v52 = vld [vmem:[%s2824_s1 + $0x3e4] sm:$0xf] }
  0x68   :  { %1078 = vmatpush.bf16.msrb.mxu0 %v1410_v24  ;;  %v1821_v24 = vld [vmem:[%s2824_s1 + $0x294] sm:$0xf]  ;;  %v1495_v25 = vld [vmem:[%s2824_s1 + $0x298] sm:$0xf0]  ;;  %v1370_v26 = vor.u32 %v1789_v15, %v1367_v18  ;;  %v1551_v13 = vld [vmem:[%s2824_s1 + $0x308] sm:$0xf0] }
  0x69   :  { %1091 = vmatpush.bf16.msrb.mxu1 %v1474_v27  ;;  %v1570_v27 = vor.u32 %v1839_v19, %v1567_v20  ;;  %v1498_v35 = vor.u32 %v1821_v24, %v1495_v25  ;;  %v1879_v7 = vld [vmem:[%s2824_s1 + $0x464] sm:$0xf]  ;;  %v1554_v55 = vor.u32 %v1835_v48, %v1551_v13  ;;  %v1695_v15 = vld [vmem:[%s2824_s1 + $0x428] sm:$0xf0]  ;;  %v1853_v19 = vld [vmem:[%s2824_s1 + $0x394] sm:$0xf] }
  0x6a   :  { %1104 = vmatpush.bf16.msrb.mxu2 %v1538_v31  ;;  %v1434_v31 = vor.u32 %v1805_v22, %v1431_v23  ;;  %v1730_v57 = vor.u32 %v1879_v7, %v1727_v54  ;;  %v1855_v10 = vld [vmem:[%s2824_s1 + $0x3a4] sm:$0xf]  ;;  %v1623_v20 = vld [vmem:[%s2824_s1 + $0x398] sm:$0xf0]  ;;  %v1679_v28 = vld [vmem:[%s2824_s1 + $0x408] sm:$0xf0] }
  0x6b   :  { %1117 = vmatpush.bf16.msrb.mxu3 %v1602_v37  ;;  %v1671_v37 = vld [vmem:[%s2824_s1 + $0x3f8] sm:$0xf0]  ;;  %v1626_v23 = vor.u32 %v1853_v19, %v1623_v20  ;;  %v1851_v25 = vld [vmem:[%s2824_s1 + $0x384] sm:$0xf] }
  0x6c   :  { %1079 = vmatpush.bf16.msrb.mxu0 %v1402_v36  ;;  %v1865_v36 = vld [vmem:[%s2824_s1 + $0x3f4] sm:$0xf]  ;;  %v1687_v22 = vld [vmem:[%s2824_s1 + $0x418] sm:$0xf0] }
  0x6d   :  { %1092 = vmatpush.bf16.msrb.mxu1 %v1466_v41  ;;  %v1735_v41 = vld [vmem:[%s2824_s1 + $0x478] sm:$0xf0]  ;;  %v1674_v47 = vor.u32 %v1865_v36, %v1671_v37 }
  0x6e   :  { %1105 = vmatpush.bf16.msrb.mxu2 %v1530_v45  ;;  %v1562_v45 = vor.u32 %v1837_v33, %v1559_v34 }
  0x6f   :  { %1118 = vmatpush.bf16.msrb.mxu3 %v1594_v51  ;;  %v1490_v51 = vor.u32 %v1819_v42, %v1487_v43 }
  0x70   :  { %1080 = vmatpush.bf16.msrb.mxu0 %v1394_v49  ;;  %v1738_v49 = vor.u32 %v1881_v39, %v1735_v41 }
  0x71   :  { %1093 = vmatpush.bf16.msrb.mxu1 %v1458_v53  ;;  %v1663_v53 = vld [vmem:[%s2824_s1 + $0x3e8] sm:$0xf0] }
  0x72   :  { %1106 = vmatpush.bf16.msrb.mxu2 %v1522_v56  ;;  %v1666_v56 = vor.u32 %v1863_v52, %v1663_v53 }
  0x73   :  { %1119 = vmatpush.bf16.msrb.mxu3 %v1586_v62  ;;  %v1658_v62 = vor.u32 %v1861_v58, %v1655_v59 }
  0x74   :  { %1081 = vmatpush.bf16.msrb.mxu0 %v1386_v61  ;;  %v1719_v61 = vld [vmem:[%s2824_s1 + $0x458] sm:$0xf0] }
  0x75   :  { %1094 = vmatpush.bf16.msrb.mxu1 %v1450_v0  ;;  %v1722_v63 = vor.u32 %v1877_v60, %v1719_v61  ;;  %v1647_v0 = vld [vmem:[%s2824_s1 + $0x3c8] sm:$0xf0] }
  0x76   :  { %1107 = vmatpush.bf16.msrb.mxu2 %v1514_v4  ;;  %v1873_v4 = vld [vmem:[%s2824_s1 + $0x434] sm:$0xf] }
  0x77   :  { %1120 = vmatpush.bf16.msrb.mxu3 %v1578_v14  ;;  %v1706_v9 = vor.u32 %v1873_v4, %v1703_v5  ;;  %v1871_v14 = vld [vmem:[%s2824_s1 + $0x424] sm:$0xf] }
  0x78   :  { %1082 = vmatpush.bf16.msrb.mxu0 %v1378_v11  ;;  %v1631_v11 = vld [vmem:[%s2824_s1 + $0x3a8] sm:$0xf0]  ;;  %v1698_v18 = vor.u32 %v1871_v14, %v1695_v15 }
  0x79   :  { %1095 = vmatpush.bf16.msrb.mxu1 %v1442_v16  ;;  %v1634_v16 = vor.u32 %v1855_v10, %v1631_v11 }
  0x7a   :  { %1108 = vmatpush.bf16.msrb.mxu2 %v1506_v21  ;;  %v1869_v21 = vld [vmem:[%s2824_s1 + $0x414] sm:$0xf] }
  0x7b   :  { %1121 = vmatpush.bf16.msrb.mxu3 %v1570_v27  ;;  %v1690_v24 = vor.u32 %v1869_v21, %v1687_v22  ;;  %v1867_v27 = vld [vmem:[%s2824_s1 + $0x404] sm:$0xf] }
  0x7c   :  { %1083 = vmatpush.bf16.msrb.mxu0 %v1370_v26  ;;  %v1615_v26 = vld [vmem:[%s2824_s1 + $0x388] sm:$0xf0]  ;;  %v1682_v30 = vor.u32 %v1867_v27, %v1679_v28 }
  0x7d   :  { %1096 = vmatpush.bf16.msrb.mxu1 %v1434_v31  ;;  %v1618_v29 = vor.u32 %v1851_v25, %v1615_v26  ;;  %v163_v31 = vld [vmem:[%s2826_s2] sm:$0x3] }
  0x7e   :  { %1109 = vmatpush.bf16.msrb.mxu2 %v1498_v35  ;;  %v165_v32 = vperm.slane %v163_v31, 0 }
  0x7f   :  { %1122 = vmatpush.bf16.msrb.mxu3 %v1562_v45 }
  0x80   :  { %1084 = vmatpush.bf16.msrb.mxu0 %v1362_v12 }
  0x81   :  { %1097 = vmatpush.bf16.msrb.mxu1 %v1426_v46 }
  0x82   :  { %1110 = vmatpush.bf16.msrb.mxu2 %v1490_v51 }
  0x83   :  { %1085 = vmatmul.bf16.vlgmr.msrb.gmra.mxu0 %v2175_v8  ;;  %1123 = vmatpush.bf16.msrb.mxu3 %v1554_v55  ;;  %v1859_v8 = vld [vmem:[%s2824_s1 + $0x3c4] sm:$0xf] }
  0x84   :  { %1129 = vmatpush.bf16.msra.mxu0 %v1674_v47  ;;  %1098 = vmatmul.bf16.vlgmr.msrb.gmra.mxu1 %v2353_v38  ;;  %v1875_v38 = vld [vmem:[%s2824_s1 + $0x444] sm:$0xf]  ;;  %v1650_v1 = vor.u32 %v1859_v8, %v1647_v0  ;;  %v166_v8 = vperm.slane %v163_v31, 1 }
  0x85   :  { %1142 = vmatpush.bf16.msra.mxu1 %v1738_v49  ;;  %1111 = vmatmul.bf16.vlgmr.msrb.gmra.mxu2 %v2377_v50  ;;  %v1711_v50 = vld [vmem:[%s2824_s1 + $0x448] sm:$0xf0] }
  0x86   :  { %1124 = vmatmul.bf16.vlgmr.msrb.gmra.mxu3 %v2355_v40  ;;  %v1714_v2 = vor.u32 %v1875_v38, %v1711_v50  ;;  %v1639_v40 = vld [vmem:[%s2824_s1 + $0x3b8] sm:$0xf0] }
  0x87   :  { %v1642_v6 = vor.u32 %v1857_v3, %v1639_v40 }
  0x88   :  { %1130 = vmatpush.bf16.msra.mxu0 %v1666_v56 }
  0x89   :  { %1143 = vmatpush.bf16.msra.mxu1 %v1730_v57 }
  0x8c   :  { %1131 = vmatpush.bf16.msra.mxu0 %v1658_v62 }
  0x8d   :  { %1144 = vmatpush.bf16.msra.mxu1 %v1722_v63 }
  0x90   :  { %1132 = vmatpush.bf16.msra.mxu0 %v1650_v1 }
  0x91   :  { %1145 = vmatpush.bf16.msra.mxu1 %v1714_v2 }
  0x94   :  { %1133 = vmatpush.bf16.msra.mxu0 %v1642_v6 }
  0x95   :  { %1146 = vmatpush.bf16.msra.mxu1 %v1706_v9 }
  0x98   :  { %1134 = vmatpush.bf16.msra.mxu0 %v1634_v16 }
  0x99   :  { %1147 = vmatpush.bf16.msra.mxu1 %v1698_v18 }
  0x9c   :  { %1135 = vmatpush.bf16.msra.mxu0 %v1626_v23 }
  0x9d   :  { %1148 = vmatpush.bf16.msra.mxu1 %v1690_v24 }
  0xa0   :  { %1136 = vmatpush.bf16.msra.mxu0 %v1618_v29  ;;  %v930_v34 = vpop.f32.mrf.mxu0 }
  0xa1   :  { %1149 = vmatpush.bf16.msra.mxu1 %v1682_v30  ;;  %v943_v33 = vpop.f32.mrf.mxu1  ;;  %v931_v35 = vadd.f32 %v930_v34, %v165_v32 }
  0xa3   :  { %1137 = vmatmul.bf16.vlgmr.msra.gmra.mxu0 %v2363_v44  ;;  %v944_v36 = vadd.f32 %v943_v33, %v931_v35 }
  0xa4   :  { %1150 = vmatmul.bf16.vlgmr.msra.gmra.mxu1 %v2548_v17 }
  0xa8   :  { %v956_v39 = vpop.f32.mrf.mxu2  ;;  %v932_v12 = vpop.f32.mrf.mxu0 }
  0xa9   :  { %v969_v37 = vpop.f32.mrf.mxu3  ;;  %v957_v41 = vadd.f32 %v956_v39, %v944_v36  ;;  %v945_v43 = vpop.f32.mrf.mxu1 }
  0xab   :  { %v970_v42 = vadd.f32 %v969_v37, %v957_v41 }
  0xb0   :  { %v958_v46 = vpop.f32.mrf.mxu2 }
  0xb1   :  { %v971_v45 = vpop.f32.mrf.mxu3 }
  0xc0   :  { %v982_v44 = vpop.f32.mrf.mxu0 }
  0xc1   :  { %v983_v47 = vadd.f32 %v982_v44, %v970_v42  ;;  %v995_v17 = vpop.f32.mrf.mxu1 }
  0xc3   :  { %v996_v48 = vadd.f32 %v995_v17, %v983_v47 }
  0xc8   :  { %v1008_v13 = vpop.f32.mrf.mxu2  ;;  %v984_v52 = vpop.f32.mrf.mxu0 }
  0xc9   :  { %v1009_v49 = vadd.f32 %v1008_v13, %v996_v48  ;;  %v1021_v51 = vpop.f32.mrf.mxu3  ;;  %v997_v7 = vpop.f32.mrf.mxu1 }
  0xcb   :  { %v1022_v53 = vadd.f32 %v1021_v51, %v1009_v49 }
  0xd0   :  { %v1010_v54 = vpop.f32.mrf.mxu2 }
  0xd1   :  { %v1023_v55 = vpop.f32.mrf.mxu3 }
  0xe0   :  { %v1034_v56 = vpop.f32.mrf.mxu0 }
  0xe1   :  { %v1047_v57 = vpop.f32.mrf.mxu1  ;;  %v1035_v18 = vadd.f32 %v1034_v56, %v1022_v53 }
  0xe2   :  { %v1048_v50 = vadd.f32 %v1047_v57, %v166_v8 }
  0xe3   :  { %v1155_v22 = vmax.f32 %v1035_v18, 0.0 }
  0xe8   :  { %v1036_v58 = vpop.f32.mrf.mxu0  ;;  %v1060_v59 = vpop.f32.mrf.mxu2 }
  0xe9   :  { %v1049_v60 = vpop.f32.mrf.mxu1  ;;  %v1073_v61 = vpop.f32.mrf.mxu3  ;;  %v1061_v1 = vadd.f32 %v1060_v59, %v1048_v50 }
  0xeb   :  { %v1074_v5 = vadd.f32 %v1073_v61, %v1061_v1 }
  0xf0   :  { %v1062_v62 = vpop.f32.mrf.mxu2 }
  0xf1   :  { %v1075_v63 = vpop.f32.mrf.mxu3 }
 0x100   :  { %v1086_v0 = vpop.f32.mrf.mxu0 }
 0x101   :  { %v1099_v38 = vpop.f32.mrf.mxu1  ;;  %v1087_v6 = vadd.f32 %v1086_v0, %v1074_v5 }
 0x103   :  { %v1100_v11 = vadd.f32 %v1099_v38, %v1087_v6 }
 0x108   :  { %v1112_v2 = vpop.f32.mrf.mxu2  ;;  %v1088_v3 = vpop.f32.mrf.mxu0 }
 0x109   :  { %v1101_v40 = vpop.f32.mrf.mxu1  ;;  %v1125_v4 = vpop.f32.mrf.mxu3  ;;  %v1113_v14 = vadd.f32 %v1112_v2, %v1100_v11 }
 0x10b   :  { %v1126_v15 = vadd.f32 %v1125_v4, %v1113_v14 }
 0x110   :  { %v1114_v9 = vpop.f32.mrf.mxu2 }
 0x111   :  { %v1127_v10 = vpop.f32.mrf.mxu3 }
 0x120   :  { %v1138_v16 = vpop.f32.mrf.mxu0 }
 0x121   :  { %v1139_v19 = vadd.f32 %v1138_v16, %v1126_v15  ;;  %v1151_v20 = vpop.f32.mrf.mxu1 }
 0x123   :  { %v1152_v21 = vadd.f32 %v1151_v20, %v1139_v19 }
 0x125   :  { %v1156_v23 = vmax.f32 %v1152_v21, 0.0 }
 0x127   :  { %v1157_v24 = vpack.c.bf16 %v1156_v23, %v1155_v22 }
 0x128   :  { %v1140_v25 = vpop.f32.mrf.mxu0 }
 0x129   :  { %1158 = vst [vmem:[%s2827_s3] sm:$0xff] %v1157_v24  ;;  %v1153_v26 = vpop.f32.mrf.mxu1 }

// kernel: align_net_forward.20
= control target key start
LH: loop header
LB: loop body
LE: loop exit
PB: predicated region body
PF: predicated region fallthrough
CT: control target
= control target key end

     0   :  { %s2689_s1 = inlined_call_operand.vmem [shape: bf16[2304,128], index: 1, kind: input, shape index: {}]   ;;  %s2690_s0 = inlined_call_operand.vmem [shape: bf16[8,2304], index: 0, kind: input, shape index: {}]   ;;  %s2691_s2 = inlined_call_operand.vmem [shape: f32[1,128], index: 2, kind: input, shape index: {}]   ;;  %s2692_s3 = inlined_call_operand.vmem [shape: bf16[8,128], index: 3, kind: output, shape index: {}]  }
   0x1   :  { %v2066_v0 = vld [vmem:[%s2689_s1 + $0x38] sm:$0xff]  ;;  %v2065_v4 = vld [vmem:[%s2689_s1 + $0x30] sm:$0xff]  ;;  %v2064_v8 = vld [vmem:[%s2689_s1 + $0x28] sm:$0xff] }
   0x2   :  { %v2074_v1 = vld [vmem:[%s2689_s1 + $0x78] sm:$0xff]  ;;  %1242 = vmatpush.bf16.msra.mxu0 %v2066_v0  ;;  %v2073_v5 = vld [vmem:[%s2689_s1 + $0x70] sm:$0xff]  ;;  %v2072_v9 = vld [vmem:[%s2689_s1 + $0x68] sm:$0xff] }
   0x3   :  { %v2082_v2 = vld [vmem:[%s2689_s1 + $0xb8] sm:$0xff]  ;;  %1255 = vmatpush.bf16.msra.mxu1 %v2074_v1  ;;  %v2081_v6 = vld [vmem:[%s2689_s1 + $0xb0] sm:$0xff]  ;;  %v2080_v10 = vld [vmem:[%s2689_s1 + $0xa8] sm:$0xff] }
   0x4   :  { %v2090_v3 = vld [vmem:[%s2689_s1 + $0xf8] sm:$0xff]  ;;  %1268 = vmatpush.bf16.msra.mxu2 %v2082_v2  ;;  %v2089_v7 = vld [vmem:[%s2689_s1 + $0xf0] sm:$0xff]  ;;  %v2088_v11 = vld [vmem:[%s2689_s1 + $0xe8] sm:$0xff] }
   0x5   :  { %1281 = vmatpush.bf16.msra.mxu3 %v2090_v3  ;;  %v2063_v12 = vld [vmem:[%s2689_s1 + $0x20] sm:$0xff]  ;;  %v2062_v16 = vld [vmem:[%s2689_s1 + $0x18] sm:$0xff]  ;;  %v2061_v20 = vld [vmem:[%s2689_s1 + $0x10] sm:$0xff] }
   0x6   :  { %1243 = vmatpush.bf16.msra.mxu0 %v2065_v4  ;;  %v2071_v13 = vld [vmem:[%s2689_s1 + $0x60] sm:$0xff]  ;;  %v2070_v17 = vld [vmem:[%s2689_s1 + $0x58] sm:$0xff]  ;;  %v2069_v21 = vld [vmem:[%s2689_s1 + $0x50] sm:$0xff] }
   0x7   :  { %1256 = vmatpush.bf16.msra.mxu1 %v2073_v5  ;;  %v2079_v14 = vld [vmem:[%s2689_s1 + $0xa0] sm:$0xff]  ;;  %v2078_v18 = vld [vmem:[%s2689_s1 + $0x98] sm:$0xff]  ;;  %v2077_v22 = vld [vmem:[%s2689_s1 + $0x90] sm:$0xff] }
   0x8   :  { %1269 = vmatpush.bf16.msra.mxu2 %v2081_v6  ;;  %v2087_v15 = vld [vmem:[%s2689_s1 + $0xe0] sm:$0xff]  ;;  %v2086_v19 = vld [vmem:[%s2689_s1 + $0xd8] sm:$0xff]  ;;  %v2085_v23 = vld [vmem:[%s2689_s1 + $0xd0] sm:$0xff] }
   0x9   :  { %1282 = vmatpush.bf16.msra.mxu3 %v2089_v7  ;;  %v2060_v24 = vld [vmem:[%s2689_s1 + $0x8] sm:$0xff]  ;;  %v14_v26 = vld [vmem:[%s2690_s0] sm:$0xff]  ;;  %v2098_v35 = vld [vmem:[%s2689_s1 + $0x138] sm:$0xff] }
   0xa   :  { %1244 = vmatpush.bf16.msra.mxu0 %v2064_v8  ;;  %v2068_v25 = vld [vmem:[%s2689_s1 + $0x48] sm:$0xff]  ;;  %v324_v30 = vunpack.c.l.b16 %v14_v26  ;;  %v2059_v31 = vld [vmem:[%s2689_s1] sm:$0xff]  ;;  %v325_v36 = vunpack.c.h.b16 %v14_v26  ;;  %v2106_v37 = vld [vmem:[%s2689_s1 + $0x178] sm:$0xff] }
   0xb   :  { %1257 = vmatpush.bf16.msra.mxu1 %v2072_v9  ;;  %v2076_v27 = vld [vmem:[%s2689_s1 + $0x88] sm:$0xff]  ;;  %v2067_v32 = vld [vmem:[%s2689_s1 + $0x40] sm:$0xff]  ;;  %v2114_v38 = vld [vmem:[%s2689_s1 + $0x1b8] sm:$0xff] }
   0xc   :  { %1270 = vmatpush.bf16.msra.mxu2 %v2080_v10  ;;  %v2084_v28 = vld [vmem:[%s2689_s1 + $0xc8] sm:$0xff]  ;;  %v2075_v34 = vld [vmem:[%s2689_s1 + $0x80] sm:$0xff]  ;;  %v342_v40 = vpack.c.b16 %v324_v30, %v324_v30  ;;  %v2122_v42 = vld [vmem:[%s2689_s1 + $0x1f8] sm:$0xff]  ;;  %v343_v45 = vpack.c.b16 %v325_v36, %v325_v36 }
   0xd   :  { %1283 = vmatpush.bf16.msra.mxu3 %v2088_v11  ;;  %v15_v29 = vld [vmem:[%s2690_s0 + $0x8] sm:$0xff]  ;;  %v2083_v39 = vld [vmem:[%s2689_s1 + $0xc0] sm:$0xff]  ;;  %v2097_v44 = vld [vmem:[%s2689_s1 + $0x130] sm:$0xff] }
   0xe   :  { %1245 = vmatpush.bf16.msra.mxu0 %v2063_v12  ;;  %v326_v33 = vunpack.c.l.b16 %v15_v29  ;;  %v327_v41 = vunpack.c.h.b16 %v15_v29  ;;  %v2105_v46 = vld [vmem:[%s2689_s1 + $0x170] sm:$0xff]  ;;  %v2096_v50 = vld [vmem:[%s2689_s1 + $0x128] sm:$0xff]  ;;  %v2095_v54 = vld [vmem:[%s2689_s1 + $0x120] sm:$0xff] }
   0xf   :  { %1258 = vmatpush.bf16.msra.mxu1 %v2071_v13  ;;  %v2113_v47 = vld [vmem:[%s2689_s1 + $0x1b0] sm:$0xff]  ;;  %v2104_v51 = vld [vmem:[%s2689_s1 + $0x168] sm:$0xff]  ;;  %v2103_v55 = vld [vmem:[%s2689_s1 + $0x160] sm:$0xff] }
  0x10   :  { %1271 = vmatpush.bf16.msra.mxu2 %v2079_v14  ;;  %v344_v43 = vpack.c.b16 %v326_v33, %v326_v33  ;;  %v345_v48 = vpack.c.b16 %v327_v41, %v327_v41  ;;  %v2121_v49 = vld [vmem:[%s2689_s1 + $0x1f0] sm:$0xff]  ;;  %v2112_v52 = vld [vmem:[%s2689_s1 + $0x1a8] sm:$0xff]  ;;  %v2111_v56 = vld [vmem:[%s2689_s1 + $0x1a0] sm:$0xff] }
  0x11   :  { %1284 = vmatpush.bf16.msra.mxu3 %v2087_v15  ;;  %v2120_v53 = vld [vmem:[%s2689_s1 + $0x1e8] sm:$0xff]  ;;  %v2119_v57 = vld [vmem:[%s2689_s1 + $0x1e0] sm:$0xff]  ;;  %v2094_v58 = vld [vmem:[%s2689_s1 + $0x118] sm:$0xff] }
  0x12   :  { %1246 = vmatpush.bf16.msra.mxu0 %v2062_v16  ;;  %v2102_v59 = vld [vmem:[%s2689_s1 + $0x158] sm:$0xff]  ;;  %v2093_v62 = vld [vmem:[%s2689_s1 + $0x110] sm:$0xff]  ;;  %v2092_v2 = vld [vmem:[%s2689_s1 + $0x108] sm:$0xff] }
  0x13   :  { %1259 = vmatpush.bf16.msra.mxu1 %v2070_v17  ;;  %v2110_v60 = vld [vmem:[%s2689_s1 + $0x198] sm:$0xff]  ;;  %v2101_v63 = vld [vmem:[%s2689_s1 + $0x150] sm:$0xff]  ;;  %v2100_v3 = vld [vmem:[%s2689_s1 + $0x148] sm:$0xff] }
  0x14   :  { %1272 = vmatpush.bf16.msra.mxu2 %v2078_v18  ;;  %v2118_v61 = vld [vmem:[%s2689_s1 + $0x1d8] sm:$0xff]  ;;  %v2109_v0 = vld [vmem:[%s2689_s1 + $0x190] sm:$0xff]  ;;  %v2108_v4 = vld [vmem:[%s2689_s1 + $0x188] sm:$0xff] }
  0x15   :  { %1285 = vmatpush.bf16.msra.mxu3 %v2086_v19  ;;  %v2117_v1 = vld [vmem:[%s2689_s1 + $0x1d0] sm:$0xff]  ;;  %v17_v5 = vld [vmem:[%s2690_s0 + $0x18] sm:$0xff]  ;;  %v2116_v7 = vld [vmem:[%s2689_s1 + $0x1c8] sm:$0xff] }
  0x16   :  { %1247 = vmatpush.bf16.msra.mxu0 %v2061_v20  ;;  %v16_v6 = vld [vmem:[%s2690_s0 + $0x10] sm:$0xff]  ;;  %v2091_v8 = vld [vmem:[%s2689_s1 + $0x100] sm:$0xff]  ;;  %v330_v9 = vunpack.c.l.b16 %v17_v5  ;;  %v2130_v14 = vld [vmem:[%s2689_s1 + $0x238] sm:$0xff]  ;;  %v331_v18 = vunpack.c.h.b16 %v17_v5 }
  0x17   :  { %1260 = vmatpush.bf16.msra.mxu1 %v2069_v21  ;;  %v2099_v10 = vld [vmem:[%s2689_s1 + $0x140] sm:$0xff]  ;;  %v328_v12 = vunpack.c.l.b16 %v16_v6  ;;  %v329_v13 = vunpack.c.h.b16 %v16_v6  ;;  %v2138_v15 = vld [vmem:[%s2689_s1 + $0x278] sm:$0xff]  ;;  %v2136_v29 = vld [vmem:[%s2689_s1 + $0x268] sm:$0xff] }
  0x18   :  { %1273 = vmatpush.bf16.msra.mxu2 %v2077_v22  ;;  %v2107_v11 = vld [vmem:[%s2689_s1 + $0x180] sm:$0xff]  ;;  %v2146_v16 = vld [vmem:[%s2689_s1 + $0x2b8] sm:$0xff]  ;;  %v348_v20 = vpack.c.b16 %v330_v9, %v330_v9  ;;  %v349_v26 = vpack.c.b16 %v331_v18, %v331_v18  ;;  %v2144_v30 = vld [vmem:[%s2689_s1 + $0x2a8] sm:$0xff] }
  0x19   :  { %1286 = vmatpush.bf16.msra.mxu3 %v2085_v23  ;;  %v2115_v17 = vld [vmem:[%s2689_s1 + $0x1c0] sm:$0xff]  ;;  %v2154_v19 = vld [vmem:[%s2689_s1 + $0x2f8] sm:$0xff]  ;;  %v346_v21 = vpack.c.b16 %v328_v12, %v328_v12  ;;  %v347_v22 = vpack.c.b16 %v329_v13, %v329_v13  ;;  %v2129_v23 = vld [vmem:[%s2689_s1 + $0x230] sm:$0xff] }
  0x1a   :  { %1248 = vmatpush.bf16.msra.mxu0 %v2060_v24  ;;  %v2137_v24 = vld [vmem:[%s2689_s1 + $0x270] sm:$0xff]  ;;  %v2135_v33 = vld [vmem:[%s2689_s1 + $0x260] sm:$0xff]  ;;  %v2126_v36 = vld [vmem:[%s2689_s1 + $0x218] sm:$0xff] }
  0x1b   :  { %1261 = vmatpush.bf16.msra.mxu1 %v2068_v25  ;;  %v2145_v25 = vld [vmem:[%s2689_s1 + $0x2b0] sm:$0xff]  ;;  %v2160_v6 = vld [vmem:[%s2689_s1 + $0x328] sm:$0xff]  ;;  %v2175_v12 = vld [vmem:[%s2689_s1 + $0x3a0] sm:$0xff] }
  0x1c   :  { %1274 = vmatpush.bf16.msra.mxu2 %v2076_v27  ;;  %v2153_v27 = vld [vmem:[%s2689_s1 + $0x2f0] sm:$0xff]  ;;  %v2184_v9 = vld [vmem:[%s2689_s1 + $0x3e8] sm:$0xff]  ;;  %v2183_v13 = vld [vmem:[%s2689_s1 + $0x3e0] sm:$0xff] }
  0x1d   :  { %1287 = vmatpush.bf16.msra.mxu3 %v2084_v28  ;;  %v2128_v28 = vld [vmem:[%s2689_s1 + $0x228] sm:$0xff]  ;;  %v2133_v41 = vld [vmem:[%s2689_s1 + $0x250] sm:$0xff] }
  0x1e   :  { %1249 = vmatpush.bf16.msra.mxu0 %v2059_v31  ;;  %v2152_v31 = vld [vmem:[%s2689_s1 + $0x2e8] sm:$0xff]  ;;  %v2185_v5 = vld [vmem:[%s2689_s1 + $0x3f0] sm:$0xff] }
  0x1f   :  { %1262 = vmatpush.bf16.msra.mxu1 %v2067_v32  ;;  %v2127_v32 = vld [vmem:[%s2689_s1 + $0x220] sm:$0xff]  ;;  %v2157_v18 = vld [vmem:[%s2689_s1 + $0x310] sm:$0xff] }
  0x20   :  { %1275 = vmatpush.bf16.msra.mxu2 %v2075_v34  ;;  %v2143_v34 = vld [vmem:[%s2689_s1 + $0x2a0] sm:$0xff] }
  0x21   :  { %1288 = vmatpush.bf16.msra.mxu3 %v2083_v39  ;;  %1250 = vmatmul.bf16.vlgmr.msra.gmra.mxu0 %v342_v40  ;;  %v2150_v39 = vld [vmem:[%s2689_s1 + $0x2d8] sm:$0xff]  ;;  %v2125_v40 = vld [vmem:[%s2689_s1 + $0x210] sm:$0xff] }
  0x22   :  { %1294 = vmatpush.bf16.msrb.mxu0 %v2098_v35  ;;  %1263 = vmatmul.bf16.vlgmr.msra.gmra.mxu1 %v343_v45  ;;  %v2151_v35 = vld [vmem:[%s2689_s1 + $0x2e0] sm:$0xff]  ;;  %v2132_v45 = vld [vmem:[%s2689_s1 + $0x248] sm:$0xff] }
  0x23   :  { %1307 = vmatpush.bf16.msrb.mxu1 %v2106_v37  ;;  %1276 = vmatmul.bf16.vlgmr.msra.gmra.mxu2 %v344_v43  ;;  %v2134_v37 = vld [vmem:[%s2689_s1 + $0x258] sm:$0xff]  ;;  %v2149_v43 = vld [vmem:[%s2689_s1 + $0x2d0] sm:$0xff] }
  0x24   :  { %1320 = vmatpush.bf16.msrb.mxu2 %v2114_v38  ;;  %1289 = vmatmul.bf16.vlgmr.msra.gmra.mxu3 %v345_v48  ;;  %v2142_v38 = vld [vmem:[%s2689_s1 + $0x298] sm:$0xff]  ;;  %v19_v48 = vld [vmem:[%s2690_s0 + $0x28] sm:$0xff] }
  0x25   :  { %1333 = vmatpush.bf16.msrb.mxu3 %v2122_v42  ;;  %v2141_v42 = vld [vmem:[%s2689_s1 + $0x290] sm:$0xff] }
  0x26   :  { %1295 = vmatpush.bf16.msrb.mxu0 %v2097_v44  ;;  %v2124_v44 = vld [vmem:[%s2689_s1 + $0x208] sm:$0xff] }
  0x27   :  { %1308 = vmatpush.bf16.msrb.mxu1 %v2105_v46  ;;  %v18_v46 = vld [vmem:[%s2690_s0 + $0x20] sm:$0xff] }
  0x28   :  { %1321 = vmatpush.bf16.msrb.mxu2 %v2113_v47  ;;  %v2140_v47 = vld [vmem:[%s2689_s1 + $0x288] sm:$0xff] }
  0x29   :  { %1334 = vmatpush.bf16.msrb.mxu3 %v2121_v49  ;;  %v2148_v49 = vld [vmem:[%s2689_s1 + $0x2c8] sm:$0xff] }
  0x2a   :  { %1296 = vmatpush.bf16.msrb.mxu0 %v2096_v50  ;;  %v332_v50 = vunpack.c.l.b16 %v18_v46 }
  0x2b   :  { %1309 = vmatpush.bf16.msrb.mxu1 %v2104_v51  ;;  %v2123_v51 = vld [vmem:[%s2689_s1 + $0x200] sm:$0xff] }
  0x2c   :  { %1322 = vmatpush.bf16.msrb.mxu2 %v2112_v52  ;;  %v2131_v52 = vld [vmem:[%s2689_s1 + $0x240] sm:$0xff] }
  0x2d   :  { %1335 = vmatpush.bf16.msrb.mxu3 %v2120_v53  ;;  %v334_v53 = vunpack.c.l.b16 %v19_v48 }
  0x2e   :  { %1297 = vmatpush.bf16.msrb.mxu0 %v2095_v54  ;;  %v2139_v54 = vld [vmem:[%s2689_s1 + $0x280] sm:$0xff] }
  0x2f   :  { %1310 = vmatpush.bf16.msrb.mxu1 %v2103_v55  ;;  %v2162_v55 = vld [vmem:[%s2689_s1 + $0x338] sm:$0xff] }
  0x30   :  { %1323 = vmatpush.bf16.msrb.mxu2 %v2111_v56  ;;  %v333_v56 = vunpack.c.h.b16 %v18_v46  ;;  %v2191_v46 = vld [vmem:[%s2689_s1 + $0x420] sm:$0xff] }
  0x31   :  { %1336 = vmatpush.bf16.msrb.mxu3 %v2119_v57  ;;  %v2170_v57 = vld [vmem:[%s2689_s1 + $0x378] sm:$0xff] }
  0x32   :  { %1298 = vmatpush.bf16.msrb.mxu0 %v2094_v58  ;;  %v2178_v58 = vld [vmem:[%s2689_s1 + $0x3b8] sm:$0xff] }
  0x33   :  { %1311 = vmatpush.bf16.msrb.mxu1 %v2102_v59  ;;  %v335_v59 = vunpack.c.h.b16 %v19_v48  ;;  %v2190_v48 = vld [vmem:[%s2689_s1 + $0x418] sm:$0xff] }
  0x34   :  { %1324 = vmatpush.bf16.msrb.mxu2 %v2110_v60  ;;  %v2147_v60 = vld [vmem:[%s2689_s1 + $0x2c0] sm:$0xff] }
  0x35   :  { %1337 = vmatpush.bf16.msrb.mxu3 %v2118_v61  ;;  %v350_v61 = vpack.c.b16 %v332_v50, %v332_v50  ;;  %v2189_v50 = vld [vmem:[%s2689_s1 + $0x410] sm:$0xff] }
  0x36   :  { %1299 = vmatpush.bf16.msrb.mxu0 %v2093_v62  ;;  %v352_v62 = vpack.c.b16 %v334_v53, %v334_v53  ;;  %v22_v53 = vld [vmem:[%s2690_s0 + $0x40] sm:$0xff] }
  0x37   :  { %1312 = vmatpush.bf16.msrb.mxu1 %v2101_v63  ;;  %v2186_v63 = vld [vmem:[%s2689_s1 + $0x3f8] sm:$0xff] }
  0x38   :  { %1325 = vmatpush.bf16.msrb.mxu2 %v2109_v0  ;;  %v351_v0 = vpack.c.b16 %v333_v56, %v333_v56  ;;  %v2187_v56 = vld [vmem:[%s2689_s1 + $0x400] sm:$0xff] }
  0x39   :  { %1338 = vmatpush.bf16.msrb.mxu3 %v2117_v1  ;;  %v2161_v1 = vld [vmem:[%s2689_s1 + $0x330] sm:$0xff] }
  0x3a   :  { %1300 = vmatpush.bf16.msrb.mxu0 %v2092_v2  ;;  %v353_v2 = vpack.c.b16 %v335_v59, %v335_v59 }
  0x3b   :  { %1313 = vmatpush.bf16.msrb.mxu1 %v2100_v3  ;;  %v2169_v3 = vld [vmem:[%s2689_s1 + $0x370] sm:$0xff] }
  0x3c   :  { %1326 = vmatpush.bf16.msrb.mxu2 %v2108_v4  ;;  %v2177_v4 = vld [vmem:[%s2689_s1 + $0x3b0] sm:$0xff] }
  0x3d   :  { %1339 = vmatpush.bf16.msrb.mxu3 %v2116_v7  ;;  %v2168_v7 = vld [vmem:[%s2689_s1 + $0x368] sm:$0xff] }
  0x3e   :  { %1301 = vmatpush.bf16.msrb.mxu0 %v2091_v8  ;;  %v2176_v8 = vld [vmem:[%s2689_s1 + $0x3a8] sm:$0xff] }
  0x3f   :  { %1314 = vmatpush.bf16.msrb.mxu1 %v2099_v10  ;;  %v2159_v10 = vld [vmem:[%s2689_s1 + $0x320] sm:$0xff] }
  0x40   :  { %1327 = vmatpush.bf16.msrb.mxu2 %v2107_v11  ;;  %v2167_v11 = vld [vmem:[%s2689_s1 + $0x360] sm:$0xff] }
  0x41   :  { %1340 = vmatpush.bf16.msrb.mxu3 %v2115_v17  ;;  %1302 = vmatmul.bf16.vlgmr.msrb.gmra.mxu0 %v346_v21  ;;  %v2182_v17 = vld [vmem:[%s2689_s1 + $0x3d8] sm:$0xff]  ;;  %v2181_v21 = vld [vmem:[%s2689_s1 + $0x3d0] sm:$0xff] }
  0x42   :  { %1346 = vmatpush.bf16.msra.mxu0 %v2130_v14  ;;  %1315 = vmatmul.bf16.vlgmr.msrb.gmra.mxu1 %v347_v22  ;;  %v2158_v14 = vld [vmem:[%s2689_s1 + $0x318] sm:$0xff]  ;;  %v2156_v22 = vld [vmem:[%s2689_s1 + $0x308] sm:$0xff] }
  0x43   :  { %1359 = vmatpush.bf16.msra.mxu1 %v2138_v15  ;;  %1328 = vmatmul.bf16.vlgmr.msrb.gmra.mxu2 %v348_v20  ;;  %v2166_v15 = vld [vmem:[%s2689_s1 + $0x358] sm:$0xff]  ;;  %v2173_v20 = vld [vmem:[%s2689_s1 + $0x390] sm:$0xff] }
  0x44   :  { %1372 = vmatpush.bf16.msra.mxu2 %v2146_v16  ;;  %1341 = vmatmul.bf16.vlgmr.msrb.gmra.mxu3 %v349_v26  ;;  %v2174_v16 = vld [vmem:[%s2689_s1 + $0x398] sm:$0xff] }
  0x45   :  { %1385 = vmatpush.bf16.msra.mxu3 %v2154_v19  ;;  %v2165_v19 = vld [vmem:[%s2689_s1 + $0x350] sm:$0xff]  ;;  %v21_v26 = vld [vmem:[%s2690_s0 + $0x38] sm:$0xff] }
  0x46   :  { %1347 = vmatpush.bf16.msra.mxu0 %v2129_v23  ;;  %v20_v23 = vld [vmem:[%s2690_s0 + $0x30] sm:$0xff] }
  0x47   :  { %1360 = vmatpush.bf16.msra.mxu1 %v2137_v24  ;;  %v2164_v24 = vld [vmem:[%s2689_s1 + $0x348] sm:$0xff] }
  0x48   :  { %1373 = vmatpush.bf16.msra.mxu2 %v2145_v25  ;;  %v2172_v25 = vld [vmem:[%s2689_s1 + $0x388] sm:$0xff] }
  0x49   :  { %1386 = vmatpush.bf16.msra.mxu3 %v2153_v27  ;;  %v2180_v27 = vld [vmem:[%s2689_s1 + $0x3c8] sm:$0xff] }
  0x4a   :  { %1348 = vmatpush.bf16.msra.mxu0 %v2128_v28  ;;  %v336_v28 = vunpack.c.l.b16 %v20_v23 }
  0x4b   :  { %1361 = vmatpush.bf16.msra.mxu1 %v2136_v29  ;;  %v2155_v29 = vld [vmem:[%s2689_s1 + $0x300] sm:$0xff] }
  0x4c   :  { %1374 = vmatpush.bf16.msra.mxu2 %v2144_v30  ;;  %v337_v30 = vunpack.c.h.b16 %v20_v23 }
  0x4d   :  { %1387 = vmatpush.bf16.msra.mxu3 %v2152_v31  ;;  %v2163_v31 = vld [vmem:[%s2689_s1 + $0x340] sm:$0xff] }
  0x4e   :  { %1349 = vmatpush.bf16.msra.mxu0 %v2127_v32  ;;  %v2194_v32 = vld [vmem:[%s2689_s1 + $0x438] sm:$0xff] }
  0x4f   :  { %1362 = vmatpush.bf16.msra.mxu1 %v2135_v33  ;;  %v338_v33 = vunpack.c.l.b16 %v21_v26 }
  0x50   :  { %1375 = vmatpush.bf16.msra.mxu2 %v2143_v34  ;;  %v2171_v34 = vld [vmem:[%s2689_s1 + $0x380] sm:$0xff] }
  0x51   :  { %1388 = vmatpush.bf16.msra.mxu3 %v2151_v35  ;;  %v2202_v35 = vld [vmem:[%s2689_s1 + $0x478] sm:$0xff] }
  0x52   :  { %1350 = vmatpush.bf16.msra.mxu0 %v2126_v36  ;;  %v339_v36 = vunpack.c.h.b16 %v21_v26 }
  0x53   :  { %1363 = vmatpush.bf16.msra.mxu1 %v2134_v37  ;;  %v2179_v37 = vld [vmem:[%s2689_s1 + $0x3c0] sm:$0xff] }
  0x54   :  { %1376 = vmatpush.bf16.msra.mxu2 %v2142_v38  ;;  %v354_v38 = vpack.c.b16 %v336_v28, %v336_v28 }
  0x55   :  { %1389 = vmatpush.bf16.msra.mxu3 %v2150_v39  ;;  %v355_v39 = vpack.c.b16 %v337_v30, %v337_v30 }
  0x56   :  { %1351 = vmatpush.bf16.msra.mxu0 %v2125_v40  ;;  %v356_v40 = vpack.c.b16 %v338_v33, %v338_v33 }
  0x57   :  { %1364 = vmatpush.bf16.msra.mxu1 %v2133_v41  ;;  %v2193_v41 = vld [vmem:[%s2689_s1 + $0x430] sm:$0xff] }
  0x58   :  { %1377 = vmatpush.bf16.msra.mxu2 %v2141_v42  ;;  %v357_v42 = vpack.c.b16 %v339_v36, %v339_v36 }
  0x59   :  { %1390 = vmatpush.bf16.msra.mxu3 %v2149_v43  ;;  %v2201_v43 = vld [vmem:[%s2689_s1 + $0x470] sm:$0xff] }
  0x5a   :  { %1352 = vmatpush.bf16.msra.mxu0 %v2124_v44  ;;  %v2192_v44 = vld [vmem:[%s2689_s1 + $0x428] sm:$0xff] }
  0x5b   :  { %1365 = vmatpush.bf16.msra.mxu1 %v2132_v45  ;;  %v2200_v45 = vld [vmem:[%s2689_s1 + $0x468] sm:$0xff] }
  0x5c   :  { %1378 = vmatpush.bf16.msra.mxu2 %v2140_v47  ;;  %v2199_v47 = vld [vmem:[%s2689_s1 + $0x460] sm:$0xff] }
  0x5d   :  { %1391 = vmatpush.bf16.msra.mxu3 %v2148_v49  ;;  %v2198_v49 = vld [vmem:[%s2689_s1 + $0x458] sm:$0xff] }
  0x5e   :  { %1353 = vmatpush.bf16.msra.mxu0 %v2123_v51  ;;  %v2197_v51 = vld [vmem:[%s2689_s1 + $0x450] sm:$0xff] }
  0x5f   :  { %1366 = vmatpush.bf16.msra.mxu1 %v2131_v52  ;;  %v2188_v52 = vld [vmem:[%s2689_s1 + $0x408] sm:$0xff] }
  0x60   :  { %1379 = vmatpush.bf16.msra.mxu2 %v2139_v54  ;;  %v2196_v54 = vld [vmem:[%s2689_s1 + $0x448] sm:$0xff] }
  0x61   :  { %1392 = vmatpush.bf16.msra.mxu3 %v2147_v60  ;;  %1354 = vmatmul.bf16.vlgmr.msra.gmra.mxu0 %v350_v61  ;;  %v2203_v61 = vld [vmem:[%s2691_s2] ss:$0 sm:$0xff] }
  0x62   :  { %1398 = vmatpush.bf16.msrb.mxu0 %v2162_v55  ;;  %1367 = vmatmul.bf16.vlgmr.msra.gmra.mxu1 %v351_v0  ;;  %v340_v55 = vunpack.c.l.b16 %v22_v53 }
  0x63   :  { %1411 = vmatpush.bf16.msrb.mxu1 %v2170_v57  ;;  %1380 = vmatmul.bf16.vlgmr.msra.gmra.mxu2 %v352_v62  ;;  %v341_v57 = vunpack.c.h.b16 %v22_v53 }
  0x64   :  { %1424 = vmatpush.bf16.msrb.mxu2 %v2178_v58  ;;  %1393 = vmatmul.bf16.vlgmr.msra.gmra.mxu3 %v353_v2  ;;  %v2195_v58 = vld [vmem:[%s2689_s1 + $0x440] sm:$0xff]  ;;  %v358_v59 = vpack.c.b16 %v340_v55, %v340_v55 }
  0x65   :  { %1437 = vmatpush.bf16.msrb.mxu3 %v2186_v63  ;;  %v359_v60 = vpack.c.b16 %v341_v57, %v341_v57 }
  0x66   :  { %1399 = vmatpush.bf16.msrb.mxu0 %v2161_v1 }
  0x67   :  { %1412 = vmatpush.bf16.msrb.mxu1 %v2169_v3 }
  0x68   :  { %1425 = vmatpush.bf16.msrb.mxu2 %v2177_v4 }
  0x69   :  { %1438 = vmatpush.bf16.msrb.mxu3 %v2185_v5 }
  0x6a   :  { %1400 = vmatpush.bf16.msrb.mxu0 %v2160_v6 }
  0x6b   :  { %1413 = vmatpush.bf16.msrb.mxu1 %v2168_v7 }
  0x6c   :  { %1426 = vmatpush.bf16.msrb.mxu2 %v2176_v8 }
  0x6d   :  { %1439 = vmatpush.bf16.msrb.mxu3 %v2184_v9 }
  0x6e   :  { %1401 = vmatpush.bf16.msrb.mxu0 %v2159_v10 }
  0x6f   :  { %1414 = vmatpush.bf16.msrb.mxu1 %v2167_v11 }
  0x70   :  { %1427 = vmatpush.bf16.msrb.mxu2 %v2175_v12 }
  0x71   :  { %1440 = vmatpush.bf16.msrb.mxu3 %v2183_v13 }
  0x72   :  { %1402 = vmatpush.bf16.msrb.mxu0 %v2158_v14 }
  0x73   :  { %1415 = vmatpush.bf16.msrb.mxu1 %v2166_v15 }
  0x74   :  { %1428 = vmatpush.bf16.msrb.mxu2 %v2174_v16 }
  0x75   :  { %1441 = vmatpush.bf16.msrb.mxu3 %v2182_v17 }
  0x76   :  { %1403 = vmatpush.bf16.msrb.mxu0 %v2157_v18 }
  0x77   :  { %1416 = vmatpush.bf16.msrb.mxu1 %v2165_v19 }
  0x78   :  { %1429 = vmatpush.bf16.msrb.mxu2 %v2173_v20 }
  0x79   :  { %1442 = vmatpush.bf16.msrb.mxu3 %v2181_v21 }
  0x7a   :  { %1404 = vmatpush.bf16.msrb.mxu0 %v2156_v22 }
  0x7b   :  { %1417 = vmatpush.bf16.msrb.mxu1 %v2164_v24 }
  0x7c   :  { %1430 = vmatpush.bf16.msrb.mxu2 %v2172_v25 }
  0x7d   :  { %1443 = vmatpush.bf16.msrb.mxu3 %v2180_v27 }
  0x7e   :  { %1405 = vmatpush.bf16.msrb.mxu0 %v2155_v29 }
  0x7f   :  { %1418 = vmatpush.bf16.msrb.mxu1 %v2163_v31 }
  0x80   :  { %1431 = vmatpush.bf16.msrb.mxu2 %v2171_v34 }
  0x81   :  { %1444 = vmatpush.bf16.msrb.mxu3 %v2179_v37  ;;  %1406 = vmatmul.bf16.vlgmr.msrb.gmra.mxu0 %v354_v38 }
  0x82   :  { %1450 = vmatpush.bf16.msra.mxu0 %v2194_v32  ;;  %1419 = vmatmul.bf16.vlgmr.msrb.gmra.mxu1 %v355_v39 }
  0x83   :  { %1463 = vmatpush.bf16.msra.mxu1 %v2202_v35  ;;  %1432 = vmatmul.bf16.vlgmr.msrb.gmra.mxu2 %v356_v40 }
  0x84   :  { %1445 = vmatmul.bf16.vlgmr.msrb.gmra.mxu3 %v357_v42 }
  0x86   :  { %1451 = vmatpush.bf16.msra.mxu0 %v2193_v41 }
  0x87   :  { %1464 = vmatpush.bf16.msra.mxu1 %v2201_v43 }
  0x8a   :  { %1452 = vmatpush.bf16.msra.mxu0 %v2192_v44 }
  0x8b   :  { %1465 = vmatpush.bf16.msra.mxu1 %v2200_v45 }
  0x8e   :  { %1453 = vmatpush.bf16.msra.mxu0 %v2191_v46 }
  0x8f   :  { %1466 = vmatpush.bf16.msra.mxu1 %v2199_v47 }
  0x92   :  { %1454 = vmatpush.bf16.msra.mxu0 %v2190_v48 }
  0x93   :  { %1467 = vmatpush.bf16.msra.mxu1 %v2198_v49 }
  0x96   :  { %1455 = vmatpush.bf16.msra.mxu0 %v2189_v50 }
  0x97   :  { %1468 = vmatpush.bf16.msra.mxu1 %v2197_v51 }
  0x9a   :  { %1456 = vmatpush.bf16.msra.mxu0 %v2188_v52 }
  0x9b   :  { %1469 = vmatpush.bf16.msra.mxu1 %v2196_v54 }
  0x9e   :  { %1457 = vmatpush.bf16.msra.mxu0 %v2187_v56  ;;  %v1251_v62 = vpop.f32.mrf.mxu0 }
  0x9f   :  { %1470 = vmatpush.bf16.msra.mxu1 %v2195_v58  ;;  %v1252_v63 = vadd.f32 %v2203_v61, %v1251_v62  ;;  %v1264_v0 = vpop.f32.mrf.mxu1 }
  0xa1   :  { %1458 = vmatmul.bf16.vlgmr.msra.gmra.mxu0 %v358_v59  ;;  %v1265_v1 = vadd.f32 %v1264_v0, %v1252_v63 }
  0xa2   :  { %1471 = vmatmul.bf16.vlgmr.msra.gmra.mxu1 %v359_v60 }
  0xa6   :  { %v1277_v2 = vpop.f32.mrf.mxu2  ;;  %v1253_v4 = vpop.f32.mrf.mxu0 }
  0xa7   :  { %v1278_v3 = vadd.f32 %v1277_v2, %v1265_v1  ;;  %v1290_v5 = vpop.f32.mrf.mxu3  ;;  %v1266_v6 = vpop.f32.mrf.mxu1 }
  0xa9   :  { %v1291_v7 = vadd.f32 %v1290_v5, %v1278_v3 }
  0xae   :  { %v1279_v8 = vpop.f32.mrf.mxu2 }
  0xaf   :  { %v1292_v9 = vpop.f32.mrf.mxu3 }
  0xbe   :  { %v1303_v10 = vpop.f32.mrf.mxu0 }
  0xbf   :  { %v1316_v11 = vpop.f32.mrf.mxu1  ;;  %v1304_v26 = vadd.f32 %v1303_v10, %v1291_v7 }
  0xc1   :  { %v1317_v27 = vadd.f32 %v1316_v11, %v1304_v26 }
  0xc6   :  { %v1329_v12 = vpop.f32.mrf.mxu2  ;;  %v1305_v14 = vpop.f32.mrf.mxu0 }
  0xc7   :  { %v1342_v13 = vpop.f32.mrf.mxu3  ;;  %v1318_v15 = vpop.f32.mrf.mxu1  ;;  %v1330_v28 = vadd.f32 %v1329_v12, %v1317_v27 }
  0xc9   :  { %v1343_v31 = vadd.f32 %v1342_v13, %v1330_v28 }
  0xce   :  { %v1331_v16 = vpop.f32.mrf.mxu2 }
  0xcf   :  { %v1344_v17 = vpop.f32.mrf.mxu3 }
  0xde   :  { %v1355_v18 = vpop.f32.mrf.mxu0 }
  0xdf   :  { %v1368_v19 = vpop.f32.mrf.mxu1  ;;  %v1356_v32 = vadd.f32 %v1355_v18, %v1343_v31 }
  0xe1   :  { %v1369_v37 = vadd.f32 %v1368_v19, %v1356_v32 }
  0xe6   :  { %v1381_v20 = vpop.f32.mrf.mxu2  ;;  %v1357_v21 = vpop.f32.mrf.mxu0 }
  0xe7   :  { %v1394_v22 = vpop.f32.mrf.mxu3  ;;  %v1370_v23 = vpop.f32.mrf.mxu1  ;;  %v1382_v38 = vadd.f32 %v1381_v20, %v1369_v37 }
  0xe9   :  { %v1395_v39 = vadd.f32 %v1394_v22, %v1382_v38 }
  0xee   :  { %v1383_v24 = vpop.f32.mrf.mxu2 }
  0xef   :  { %v1396_v25 = vpop.f32.mrf.mxu3 }
  0xfe   :  { %v1407_v29 = vpop.f32.mrf.mxu0 }
  0xff   :  { %v1420_v30 = vpop.f32.mrf.mxu1  ;;  %v1408_v42 = vadd.f32 %v1407_v29, %v1395_v39 }
 0x101   :  { %v1421_v43 = vadd.f32 %v1420_v30, %v1408_v42 }
 0x106   :  { %v1433_v33 = vpop.f32.mrf.mxu2  ;;  %v1409_v34 = vpop.f32.mrf.mxu0 }
 0x107   :  { %v1446_v35 = vpop.f32.mrf.mxu3  ;;  %v1422_v36 = vpop.f32.mrf.mxu1  ;;  %v1434_v44 = vadd.f32 %v1433_v33, %v1421_v43 }
 0x109   :  { %v1447_v45 = vadd.f32 %v1446_v35, %v1434_v44 }
 0x10e   :  { %v1435_v40 = vpop.f32.mrf.mxu2 }
 0x10f   :  { %v1448_v41 = vpop.f32.mrf.mxu3 }
 0x11e   :  { %v1459_v46 = vpop.f32.mrf.mxu0 }
 0x11f   :  { %v1460_v47 = vadd.f32 %v1459_v46, %v1447_v45  ;;  %v1472_v48 = vpop.f32.mrf.mxu1 }
 0x121   :  { %v1473_v49 = vadd.f32 %v1472_v48, %v1460_v47 }
 0x123   :  { %v1476_v50 = vmax.f32 %v1473_v49, 0.0 }
 0x125   :  { %v1477_v51 = vpack.c.bf16 %v1476_v50, %v1476_v50 }
 0x126   :  { %v1461_v52 = vpop.f32.mrf.mxu0 }
 0x127   :  { %1478 = vst [vmem:[%s2692_s3] sm:$0xf] %v1477_v51  ;;  %v1474_v53 = vpop.f32.mrf.mxu1 }

// kernel: align_net_forward.21
= control target key start
LH: loop header
LB: loop body
LE: loop exit
PB: predicated region body
PF: predicated region fallthrough
CT: control target
= control target key end

     0   :  { %s1716_s1 = inlined_call_operand.vmem [shape: bf16[1152,128], index: 1, kind: input, shape index: {}]   ;;  %s1717_s0 = inlined_call_operand.vmem [shape: bf16[32,1152], index: 0, kind: input, shape index: {}]   ;;  %s1718_s2 = inlined_call_operand.vmem [shape: f32[1,128], index: 2, kind: input, shape index: {}]   ;;  %s1719_s3 = inlined_call_operand.vmem [shape: bf16[32,128], index: 3, kind: output, shape index: {}]  }
   0x1   :  { %v1278_v0 = vld [vmem:[%s1716_s1 + $0x38] sm:$0xff]  ;;  %v1277_v4 = vld [vmem:[%s1716_s1 + $0x30] sm:$0xff]  ;;  %v1276_v8 = vld [vmem:[%s1716_s1 + $0x28] sm:$0xff] }
   0x2   :  { %v1286_v1 = vld [vmem:[%s1716_s1 + $0x78] sm:$0xff]  ;;  %706 = vmatpush.bf16.msra.mxu0 %v1278_v0  ;;  %v1285_v5 = vld [vmem:[%s1716_s1 + $0x70] sm:$0xff]  ;;  %v1284_v9 = vld [vmem:[%s1716_s1 + $0x68] sm:$0xff] }
   0x3   :  { %v1294_v2 = vld [vmem:[%s1716_s1 + $0xb8] sm:$0xff]  ;;  %725 = vmatpush.bf16.msra.mxu1 %v1286_v1  ;;  %v1293_v6 = vld [vmem:[%s1716_s1 + $0xb0] sm:$0xff]  ;;  %v1292_v10 = vld [vmem:[%s1716_s1 + $0xa8] sm:$0xff] }
   0x4   :  { %v1302_v3 = vld [vmem:[%s1716_s1 + $0xf8] sm:$0xff]  ;;  %744 = vmatpush.bf16.msra.mxu2 %v1294_v2  ;;  %v1301_v7 = vld [vmem:[%s1716_s1 + $0xf0] sm:$0xff]  ;;  %v1300_v11 = vld [vmem:[%s1716_s1 + $0xe8] sm:$0xff] }
   0x5   :  { %763 = vmatpush.bf16.msra.mxu3 %v1302_v3  ;;  %v1275_v12 = vld [vmem:[%s1716_s1 + $0x20] sm:$0xff]  ;;  %v1274_v16 = vld [vmem:[%s1716_s1 + $0x18] sm:$0xff]  ;;  %v1273_v20 = vld [vmem:[%s1716_s1 + $0x10] sm:$0xff] }
   0x6   :  { %707 = vmatpush.bf16.msra.mxu0 %v1277_v4  ;;  %v1283_v13 = vld [vmem:[%s1716_s1 + $0x60] sm:$0xff]  ;;  %v1282_v17 = vld [vmem:[%s1716_s1 + $0x58] sm:$0xff]  ;;  %v1281_v21 = vld [vmem:[%s1716_s1 + $0x50] sm:$0xff] }
   0x7   :  { %726 = vmatpush.bf16.msra.mxu1 %v1285_v5  ;;  %v1291_v14 = vld [vmem:[%s1716_s1 + $0xa0] sm:$0xff]  ;;  %v1290_v18 = vld [vmem:[%s1716_s1 + $0x98] sm:$0xff]  ;;  %v1289_v22 = vld [vmem:[%s1716_s1 + $0x90] sm:$0xff] }
   0x8   :  { %745 = vmatpush.bf16.msra.mxu2 %v1293_v6  ;;  %v1299_v15 = vld [vmem:[%s1716_s1 + $0xe0] sm:$0xff]  ;;  %v1298_v19 = vld [vmem:[%s1716_s1 + $0xd8] sm:$0xff]  ;;  %v1297_v23 = vld [vmem:[%s1716_s1 + $0xd0] sm:$0xff] }
   0x9   :  { %764 = vmatpush.bf16.msra.mxu3 %v1301_v7  ;;  %v1272_v24 = vld [vmem:[%s1716_s1 + $0x8] sm:$0xff]  ;;  %v1271_v28 = vld [vmem:[%s1716_s1] sm:$0xff]  ;;  %v905_v39 = vld [vmem:[%s1717_s0 + $0x2c] sm:$0xf0] }
   0xa   :  { %708 = vmatpush.bf16.msra.mxu0 %v1276_v8  ;;  %v1280_v25 = vld [vmem:[%s1716_s1 + $0x48] sm:$0xff]  ;;  %v1279_v29 = vld [vmem:[%s1716_s1 + $0x40] sm:$0xff]  ;;  %v1310_v40 = vld [vmem:[%s1716_s1 + $0x138] sm:$0xff] }
   0xb   :  { %727 = vmatpush.bf16.msra.mxu1 %v1284_v9  ;;  %v1288_v26 = vld [vmem:[%s1716_s1 + $0x88] sm:$0xff]  ;;  %v1287_v30 = vld [vmem:[%s1716_s1 + $0x80] sm:$0xff]  ;;  %v1318_v41 = vld [vmem:[%s1716_s1 + $0x178] sm:$0xff] }
   0xc   :  { %746 = vmatpush.bf16.msra.mxu2 %v1292_v10  ;;  %v1296_v27 = vld [vmem:[%s1716_s1 + $0xc8] sm:$0xff]  ;;  %v1295_v31 = vld [vmem:[%s1716_s1 + $0xc0] sm:$0xff]  ;;  %v1326_v46 = vld [vmem:[%s1716_s1 + $0x1b8] sm:$0xff] }
   0xd   :  { %765 = vmatpush.bf16.msra.mxu3 %v1300_v11  ;;  %v895_v32 = vld [vmem:[%s1717_s0] sm:$0xf]  ;;  %v1257_v33 = vld [vmem:[%s1717_s0 + $0x20] sm:$0xf0]  ;;  %v897_v35 = vld [vmem:[%s1717_s0 + $0x24] sm:$0xf0] }
   0xe   :  { %709 = vmatpush.bf16.msra.mxu0 %v1275_v12  ;;  %v1253_v34 = vld [vmem:[%s1717_s0 + $0x4] sm:$0xf]  ;;  %v903_v36 = vld [vmem:[%s1717_s0 + $0x8] sm:$0xf]  ;;  %v1258_v37 = vld [vmem:[%s1717_s0 + $0x28] sm:$0xf0]  ;;  %v896_v42 = vor.u32 %v1257_v33, %v895_v32 }
   0xf   :  { %728 = vmatpush.bf16.msra.mxu1 %v1283_v13  ;;  %v1254_v38 = vld [vmem:[%s1717_s0 + $0xc] sm:$0xf]  ;;  %v900_v43 = vor.u32 %v1253_v34, %v897_v35  ;;  %v904_v44 = vor.u32 %v1258_v37, %v903_v36  ;;  %v1334_v47 = vld [vmem:[%s1716_s1 + $0x1f8] sm:$0xff]  ;;  %v1309_v48 = vld [vmem:[%s1716_s1 + $0x130] sm:$0xff] }
  0x10   :  { %747 = vmatpush.bf16.msra.mxu2 %v1291_v14  ;;  %v908_v45 = vor.u32 %v1254_v38, %v905_v39  ;;  %v1317_v49 = vld [vmem:[%s1716_s1 + $0x170] sm:$0xff]  ;;  %v1308_v52 = vld [vmem:[%s1716_s1 + $0x128] sm:$0xff]  ;;  %v1307_v56 = vld [vmem:[%s1716_s1 + $0x120] sm:$0xff] }
  0x11   :  { %766 = vmatpush.bf16.msra.mxu3 %v1299_v15  ;;  %v1325_v50 = vld [vmem:[%s1716_s1 + $0x1b0] sm:$0xff]  ;;  %v1316_v53 = vld [vmem:[%s1716_s1 + $0x168] sm:$0xff]  ;;  %v1315_v57 = vld [vmem:[%s1716_s1 + $0x160] sm:$0xff] }
  0x12   :  { %710 = vmatpush.bf16.msra.mxu0 %v1274_v16  ;;  %v1333_v51 = vld [vmem:[%s1716_s1 + $0x1f0] sm:$0xff]  ;;  %v1324_v54 = vld [vmem:[%s1716_s1 + $0x1a8] sm:$0xff]  ;;  %v1323_v58 = vld [vmem:[%s1716_s1 + $0x1a0] sm:$0xff] }
  0x13   :  { %729 = vmatpush.bf16.msra.mxu1 %v1282_v17  ;;  %v1332_v55 = vld [vmem:[%s1716_s1 + $0x1e8] sm:$0xff]  ;;  %v1331_v59 = vld [vmem:[%s1716_s1 + $0x1e0] sm:$0xff]  ;;  %v933_v63 = vld [vmem:[%s1717_s0 + $0x6c] sm:$0xf0] }
  0x14   :  { %748 = vmatpush.bf16.msra.mxu2 %v1290_v18  ;;  %v931_v60 = vld [vmem:[%s1717_s0 + $0x48] sm:$0xf]  ;;  %v1266_v61 = vld [vmem:[%s1717_s0 + $0x68] sm:$0xf0]  ;;  %v939_v0 = vld [vmem:[%s1717_s0 + $0x50] sm:$0xf] }
  0x15   :  { %767 = vmatpush.bf16.msra.mxu3 %v1298_v19  ;;  %v1262_v62 = vld [vmem:[%s1717_s0 + $0x4c] sm:$0xf]  ;;  %v1267_v1 = vld [vmem:[%s1717_s0 + $0x70] sm:$0xf0]  ;;  %v941_v3 = vld [vmem:[%s1717_s0 + $0x74] sm:$0xf0]  ;;  %v932_v6 = vor.u32 %v1266_v61, %v931_v60 }
  0x16   :  { %711 = vmatpush.bf16.msra.mxu0 %v1273_v20  ;;  %v1263_v2 = vld [vmem:[%s1717_s0 + $0x54] sm:$0xf]  ;;  %v1306_v4 = vld [vmem:[%s1716_s1 + $0x118] sm:$0xff]  ;;  %v936_v7 = vor.u32 %v1262_v62, %v933_v63  ;;  %v940_v8 = vor.u32 %v1267_v1, %v939_v0  ;;  %v1304_v16 = vld [vmem:[%s1716_s1 + $0x108] sm:$0xff] }
  0x17   :  { %730 = vmatpush.bf16.msra.mxu1 %v1281_v21  ;;  %v1314_v5 = vld [vmem:[%s1716_s1 + $0x158] sm:$0xff]  ;;  %v944_v9 = vor.u32 %v1263_v2, %v941_v3  ;;  %v1305_v12 = vld [vmem:[%s1716_s1 + $0x110] sm:$0xff]  ;;  %v1312_v17 = vld [vmem:[%s1716_s1 + $0x148] sm:$0xff] }
  0x18   :  { %749 = vmatpush.bf16.msra.mxu2 %v1289_v22  ;;  %v1322_v10 = vld [vmem:[%s1716_s1 + $0x198] sm:$0xff]  ;;  %v1313_v13 = vld [vmem:[%s1716_s1 + $0x150] sm:$0xff]  ;;  %v1320_v18 = vld [vmem:[%s1716_s1 + $0x188] sm:$0xff] }
  0x19   :  { %768 = vmatpush.bf16.msra.mxu3 %v1297_v23  ;;  %v1330_v11 = vld [vmem:[%s1716_s1 + $0x1d8] sm:$0xff]  ;;  %v1321_v14 = vld [vmem:[%s1716_s1 + $0x190] sm:$0xff]  ;;  %v1328_v19 = vld [vmem:[%s1716_s1 + $0x1c8] sm:$0xff] }
  0x1a   :  { %712 = vmatpush.bf16.msra.mxu0 %v1272_v24  ;;  %v1329_v15 = vld [vmem:[%s1716_s1 + $0x1d0] sm:$0xff]  ;;  %v1303_v20 = vld [vmem:[%s1716_s1 + $0x100] sm:$0xff]  ;;  %v1340_v38 = vld [vmem:[%s1716_s1 + $0x228] sm:$0xff] }
  0x1b   :  { %731 = vmatpush.bf16.msra.mxu1 %v1280_v25  ;;  %v1311_v21 = vld [vmem:[%s1716_s1 + $0x140] sm:$0xff]  ;;  %v911_v24 = vld [vmem:[%s1717_s0 + $0x10] sm:$0xf]  ;;  %v1259_v25 = vld [vmem:[%s1717_s0 + $0x30] sm:$0xf0] }
  0x1c   :  { %750 = vmatpush.bf16.msra.mxu2 %v1288_v26  ;;  %v1319_v22 = vld [vmem:[%s1716_s1 + $0x180] sm:$0xff]  ;;  %v1342_v26 = vld [vmem:[%s1716_s1 + $0x238] sm:$0xff]  ;;  %v912_v33 = vor.u32 %v1259_v25, %v911_v24  ;;  %v1341_v37 = vld [vmem:[%s1716_s1 + $0x230] sm:$0xff] }
  0x1d   :  { %769 = vmatpush.bf16.msra.mxu3 %v1296_v27  ;;  %v1327_v23 = vld [vmem:[%s1716_s1 + $0x1c0] sm:$0xff]  ;;  %v1255_v27 = vld [vmem:[%s1717_s0 + $0x14] sm:$0xf] }
  0x1e   :  { %713 = vmatpush.bf16.msra.mxu0 %v1271_v28  ;;  %v913_v28 = vld [vmem:[%s1717_s0 + $0x34] sm:$0xf0]  ;;  %v921_v32 = vld [vmem:[%s1717_s0 + $0x3c] sm:$0xf0] }
  0x1f   :  { %732 = vmatpush.bf16.msra.mxu1 %v1279_v29  ;;  %v919_v29 = vld [vmem:[%s1717_s0 + $0x18] sm:$0xf]  ;;  %v916_v34 = vor.u32 %v1255_v27, %v913_v28  ;;  %v1339_v39 = vld [vmem:[%s1716_s1 + $0x220] sm:$0xff] }
  0x20   :  { %751 = vmatpush.bf16.msra.mxu2 %v1287_v30  ;;  %v1260_v30 = vld [vmem:[%s1717_s0 + $0x38] sm:$0xf0] }
  0x21   :  { %770 = vmatpush.bf16.msra.mxu3 %v1295_v31  ;;  %714 = vmatmul.bf16.vlgmr.msra.gmra.mxu0 %v896_v42  ;;  %v1256_v31 = vld [vmem:[%s1717_s0 + $0x1c] sm:$0xf]  ;;  %v920_v35 = vor.u32 %v1260_v30, %v919_v29 }
  0x22   :  { %782 = vmatpush.bf16.msrb.mxu0 %v1310_v40  ;;  %733 = vmatmul.bf16.vlgmr.msra.gmra.mxu1 %v900_v43  ;;  %v924_v36 = vor.u32 %v1256_v31, %v921_v32  ;;  %v947_v40 = vld [vmem:[%s1717_s0 + $0x58] sm:$0xf]  ;;  %v1264_v42 = vld [vmem:[%s1717_s0 + $0x5c] sm:$0xf]  ;;  %v949_v43 = vld [vmem:[%s1717_s0 + $0x7c] sm:$0xf0] }
  0x23   :  { %801 = vmatpush.bf16.msrb.mxu1 %v1318_v41  ;;  %752 = vmatmul.bf16.vlgmr.msra.gmra.mxu2 %v904_v44  ;;  %v1268_v41 = vld [vmem:[%s1717_s0 + $0x78] sm:$0xf0]  ;;  %v955_v44 = vld [vmem:[%s1717_s0 + $0x60] sm:$0xf] }
  0x24   :  { %771 = vmatmul.bf16.vlgmr.msra.gmra.mxu3 %v908_v45  ;;  %820 = vmatpush.bf16.msrb.mxu2 %v1326_v46  ;;  %v1269_v45 = vld [vmem:[%s1717_s0 + $0x80] sm:$0xf0] }
  0x25   :  { %839 = vmatpush.bf16.msrb.mxu3 %v1334_v47  ;;  %v1265_v46 = vld [vmem:[%s1717_s0 + $0x64] sm:$0xf]  ;;  %v957_v47 = vld [vmem:[%s1717_s0 + $0x84] sm:$0xf0] }
  0x26   :  { %783 = vmatpush.bf16.msrb.mxu0 %v1309_v48  ;;  %v1338_v48 = vld [vmem:[%s1716_s1 + $0x218] sm:$0xff] }
  0x27   :  { %802 = vmatpush.bf16.msrb.mxu1 %v1317_v49  ;;  %v948_v49 = vor.u32 %v1268_v41, %v947_v40 }
  0x28   :  { %821 = vmatpush.bf16.msrb.mxu2 %v1325_v50  ;;  %v952_v50 = vor.u32 %v1264_v42, %v949_v43 }
  0x29   :  { %840 = vmatpush.bf16.msrb.mxu3 %v1333_v51  ;;  %v956_v51 = vor.u32 %v1269_v45, %v955_v44 }
  0x2a   :  { %784 = vmatpush.bf16.msrb.mxu0 %v1308_v52  ;;  %v960_v52 = vor.u32 %v1265_v46, %v957_v47 }
  0x2b   :  { %803 = vmatpush.bf16.msrb.mxu1 %v1316_v53  ;;  %v1337_v53 = vld [vmem:[%s1716_s1 + $0x210] sm:$0xff] }
  0x2c   :  { %822 = vmatpush.bf16.msrb.mxu2 %v1324_v54  ;;  %v1336_v54 = vld [vmem:[%s1716_s1 + $0x208] sm:$0xff] }
  0x2d   :  { %841 = vmatpush.bf16.msrb.mxu3 %v1332_v55  ;;  %v1335_v55 = vld [vmem:[%s1716_s1 + $0x200] sm:$0xff] }
  0x2e   :  { %785 = vmatpush.bf16.msrb.mxu0 %v1307_v56  ;;  %v927_v56 = vld [vmem:[%s1717_s0 + $0x20] sm:$0xf] }
  0x2f   :  { %804 = vmatpush.bf16.msrb.mxu1 %v1315_v57  ;;  %v1261_v57 = vld [vmem:[%s1717_s0 + $0x40] sm:$0xf0] }
  0x30   :  { %823 = vmatpush.bf16.msrb.mxu2 %v1323_v58  ;;  %v963_v58 = vld [vmem:[%s1717_s0 + $0x68] sm:$0xf]  ;;  %v928_v60 = vor.u32 %v1261_v57, %v927_v56 }
  0x31   :  { %842 = vmatpush.bf16.msrb.mxu3 %v1331_v59  ;;  %719 = vmatmul.bf16.gmra.mxu0 %v932_v6  ;;  %v1270_v59 = vld [vmem:[%s1717_s0 + $0x88] sm:$0xf0] }
  0x32   :  { %786 = vmatpush.bf16.msrb.mxu0 %v1306_v4  ;;  %738 = vmatmul.bf16.gmra.mxu1 %v936_v7  ;;  %v964_v61 = vor.u32 %v1270_v59, %v963_v58 }
  0x33   :  { %805 = vmatpush.bf16.msrb.mxu1 %v1314_v5  ;;  %757 = vmatmul.bf16.gmra.mxu2 %v940_v8 }
  0x34   :  { %776 = vmatmul.bf16.gmra.mxu3 %v944_v9  ;;  %824 = vmatpush.bf16.msrb.mxu2 %v1322_v10 }
  0x35   :  { %843 = vmatpush.bf16.msrb.mxu3 %v1330_v11 }
  0x36   :  { %787 = vmatpush.bf16.msrb.mxu0 %v1305_v12 }
  0x37   :  { %806 = vmatpush.bf16.msrb.mxu1 %v1313_v13 }
  0x38   :  { %825 = vmatpush.bf16.msrb.mxu2 %v1321_v14 }
  0x39   :  { %844 = vmatpush.bf16.msrb.mxu3 %v1329_v15 }
  0x3a   :  { %788 = vmatpush.bf16.msrb.mxu0 %v1304_v16 }
  0x3b   :  { %807 = vmatpush.bf16.msrb.mxu1 %v1312_v17 }
  0x3c   :  { %826 = vmatpush.bf16.msrb.mxu2 %v1320_v18 }
  0x3d   :  { %845 = vmatpush.bf16.msrb.mxu3 %v1328_v19 }
  0x3e   :  { %789 = vmatpush.bf16.msrb.mxu0 %v1303_v20  ;;  %v1362_v20 = vld [vmem:[%s1718_s2] ss:$0 sm:$0xff] }
  0x3f   :  { %808 = vmatpush.bf16.msrb.mxu1 %v1311_v21 }
  0x40   :  { %827 = vmatpush.bf16.msrb.mxu2 %v1319_v22 }
  0x41   :  { %846 = vmatpush.bf16.msrb.mxu3 %v1327_v23  ;;  %790 = vmatmul.bf16.vlgmr.msrb.gmra.mxu0 %v912_v33 }
  0x42   :  { %858 = vmatpush.bf16.msra.mxu0 %v1342_v26  ;;  %809 = vmatmul.bf16.vlgmr.msrb.gmra.mxu1 %v916_v34 }
  0x43   :  { %1354 = vmatpush.bf16.msra.mxu1 %v1342_v26  ;;  %828 = vmatmul.bf16.vlgmr.msrb.gmra.mxu2 %v920_v35 }
  0x44   :  { %847 = vmatmul.bf16.vlgmr.msrb.gmra.mxu3 %v924_v36 }
  0x46   :  { %859 = vmatpush.bf16.msra.mxu0 %v1341_v37 }
  0x47   :  { %1355 = vmatpush.bf16.msra.mxu1 %v1341_v37 }
  0x4a   :  { %860 = vmatpush.bf16.msra.mxu0 %v1340_v38 }
  0x4b   :  { %1356 = vmatpush.bf16.msra.mxu1 %v1340_v38 }
  0x4e   :  { %861 = vmatpush.bf16.msra.mxu0 %v1339_v39 }
  0x4f   :  { %1357 = vmatpush.bf16.msra.mxu1 %v1339_v39 }
  0x51   :  { %795 = vmatmul.bf16.gmra.mxu0 %v948_v49 }
  0x52   :  { %862 = vmatpush.bf16.msra.mxu0 %v1338_v48  ;;  %814 = vmatmul.bf16.gmra.mxu1 %v952_v50 }
  0x53   :  { %1358 = vmatpush.bf16.msra.mxu1 %v1338_v48  ;;  %833 = vmatmul.bf16.gmra.mxu2 %v956_v51 }
  0x54   :  { %852 = vmatmul.bf16.gmra.mxu3 %v960_v52 }
  0x56   :  { %863 = vmatpush.bf16.msra.mxu0 %v1337_v53 }
  0x57   :  { %1359 = vmatpush.bf16.msra.mxu1 %v1337_v53 }
  0x5a   :  { %864 = vmatpush.bf16.msra.mxu0 %v1336_v54 }
  0x5b   :  { %1360 = vmatpush.bf16.msra.mxu1 %v1336_v54 }
  0x5e   :  { %865 = vmatpush.bf16.msra.mxu0 %v1335_v55 }
  0x5f   :  { %1361 = vmatpush.bf16.msra.mxu1 %v1335_v55 }
  0x61   :  { %866 = vmatmul.bf16.vlgmr.msra.gmra.mxu0 %v928_v60 }
  0x62   :  { %871 = vmatmul.bf16.vlgmr.msra.gmra.mxu1 %v964_v61 }
  0x9e   :  { %v715_v62 = vpop.f32.mrf.mxu0 }
  0x9f   :  { %v734_v63 = vpop.f32.mrf.mxu1  ;;  %v716_v21 = vadd.f32 %v1362_v20, %v715_v62 }
  0xa1   :  { %v735_v29 = vadd.f32 %v734_v63, %v716_v21 }
  0xa6   :  { %v753_v0 = vpop.f32.mrf.mxu2  ;;  %v717_v2 = vpop.f32.mrf.mxu0 }
  0xa7   :  { %v772_v1 = vpop.f32.mrf.mxu3  ;;  %v736_v3 = vpop.f32.mrf.mxu1  ;;  %v718_v26 = vadd.f32 %v1362_v20, %v717_v2  ;;  %v754_v31 = vadd.f32 %v753_v0, %v735_v29 }
  0xa9   :  { %v737_v32 = vadd.f32 %v736_v3, %v718_v26  ;;  %v773_v40 = vadd.f32 %v772_v1, %v754_v31 }
  0xae   :  { %v755_v4 = vpop.f32.mrf.mxu2  ;;  %v720_v6 = vpop.f32.mrf.mxu0 }
  0xaf   :  { %v774_v5 = vpop.f32.mrf.mxu3  ;;  %v739_v7 = vpop.f32.mrf.mxu1  ;;  %v721_v22 = vadd.f32 %v1362_v20, %v720_v6  ;;  %v756_v35 = vadd.f32 %v755_v4, %v737_v32 }
  0xb1   :  { %v740_v30 = vadd.f32 %v739_v7, %v721_v22  ;;  %v775_v42 = vadd.f32 %v774_v5, %v756_v35 }
  0xb6   :  { %v758_v8 = vpop.f32.mrf.mxu2  ;;  %v722_v10 = vpop.f32.mrf.mxu0 }
  0xb7   :  { %v777_v9 = vpop.f32.mrf.mxu3  ;;  %v741_v11 = vpop.f32.mrf.mxu1  ;;  %v723_v27 = vadd.f32 %v1362_v20, %v722_v10  ;;  %v759_v33 = vadd.f32 %v758_v8, %v740_v30 }
  0xb9   :  { %v742_v34 = vadd.f32 %v741_v11, %v723_v27  ;;  %v778_v41 = vadd.f32 %v777_v9, %v759_v33 }
  0xbe   :  { %v760_v12 = vpop.f32.mrf.mxu2  ;;  %v791_v14 = vpop.f32.mrf.mxu0 }
  0xbf   :  { %v779_v13 = vpop.f32.mrf.mxu3  ;;  %v810_v15 = vpop.f32.mrf.mxu1  ;;  %v761_v36 = vadd.f32 %v760_v12, %v742_v34  ;;  %v792_v44 = vadd.f32 %v791_v14, %v773_v40 }
  0xc1   :  { %v780_v43 = vadd.f32 %v779_v13, %v761_v36  ;;  %v811_v49 = vadd.f32 %v810_v15, %v792_v44 }
  0xc6   :  { %v829_v16 = vpop.f32.mrf.mxu2  ;;  %v793_v18 = vpop.f32.mrf.mxu0 }
  0xc7   :  { %v848_v17 = vpop.f32.mrf.mxu3  ;;  %v812_v19 = vpop.f32.mrf.mxu1  ;;  %v794_v47 = vadd.f32 %v793_v18, %v775_v42  ;;  %v830_v54 = vadd.f32 %v829_v16, %v811_v49 }
  0xc9   :  { %v813_v55 = vadd.f32 %v812_v19, %v794_v47  ;;  %v849_v60 = vadd.f32 %v848_v17, %v830_v54 }
  0xce   :  { %v831_v23 = vpop.f32.mrf.mxu2  ;;  %v796_v24 = vpop.f32.mrf.mxu0 }
  0xcf   :  { %v815_v25 = vpop.f32.mrf.mxu1  ;;  %v850_v28 = vpop.f32.mrf.mxu3  ;;  %v797_v45 = vadd.f32 %v796_v24, %v778_v41  ;;  %v832_v58 = vadd.f32 %v831_v23, %v813_v55 }
  0xd1   :  { %v816_v50 = vadd.f32 %v815_v25, %v797_v45  ;;  %v851_v63 = vadd.f32 %v850_v28, %v832_v58 }
  0xd6   :  { %v834_v37 = vpop.f32.mrf.mxu2  ;;  %v798_v38 = vpop.f32.mrf.mxu0 }
  0xd7   :  { %v817_v39 = vpop.f32.mrf.mxu1  ;;  %v853_v46 = vpop.f32.mrf.mxu3  ;;  %v799_v48 = vadd.f32 %v798_v38, %v780_v43  ;;  %v835_v56 = vadd.f32 %v834_v37, %v816_v50 }
  0xd9   :  { %v818_v57 = vadd.f32 %v817_v39, %v799_v48  ;;  %v854_v61 = vadd.f32 %v853_v46, %v835_v56 }
  0xde   :  { %v836_v51 = vpop.f32.mrf.mxu2  ;;  %v867_v52 = vpop.f32.mrf.mxu0 }
  0xdf   :  { %v872_v53 = vpop.f32.mrf.mxu1  ;;  %v837_v59 = vadd.f32 %v836_v51, %v818_v57  ;;  %v855_v62 = vpop.f32.mrf.mxu3  ;;  %v868_v1 = vadd.f32 %v867_v52, %v849_v60 }
  0xe0   :  { %v873_v2 = vadd.f32 %v872_v53, %v854_v61 }
  0xe1   :  { %v856_v0 = vadd.f32 %v855_v62, %v837_v59  ;;  %v877_v7 = vmax.f32 %v868_v1, 0.0 }
  0xe2   :  { %v879_v8 = vmax.f32 %v873_v2, 0.0 }
  0xe6   :  { %v869_v3 = vpop.f32.mrf.mxu0 }
  0xe7   :  { %v874_v4 = vpop.f32.mrf.mxu1  ;;  %v870_v5 = vadd.f32 %v869_v3, %v851_v63 }
  0xe8   :  { %v875_v6 = vadd.f32 %v874_v4, %v856_v0 }
  0xe9   :  { %v878_v9 = vmax.f32 %v870_v5, 0.0 }
  0xea   :  { %v880_v10 = vmax.f32 %v875_v6, 0.0 }
  0xeb   :  { %v1346_v11 = vpack.c.bf16 %v878_v9, %v877_v7 }
  0xec   :  { %v1351_v12 = vpack.c.bf16 %v880_v10, %v879_v8 }
  0xed   :  { %1347 = vst [vmem:[%s1719_s3] sm:$0xff] %v1346_v11  }
  0xee   :  { %1353 = vst [vmem:[%s1719_s3 + $0x8] sm:$0xff] %v1351_v12  }

// kernel: align_net_forward.22
= control target key start
LH: loop header
LB: loop body
LE: loop exit
PB: predicated region body
PF: predicated region fallthrough
CT: control target
= control target key end

     0   :  { %vm555_vm0 = vcmask 523264   ;;  %s1794_s1 = inlined_call_operand.vmem [shape: bf16[576,128], index: 1, kind: input, shape index: {}]   ;;  %s1795_s2 = inlined_call_operand.vmem [shape: f32[1,128], index: 2, kind: input, shape index: {}]   ;;  %s1796_s0 = inlined_call_operand.vmem [shape: bf16[128,576], index: 0, kind: input, shape index: {}]   ;;  %s1797_s3 = inlined_call_operand.vmem [shape: bf16[128,128], index: 3, kind: output, shape index: {}]  }
   0x1   :  { %v1236_v0 = vld [vmem:[%s1794_s1 + $0x38] sm:$0xff]  ;;  %v1235_v1 = vld [vmem:[%s1794_s1 + $0x30] sm:$0xff]  ;;  %v1234_v2 = vld [vmem:[%s1794_s1 + $0x28] sm:$0xff] }
   0x2   :  { %1312 = vmatpush.bf16.msra.mxu1 %v1236_v0  ;;  %1313 = vmatpush.bf16.msra.mxu2 %v1236_v0  ;;  %v1233_v3 = vld [vmem:[%s1794_s1 + $0x20] sm:$0xff]  ;;  %v1232_v4 = vld [vmem:[%s1794_s1 + $0x18] sm:$0xff]  ;;  %v1231_v5 = vld [vmem:[%s1794_s1 + $0x10] sm:$0xff] }
   0x3   :  { %1314 = vmatpush.bf16.msra.mxu3 %v1236_v0  ;;  %580 = vmatpush.bf16.msra.mxu0 %v1236_v0  ;;  %v1230_v6 = vld [vmem:[%s1794_s1 + $0x8] sm:$0xff]  ;;  %v1229_v7 = vld [vmem:[%s1794_s1] sm:$0xff]  ;;  %v919_v8 = vld [vmem:[%s1796_s0 + $0x50] sm:$0xf] }
   0x4   :  { %v1201_v9 = vld [vmem:[%s1796_s0 + $0x60] sm:$0xf0]  ;;  %v959_v10 = vld [vmem:[%s1796_s0 + $0xa0] sm:$0xf]  ;;  %v1211_v11 = vld [vmem:[%s1796_s0 + $0xb0] sm:$0xf0] }
   0x5   :  { %v999_v12 = vld [vmem:[%s1796_s0 + $0xf0] sm:$0xf]  ;;  %v1221_v13 = vld [vmem:[%s1796_s0 + $0x100] sm:$0xf0]  ;;  %v879_v14 = vld [vmem:[%s1796_s0] sm:$0xf]  ;;  %v920_v18 = vor.u32 %v1201_v9, %v919_v8  ;;  %v960_v19 = vor.u32 %v1211_v11, %v959_v10 }
   0x6   :  { %1315 = vmatpush.bf16.msra.mxu1 %v1235_v1  ;;  %1316 = vmatpush.bf16.msra.mxu2 %v1235_v1  ;;  %v1191_v15 = vld [vmem:[%s1796_s0 + $0x10] sm:$0xf0]  ;;  %v1252_v16 = vld [vmem:[%s1794_s1 + $0xb8] sm:$0xff]  ;;  %v1000_v20 = vor.u32 %v1221_v13, %v999_v12  ;;  %v1250_v28 = vld [vmem:[%s1794_s1 + $0xa8] sm:$0xff] }
   0x7   :  { %1317 = vmatpush.bf16.msra.mxu3 %v1235_v1  ;;  %581 = vmatpush.bf16.msra.mxu0 %v1235_v1  ;;  %v1244_v17 = vld [vmem:[%s1794_s1 + $0x78] sm:$0xff]  ;;  %v880_v21 = vor.u32 %v1191_v15, %v879_v14  ;;  %v1251_v24 = vld [vmem:[%s1794_s1 + $0xb0] sm:$0xff]  ;;  %v1242_v29 = vld [vmem:[%s1794_s1 + $0x68] sm:$0xff] }
   0x8   :  { %v1260_v22 = vld [vmem:[%s1794_s1 + $0xf8] sm:$0xff]  ;;  %v1243_v25 = vld [vmem:[%s1794_s1 + $0x70] sm:$0xff]  ;;  %v1258_v30 = vld [vmem:[%s1794_s1 + $0xe8] sm:$0xff] }
   0x9   :  { %v1264_v23 = vld [vmem:[%s1794_s1 + $0x118] sm:$0xff]  ;;  %v1259_v26 = vld [vmem:[%s1794_s1 + $0xf0] sm:$0xff]  ;;  %v1262_v31 = vld [vmem:[%s1794_s1 + $0x108] sm:$0xff] }
   0xa   :  { %1318 = vmatpush.bf16.msra.mxu1 %v1234_v2  ;;  %1319 = vmatpush.bf16.msra.mxu2 %v1234_v2  ;;  %v1263_v27 = vld [vmem:[%s1794_s1 + $0x110] sm:$0xff]  ;;  %v1249_v32 = vld [vmem:[%s1794_s1 + $0xa0] sm:$0xff]  ;;  %v939_v35 = vld [vmem:[%s1796_s0 + $0x78] sm:$0xf] }
   0xb   :  { %1320 = vmatpush.bf16.msra.mxu3 %v1234_v2  ;;  %582 = vmatpush.bf16.msra.mxu0 %v1234_v2  ;;  %v1241_v33 = vld [vmem:[%s1794_s1 + $0x60] sm:$0xff]  ;;  %v1206_v36 = vld [vmem:[%s1796_s0 + $0x88] sm:$0xf0]  ;;  %v979_v37 = vld [vmem:[%s1796_s0 + $0xc8] sm:$0xf] }
   0xc   :  { %v1257_v34 = vld [vmem:[%s1794_s1 + $0xe0] sm:$0xff]  ;;  %v1216_v38 = vld [vmem:[%s1796_s0 + $0xd8] sm:$0xf0]  ;;  %v1019_v39 = vld [vmem:[%s1796_s0 + $0x118] sm:$0xf]  ;;  %v940_v46 = vor.u32 %v1206_v36, %v939_v35 }
   0xd   :  { %v1226_v40 = vld [vmem:[%s1796_s0 + $0x128] sm:$0xf0]  ;;  %v899_v41 = vld [vmem:[%s1796_s0 + $0x28] sm:$0xf]  ;;  %v1196_v42 = vld [vmem:[%s1796_s0 + $0x38] sm:$0xf0]  ;;  %v980_v47 = vor.u32 %v1216_v38, %v979_v37 }
   0xe   :  { %1321 = vmatpush.bf16.msra.mxu1 %v1233_v3  ;;  %1322 = vmatpush.bf16.msra.mxu2 %v1233_v3  ;;  %v1261_v43 = vld [vmem:[%s1794_s1 + $0x100] sm:$0xff]  ;;  %v1248_v44 = vld [vmem:[%s1794_s1 + $0x98] sm:$0xff]  ;;  %v1020_v48 = vor.u32 %v1226_v40, %v1019_v39  ;;  %v900_v49 = vor.u32 %v1196_v42, %v899_v41  ;;  %v1247_v51 = vld [vmem:[%s1794_s1 + $0x90] sm:$0xff] }
   0xf   :  { %1323 = vmatpush.bf16.msra.mxu3 %v1233_v3  ;;  %583 = vmatpush.bf16.msra.mxu0 %v1233_v3  ;;  %v1240_v45 = vld [vmem:[%s1794_s1 + $0x58] sm:$0xff]  ;;  %v1239_v52 = vld [vmem:[%s1794_s1 + $0x50] sm:$0xff]  ;;  %v1246_v54 = vld [vmem:[%s1794_s1 + $0x88] sm:$0xff] }
  0x10   :  { %v1256_v50 = vld [vmem:[%s1794_s1 + $0xd8] sm:$0xff]  ;;  %v1255_v53 = vld [vmem:[%s1794_s1 + $0xd0] sm:$0xff]  ;;  %v1238_v55 = vld [vmem:[%s1794_s1 + $0x48] sm:$0xff] }
  0x11   :  { %v1254_v56 = vld [vmem:[%s1794_s1 + $0xc8] sm:$0xff]  ;;  %v1245_v57 = vld [vmem:[%s1794_s1 + $0x80] sm:$0xff]  ;;  %v881_v61 = vld [vmem:[%s1796_s0 + $0x14] sm:$0xf0] }
  0x12   :  { %1324 = vmatpush.bf16.msra.mxu1 %v1232_v4  ;;  %1325 = vmatpush.bf16.msra.mxu2 %v1232_v4  ;;  %v1237_v58 = vld [vmem:[%s1794_s1 + $0x40] sm:$0xff]  ;;  %v887_v62 = vld [vmem:[%s1796_s0 + $0x8] sm:$0xf]  ;;  %v1192_v63 = vld [vmem:[%s1796_s0 + $0x18] sm:$0xf0] }
  0x13   :  { %1326 = vmatpush.bf16.msra.mxu3 %v1232_v4  ;;  %584 = vmatpush.bf16.msra.mxu0 %v1232_v4  ;;  %v1253_v59 = vld [vmem:[%s1794_s1 + $0xc0] sm:$0xff]  ;;  %v1190_v0 = vld [vmem:[%s1796_s0 + $0xc] sm:$0xf]  ;;  %v895_v2 = vld [vmem:[%s1796_s0 + $0x10] sm:$0xf] }
  0x14   :  { %v1189_v60 = vld [vmem:[%s1796_s0 + $0x4] sm:$0xf]  ;;  %v889_v1 = vld [vmem:[%s1796_s0 + $0x1c] sm:$0xf0]  ;;  %v1194_v8 = vld [vmem:[%s1796_s0 + $0x2c] sm:$0xf] }
  0x15   :  { %v1193_v3 = vld [vmem:[%s1796_s0 + $0x20] sm:$0xf0]  ;;  %v884_v4 = vor.u32 %v1189_v60, %v881_v61  ;;  %v901_v9 = vld [vmem:[%s1796_s0 + $0x3c] sm:$0xf0]  ;;  %v907_v10 = vld [vmem:[%s1796_s0 + $0x30] sm:$0xf] }
  0x16   :  { %1327 = vmatpush.bf16.msra.mxu1 %v1231_v5  ;;  %1328 = vmatpush.bf16.msra.mxu2 %v1231_v5  ;;  %v1197_v11 = vld [vmem:[%s1796_s0 + $0x40] sm:$0xf0]  ;;  %v1195_v12 = vld [vmem:[%s1796_s0 + $0x34] sm:$0xf]  ;;  %v909_v13 = vld [vmem:[%s1796_s0 + $0x44] sm:$0xf0] }
  0x17   :  { %1329 = vmatpush.bf16.msra.mxu3 %v1231_v5  ;;  %585 = vmatpush.bf16.msra.mxu0 %v1231_v5  ;;  %v888_v5 = vor.u32 %v1192_v63, %v887_v62  ;;  %v915_v14 = vld [vmem:[%s1796_s0 + $0x38] sm:$0xf]  ;;  %v1198_v15 = vld [vmem:[%s1796_s0 + $0x48] sm:$0xf0]  ;;  %v1207_v35 = vld [vmem:[%s1796_s0 + $0x90] sm:$0xf0] }
  0x18   :  { %v1205_v36 = vld [vmem:[%s1796_s0 + $0x84] sm:$0xf]  ;;  %v949_v37 = vld [vmem:[%s1796_s0 + $0x94] sm:$0xf0]  ;;  %v955_v38 = vld [vmem:[%s1796_s0 + $0x88] sm:$0xf] }
  0x19   :  { %v1208_v39 = vld [vmem:[%s1796_s0 + $0x98] sm:$0xf0]  ;;  %v952_v42 = vor.u32 %v1205_v36, %v949_v37  ;;  %v1215_v60 = vld [vmem:[%s1796_s0 + $0xd4] sm:$0xf]  ;;  %v989_v61 = vld [vmem:[%s1796_s0 + $0xe4] sm:$0xf0] }
  0x1a   :  { %1330 = vmatpush.bf16.msra.mxu1 %v1230_v6  ;;  %1331 = vmatpush.bf16.msra.mxu2 %v1230_v6  ;;  %v995_v62 = vld [vmem:[%s1796_s0 + $0xd8] sm:$0xf]  ;;  %v1218_v63 = vld [vmem:[%s1796_s0 + $0xe8] sm:$0xf0] }
  0x1b   :  { %1332 = vmatpush.bf16.msra.mxu3 %v1230_v6  ;;  %586 = vmatpush.bf16.msra.mxu0 %v1230_v6  ;;  %v892_v6 = vor.u32 %v1190_v0, %v889_v1 }
  0x1e   :  { %1333 = vmatpush.bf16.msra.mxu1 %v1229_v7  ;;  %1334 = vmatpush.bf16.msra.mxu2 %v1229_v7 }
  0x1f   :  { %1335 = vmatpush.bf16.msra.mxu3 %v1229_v7  ;;  %587 = vmatpush.bf16.msra.mxu0 %v1229_v7  ;;  %v896_v7 = vor.u32 %v1193_v3, %v895_v2  ;;  %v992_v2 = vor.u32 %v1215_v60, %v989_v61  ;;  %v996_v3 = vor.u32 %v1218_v63, %v995_v62 }
  0x21   :  { %598 = vmatmul.bf16.vlgmr.msra.gmra.mxu1 %v920_v18  ;;  %608 = vmatmul.bf16.vlgmr.msra.gmra.mxu2 %v960_v19  ;;  %v912_v18 = vor.u32 %v1195_v12, %v909_v13  ;;  %v916_v19 = vor.u32 %v1198_v15, %v915_v14 }
  0x22   :  { %678 = vmatpush.bf16.msrb.mxu2 %v1252_v16  ;;  %629 = vmatpush.bf16.msrb.mxu1 %v1244_v17  ;;  %v904_v16 = vor.u32 %v1194_v8, %v901_v9  ;;  %v908_v17 = vor.u32 %v1197_v11, %v907_v10  ;;  %v1220_v8 = vld [vmem:[%s1796_s0 + $0xfc] sm:$0xf]  ;;  %v1009_v9 = vld [vmem:[%s1796_s0 + $0x10c] sm:$0xf0]  ;;  %v1015_v10 = vld [vmem:[%s1796_s0 + $0x100] sm:$0xf] }
  0x23   :  { %618 = vmatmul.bf16.vlgmr.msra.gmra.mxu3 %v1000_v20  ;;  %588 = vmatmul.bf16.vlgmr.msra.gmra.mxu0 %v880_v21  ;;  %v1199_v20 = vld [vmem:[%s1796_s0 + $0x54] sm:$0xf]  ;;  %v921_v21 = vld [vmem:[%s1796_s0 + $0x64] sm:$0xf0]  ;;  %v1012_v15 = vor.u32 %v1220_v8, %v1009_v9 }
  0x24   :  { %727 = vmatpush.bf16.msrb.mxu3 %v1260_v22  ;;  %780 = vmatpush.bf16.msrb.mxu0 %v1264_v23  ;;  %v927_v22 = vld [vmem:[%s1796_s0 + $0x58] sm:$0xf]  ;;  %v1202_v23 = vld [vmem:[%s1796_s0 + $0x68] sm:$0xf0]  ;;  %v1223_v11 = vld [vmem:[%s1796_s0 + $0x110] sm:$0xf0] }
  0x26   :  { %679 = vmatpush.bf16.msrb.mxu2 %v1251_v24  ;;  %630 = vmatpush.bf16.msrb.mxu1 %v1243_v25  ;;  %v1200_v24 = vld [vmem:[%s1796_s0 + $0x5c] sm:$0xf]  ;;  %v929_v25 = vld [vmem:[%s1796_s0 + $0x6c] sm:$0xf0] }
  0x28   :  { %728 = vmatpush.bf16.msrb.mxu3 %v1259_v26  ;;  %781 = vmatpush.bf16.msrb.mxu0 %v1263_v27  ;;  %v935_v26 = vld [vmem:[%s1796_s0 + $0x60] sm:$0xf]  ;;  %v1203_v27 = vld [vmem:[%s1796_s0 + $0x70] sm:$0xf0] }
  0x2a   :  { %680 = vmatpush.bf16.msrb.mxu2 %v1250_v28  ;;  %631 = vmatpush.bf16.msrb.mxu1 %v1242_v29  ;;  %v924_v28 = vor.u32 %v1199_v20, %v921_v21  ;;  %v928_v29 = vor.u32 %v1202_v23, %v927_v22 }
  0x2c   :  { %729 = vmatpush.bf16.msrb.mxu3 %v1258_v30  ;;  %782 = vmatpush.bf16.msrb.mxu0 %v1262_v31  ;;  %v932_v30 = vor.u32 %v1200_v24, %v929_v25  ;;  %v936_v31 = vor.u32 %v1203_v27, %v935_v26  ;;  %v1224_v25 = vld [vmem:[%s1796_s0 + $0x11c] sm:$0xf]  ;;  %v1021_v26 = vld [vmem:[%s1796_s0 + $0x12c] sm:$0xf0]  ;;  %v1027_v27 = vld [vmem:[%s1796_s0 + $0x120] sm:$0xf] }
  0x2d   :  { %v1024_v36 = vor.u32 %v1224_v25, %v1021_v26 }
  0x2e   :  { %681 = vmatpush.bf16.msrb.mxu2 %v1249_v32  ;;  %632 = vmatpush.bf16.msrb.mxu1 %v1241_v33  ;;  %v1204_v32 = vld [vmem:[%s1796_s0 + $0x7c] sm:$0xf]  ;;  %v941_v33 = vld [vmem:[%s1796_s0 + $0x8c] sm:$0xf0] }
  0x2f   :  { %v944_v40 = vor.u32 %v1204_v32, %v941_v33  ;;  %v1228_v32 = vld [vmem:[%s1796_s0 + $0x138] sm:$0xf0] }
  0x30   :  { %730 = vmatpush.bf16.msrb.mxu3 %v1257_v34  ;;  %783 = vmatpush.bf16.msrb.mxu0 %v1261_v43  ;;  %v947_v34 = vld [vmem:[%s1796_s0 + $0x80] sm:$0xf]  ;;  %v956_v43 = vor.u32 %v1208_v39, %v955_v38 }
  0x31   :  { %603 = vmatmul.bf16.gmra.mxu1 %v940_v46  ;;  %613 = vmatmul.bf16.gmra.mxu2 %v980_v47  ;;  %v948_v41 = vor.u32 %v1207_v35, %v947_v34  ;;  %v967_v46 = vld [vmem:[%s1796_s0 + $0xa8] sm:$0xf]  ;;  %v1212_v47 = vld [vmem:[%s1796_s0 + $0xb8] sm:$0xf0] }
  0x32   :  { %682 = vmatpush.bf16.msrb.mxu2 %v1248_v44  ;;  %633 = vmatpush.bf16.msrb.mxu1 %v1240_v45  ;;  %v1209_v44 = vld [vmem:[%s1796_s0 + $0xa4] sm:$0xf]  ;;  %v961_v45 = vld [vmem:[%s1796_s0 + $0xb4] sm:$0xf0] }
  0x33   :  { %623 = vmatmul.bf16.gmra.mxu3 %v1020_v48  ;;  %593 = vmatmul.bf16.gmra.mxu0 %v900_v49  ;;  %v1210_v48 = vld [vmem:[%s1796_s0 + $0xac] sm:$0xf]  ;;  %v969_v49 = vld [vmem:[%s1796_s0 + $0xbc] sm:$0xf0] }
  0x34   :  { %731 = vmatpush.bf16.msrb.mxu3 %v1256_v50  ;;  %v975_v50 = vld [vmem:[%s1796_s0 + $0xb0] sm:$0xf] }
  0x36   :  { %683 = vmatpush.bf16.msrb.mxu2 %v1247_v51  ;;  %634 = vmatpush.bf16.msrb.mxu1 %v1239_v52  ;;  %v1213_v51 = vld [vmem:[%s1796_s0 + $0xc0] sm:$0xf0]  ;;  %v964_v52 = vor.u32 %v1209_v44, %v961_v45 }
  0x38   :  { %732 = vmatpush.bf16.msrb.mxu3 %v1255_v53  ;;  %v968_v53 = vor.u32 %v1212_v47, %v967_v46 }
  0x3a   :  { %684 = vmatpush.bf16.msrb.mxu2 %v1246_v54  ;;  %635 = vmatpush.bf16.msrb.mxu1 %v1238_v55  ;;  %v972_v54 = vor.u32 %v1210_v48, %v969_v49  ;;  %v976_v55 = vor.u32 %v1213_v51, %v975_v50 }
  0x3c   :  { %733 = vmatpush.bf16.msrb.mxu3 %v1254_v56  ;;  %v1214_v56 = vld [vmem:[%s1796_s0 + $0xcc] sm:$0xf] }
  0x3e   :  { %685 = vmatpush.bf16.msrb.mxu2 %v1245_v57  ;;  %636 = vmatpush.bf16.msrb.mxu1 %v1237_v58  ;;  %v981_v57 = vld [vmem:[%s1796_s0 + $0xdc] sm:$0xf0]  ;;  %v987_v58 = vld [vmem:[%s1796_s0 + $0xd0] sm:$0xf] }
  0x3f   :  { %v984_v0 = vor.u32 %v1214_v56, %v981_v57 }
  0x40   :  { %734 = vmatpush.bf16.msrb.mxu3 %v1253_v59  ;;  %v1217_v59 = vld [vmem:[%s1796_s0 + $0xe0] sm:$0xf0] }
  0x41   :  { %637 = vmatmul.bf16.vlgmr.msrb.gmra.mxu1 %v884_v4  ;;  %686 = vmatmul.bf16.vlgmr.msrb.gmra.mxu2 %v888_v5  ;;  %v988_v1 = vor.u32 %v1217_v59, %v987_v58  ;;  %v1219_v4 = vld [vmem:[%s1796_s0 + $0xf4] sm:$0xf]  ;;  %v1001_v5 = vld [vmem:[%s1796_s0 + $0x104] sm:$0xf0] }
  0x42   :  { %v1004_v12 = vor.u32 %v1219_v4, %v1001_v5 }
  0x43   :  { %735 = vmatmul.bf16.vlgmr.msrb.gmra.mxu3 %v892_v6  ;;  %1181 = vmatmul.msk.bf16.vlgmr.msrb.gmra.mxu0 %vm555_vm0, %v896_v7  ;;  %v1007_v6 = vld [vmem:[%s1796_s0 + $0xf8] sm:$0xf]  ;;  %v1222_v7 = vld [vmem:[%s1796_s0 + $0x108] sm:$0xf0] }
  0x44   :  { %v1008_v13 = vor.u32 %v1222_v7, %v1007_v6 }
  0x51   :  { %642 = vmatmul.bf16.gmra.mxu1 %v904_v16  ;;  %691 = vmatmul.bf16.gmra.mxu2 %v908_v17  ;;  %v1016_v16 = vor.u32 %v1223_v11, %v1015_v10 }
  0x53   :  { %740 = vmatmul.bf16.gmra.mxu3 %v912_v18  ;;  %1182 = vmatmul.msk.bf16.gmra.mxu0 %vm555_vm0, %v916_v19  ;;  %v1693_v18 = vld [vmem:[%s1795_s2] ss:$0 sm:$0xff] }
  0x61   :  { %647 = vmatmul.bf16.gmra.mxu1 %v924_v28  ;;  %696 = vmatmul.bf16.gmra.mxu2 %v928_v29  ;;  %v1227_v28 = vld [vmem:[%s1796_s0 + $0x130] sm:$0xf0]  ;;  %v1225_v29 = vld [vmem:[%s1796_s0 + $0x124] sm:$0xf] }
  0x62   :  { %v1028_v37 = vor.u32 %v1227_v28, %v1027_v27 }
  0x63   :  { %745 = vmatmul.bf16.gmra.mxu3 %v932_v30  ;;  %1183 = vmatmul.msk.bf16.gmra.mxu0 %vm555_vm0, %v936_v31  ;;  %v1029_v30 = vld [vmem:[%s1796_s0 + $0x134] sm:$0xf0]  ;;  %v1035_v31 = vld [vmem:[%s1796_s0 + $0x128] sm:$0xf] }
  0x71   :  { %652 = vmatmul.bf16.gmra.mxu1 %v944_v40  ;;  %701 = vmatmul.bf16.gmra.mxu2 %v948_v41  ;;  %v1032_v40 = vor.u32 %v1225_v29, %v1029_v30  ;;  %v1036_v41 = vor.u32 %v1228_v32, %v1035_v31 }
  0x73   :  { %750 = vmatmul.bf16.gmra.mxu3 %v952_v42  ;;  %1184 = vmatmul.msk.bf16.gmra.mxu0 %vm555_vm0, %v956_v43 }
  0x81   :  { %657 = vmatmul.bf16.gmra.mxu1 %v964_v52  ;;  %706 = vmatmul.bf16.gmra.mxu2 %v968_v53 }
  0x83   :  { %755 = vmatmul.bf16.gmra.mxu3 %v972_v54  ;;  %1185 = vmatmul.msk.bf16.gmra.mxu0 %vm555_vm0, %v976_v55 }
  0x91   :  { %662 = vmatmul.bf16.gmra.mxu1 %v984_v0  ;;  %711 = vmatmul.bf16.gmra.mxu2 %v988_v1 }
  0x93   :  { %760 = vmatmul.bf16.gmra.mxu3 %v992_v2  ;;  %1186 = vmatmul.msk.bf16.gmra.mxu0 %vm555_vm0, %v996_v3 }
  0x9e   :  { %v1687_v14 = vpop.f32.mrf.mxu1 }
  0xa0   :  { %v589_v17 = vpop.f32.mrf.mxu0 }
  0xa1   :  { %667 = vmatmul.bf16.gmra.mxu1 %v1004_v12  ;;  %716 = vmatmul.bf16.gmra.mxu2 %v1008_v13  ;;  %v590_v55 = vadd.f32 %v1693_v18, %v589_v17 }
  0xa3   :  { %765 = vmatmul.bf16.gmra.mxu3 %v1012_v15  ;;  %1187 = vmatmul.msk.bf16.gmra.mxu0 %vm555_vm0, %v1016_v16 }
  0xa4   :  { %v609_v19 = vpop.f32.mrf.mxu2 }
  0xa5   :  { %v1696_v20 = vadd.f32 %v1693_v18, %v609_v19 }
  0xa6   :  { %v619_v21 = vpop.f32.mrf.mxu3  ;;  %v1701_v23 = vpop.f32.mrf.mxu1 }
  0xa7   :  { %v1699_v22 = vadd.f32 %v1693_v18, %v619_v21 }
  0xa8   :  { %v591_v24 = vpop.f32.mrf.mxu0 }
  0xa9   :  { %v592_v62 = vadd.f32 %v1693_v18, %v591_v24 }
  0xac   :  { %v611_v33 = vpop.f32.mrf.mxu2 }
  0xad   :  { %v1728_v34 = vadd.f32 %v1693_v18, %v611_v33 }
  0xae   :  { %v621_v35 = vpop.f32.mrf.mxu3  ;;  %v1733_v39 = vpop.f32.mrf.mxu1 }
  0xaf   :  { %v1731_v38 = vadd.f32 %v1693_v18, %v621_v35 }
  0xb0   :  { %v594_v42 = vpop.f32.mrf.mxu0 }
  0xb1   :  { %672 = vmatmul.bf16.gmra.mxu1 %v1024_v36  ;;  %721 = vmatmul.bf16.gmra.mxu2 %v1028_v37  ;;  %v595_v9 = vadd.f32 %v1693_v18, %v594_v42  ;;  %v600_v36 = vadd.f32 %v1693_v18, %v1687_v14 }
  0xb3   :  { %770 = vmatmul.bf16.gmra.mxu3 %v1032_v40  ;;  %1188 = vmatmul.msk.bf16.gmra.mxu0 %vm555_vm0, %v1036_v41 }
  0xb4   :  { %v614_v43 = vpop.f32.mrf.mxu2 }
  0xb5   :  { %v1737_v44 = vadd.f32 %v1693_v18, %v614_v43 }
  0xb6   :  { %v624_v45 = vpop.f32.mrf.mxu3  ;;  %v1742_v47 = vpop.f32.mrf.mxu1 }
  0xb7   :  { %v1740_v46 = vadd.f32 %v1693_v18, %v624_v45 }
  0xb8   :  { %v596_v48 = vpop.f32.mrf.mxu0 }
  0xb9   :  { %v597_v24 = vadd.f32 %v1693_v18, %v596_v48 }
  0xbc   :  { %v616_v49 = vpop.f32.mrf.mxu2 }
  0xbd   :  { %v1745_v50 = vadd.f32 %v1693_v18, %v616_v49 }
  0xbe   :  { %v626_v51 = vpop.f32.mrf.mxu3  ;;  %v638_v53 = vpop.f32.mrf.mxu1 }
  0xbf   :  { %v1748_v52 = vadd.f32 %v1693_v18, %v626_v51  ;;  %v639_v57 = vadd.f32 %v638_v53, %v590_v55  ;;  %v602_v53 = vadd.f32 %v1693_v18, %v1701_v23 }
  0xc0   :  { %v785_v54 = vpop.f32.mrf.mxu0 }
  0xc4   :  { %v687_v56 = vpop.f32.mrf.mxu2 }
  0xc5   :  { %v688_v60 = vadd.f32 %v687_v56, %v639_v57 }
  0xc6   :  { %v736_v58 = vpop.f32.mrf.mxu3  ;;  %v640_v59 = vpop.f32.mrf.mxu1 }
  0xc7   :  { %v737_v63 = vadd.f32 %v736_v58, %v688_v60  ;;  %v641_v0 = vadd.f32 %v640_v59, %v592_v62 }
  0xc8   :  { %v787_v61 = vpop.f32.mrf.mxu0 }
  0xc9   :  { %v786_v5 = vadd.f32 %v785_v54, %v737_v63  ;;  %v605_v63 = vadd.f32 %v1693_v18, %v1733_v39 }
  0xcb   :  { %v825_v10 = vmax.f32 %v786_v5, 0.0 }
  0xcc   :  { %v689_v1 = vpop.f32.mrf.mxu2 }
  0xcd   :  { %v690_v2 = vadd.f32 %v689_v1, %v641_v0 }
  0xce   :  { %v738_v3 = vpop.f32.mrf.mxu3  ;;  %v643_v4 = vpop.f32.mrf.mxu1 }
  0xcf   :  { %v739_v6 = vadd.f32 %v738_v3, %v690_v2  ;;  %v644_v15 = vadd.f32 %v643_v4, %v595_v9 }
  0xd0   :  { %v790_v7 = vpop.f32.mrf.mxu0 }
  0xd1   :  { %v788_v8 = vadd.f32 %v787_v61, %v739_v6 }
  0xd3   :  { %v826_v11 = vmax.f32 %v788_v8, 0.0  ;;  %v607_v8 = vadd.f32 %v1693_v18, %v1742_v47 }
  0xd4   :  { %v692_v12 = vpop.f32.mrf.mxu2 }
  0xd5   :  { %v1268_v13 = vpack.c.bf16 %v826_v11, %v825_v10  ;;  %v693_v19 = vadd.f32 %v692_v12, %v644_v15 }
  0xd6   :  { %v741_v16 = vpop.f32.mrf.mxu3  ;;  %v645_v17 = vpop.f32.mrf.mxu1 }
  0xd7   :  { %1269 = vst [vmem:[%s1797_s3] sm:$0xff] %v1268_v13   ;;  %v742_v25 = vadd.f32 %v741_v16, %v693_v19  ;;  %v646_v26 = vadd.f32 %v645_v17, %v597_v24 }
  0xd8   :  { %v792_v21 = vpop.f32.mrf.mxu0 }
  0xd9   :  { %v791_v31 = vadd.f32 %v790_v7, %v742_v25 }
  0xdb   :  { %v827_v37 = vmax.f32 %v791_v31, 0.0 }
  0xdc   :  { %v694_v27 = vpop.f32.mrf.mxu2 }
  0xdd   :  { %v695_v28 = vadd.f32 %v694_v27, %v646_v26 }
  0xde   :  { %v743_v29 = vpop.f32.mrf.mxu3  ;;  %v648_v30 = vpop.f32.mrf.mxu1 }
  0xdf   :  { %v744_v32 = vadd.f32 %v743_v29, %v695_v28  ;;  %v649_v43 = vadd.f32 %v648_v30, %v600_v36 }
  0xe0   :  { %v795_v33 = vpop.f32.mrf.mxu0 }
  0xe1   :  { %v793_v35 = vadd.f32 %v792_v21, %v744_v32 }
  0xe3   :  { %v828_v40 = vmax.f32 %v793_v35, 0.0 }
  0xe4   :  { %v697_v41 = vpop.f32.mrf.mxu2 }
  0xe5   :  { %v1273_v42 = vpack.c.bf16 %v828_v40, %v827_v37  ;;  %v698_v49 = vadd.f32 %v697_v41, %v649_v43 }
  0xe6   :  { %v746_v45 = vpop.f32.mrf.mxu3  ;;  %v650_v48 = vpop.f32.mrf.mxu1 }
  0xe7   :  { %1305 = vst [vmem:[%s1797_s3 + $0x8] sm:$0xff] %v1273_v42   ;;  %v747_v54 = vadd.f32 %v746_v45, %v698_v49  ;;  %v651_v55 = vadd.f32 %v650_v48, %v602_v53 }
  0xe8   :  { %v797_v51 = vpop.f32.mrf.mxu0 }
  0xe9   :  { %v796_v59 = vadd.f32 %v795_v33, %v747_v54 }
  0xeb   :  { %v829_v0 = vmax.f32 %v796_v59, 0.0 }
  0xec   :  { %v699_v56 = vpop.f32.mrf.mxu2 }
  0xed   :  { %v700_v14 = vadd.f32 %v699_v56, %v651_v55 }
  0xee   :  { %v748_v57 = vpop.f32.mrf.mxu3  ;;  %v653_v58 = vpop.f32.mrf.mxu1 }
  0xef   :  { %v749_v60 = vadd.f32 %v748_v57, %v700_v14  ;;  %v654_v4 = vadd.f32 %v653_v58, %v605_v63 }
  0xf0   :  { %v800_v61 = vpop.f32.mrf.mxu0 }
  0xf1   :  { %v798_v62 = vadd.f32 %v797_v51, %v749_v60 }
  0xf3   :  { %v830_v1 = vmax.f32 %v798_v62, 0.0 }
  0xf4   :  { %v702_v2 = vpop.f32.mrf.mxu2 }
  0xf5   :  { %v1278_v3 = vpack.c.bf16 %v830_v1, %v829_v0  ;;  %v703_v6 = vadd.f32 %v702_v2, %v654_v4 }
  0xf6   :  { %v751_v5 = vpop.f32.mrf.mxu3  ;;  %v655_v23 = vpop.f32.mrf.mxu1 }
  0xf7   :  { %1306 = vst [vmem:[%s1797_s3 + $0x10] sm:$0xff] %v1278_v3   ;;  %v752_v9 = vadd.f32 %v751_v5, %v703_v6  ;;  %v656_v10 = vadd.f32 %v655_v23, %v607_v8 }
  0xf8   :  { %v802_v7 = vpop.f32.mrf.mxu0 }
  0xf9   :  { %v801_v15 = vadd.f32 %v800_v61, %v752_v9 }
  0xfb   :  { %v831_v21 = vmax.f32 %v801_v15, 0.0 }
  0xfc   :  { %v704_v11 = vpop.f32.mrf.mxu2 }
  0xfd   :  { %v705_v39 = vadd.f32 %v704_v11, %v656_v10 }
  0xfe   :  { %v753_v12 = vpop.f32.mrf.mxu3  ;;  %v658_v13 = vpop.f32.mrf.mxu1 }
  0xff   :  { %v754_v16 = vadd.f32 %v753_v12, %v705_v39  ;;  %v659_v27 = vadd.f32 %v658_v13, %v1696_v20 }
 0x100   :  { %v805_v17 = vpop.f32.mrf.mxu0 }
 0x101   :  { %v803_v19 = vadd.f32 %v802_v7, %v754_v16 }
 0x103   :  { %v832_v24 = vmax.f32 %v803_v19, 0.0 }
 0x104   :  { %v707_v25 = vpop.f32.mrf.mxu2 }
 0x105   :  { %v1283_v26 = vpack.c.bf16 %v832_v24, %v831_v21  ;;  %v708_v18 = vadd.f32 %v707_v25, %v659_v27 }
 0x106   :  { %v756_v28 = vpop.f32.mrf.mxu3  ;;  %v660_v29 = vpop.f32.mrf.mxu1 }
 0x107   :  { %1307 = vst [vmem:[%s1797_s3 + $0x18] sm:$0xff] %v1283_v26   ;;  %v757_v30 = vadd.f32 %v756_v28, %v708_v18  ;;  %v661_v31 = vadd.f32 %v660_v29, %v1728_v34 }
 0x108   :  { %v807_v47 = vpop.f32.mrf.mxu0 }
 0x109   :  { %v806_v37 = vadd.f32 %v805_v17, %v757_v30 }
 0x10b   :  { %v833_v20 = vmax.f32 %v806_v37, 0.0 }
 0x10c   :  { %v709_v32 = vpop.f32.mrf.mxu2 }
 0x10d   :  { %v710_v33 = vadd.f32 %v709_v32, %v661_v31 }
 0x10e   :  { %v758_v35 = vpop.f32.mrf.mxu3  ;;  %v663_v36 = vpop.f32.mrf.mxu1 }
 0x10f   :  { %v759_v40 = vadd.f32 %v758_v35, %v710_v33  ;;  %v664_v49 = vadd.f32 %v663_v36, %v1737_v44 }
 0x110   :  { %v810_v41 = vpop.f32.mrf.mxu0 }
 0x111   :  { %v808_v42 = vadd.f32 %v807_v47, %v759_v40 }
 0x113   :  { %v834_v43 = vmax.f32 %v808_v42, 0.0 }
 0x114   :  { %v712_v45 = vpop.f32.mrf.mxu2 }
 0x115   :  { %v1288_v48 = vpack.c.bf16 %v834_v43, %v833_v20  ;;  %v713_v34 = vadd.f32 %v712_v45, %v664_v49 }
 0x116   :  { %v761_v51 = vpop.f32.mrf.mxu3  ;;  %v665_v53 = vpop.f32.mrf.mxu1 }
 0x117   :  { %1308 = vst [vmem:[%s1797_s3 + $0x20] sm:$0xff] %v1288_v48   ;;  %v762_v55 = vadd.f32 %v761_v51, %v713_v34  ;;  %v666_v56 = vadd.f32 %v665_v53, %v1745_v50 }
 0x118   :  { %v812_v54 = vpop.f32.mrf.mxu0 }
 0x119   :  { %v811_v60 = vadd.f32 %v810_v41, %v762_v55 }
 0x11b   :  { %v835_v44 = vmax.f32 %v811_v60, 0.0 }
 0x11c   :  { %v714_v14 = vpop.f32.mrf.mxu2 }
 0x11d   :  { %v715_v57 = vadd.f32 %v714_v14, %v666_v56 }
 0x11e   :  { %v763_v58 = vpop.f32.mrf.mxu3  ;;  %v668_v59 = vpop.f32.mrf.mxu1 }
 0x11f   :  { %v764_v61 = vadd.f32 %v763_v58, %v715_v57  ;;  %v669_v3 = vadd.f32 %v668_v59, %v1699_v22 }
 0x120   :  { %v815_v63 = vpop.f32.mrf.mxu0 }
 0x121   :  { %v813_v62 = vadd.f32 %v812_v54, %v764_v61 }
 0x123   :  { %v836_v0 = vmax.f32 %v813_v62, 0.0 }
 0x124   :  { %v717_v1 = vpop.f32.mrf.mxu2 }
 0x125   :  { %v1293_v2 = vpack.c.bf16 %v836_v0, %v835_v44  ;;  %v718_v50 = vadd.f32 %v717_v1, %v669_v3 }
 0x126   :  { %v766_v4 = vpop.f32.mrf.mxu3  ;;  %v670_v5 = vpop.f32.mrf.mxu1 }
 0x127   :  { %1309 = vst [vmem:[%s1797_s3 + $0x28] sm:$0xff] %v1293_v2   ;;  %v767_v23 = vadd.f32 %v766_v4, %v718_v50  ;;  %v671_v6 = vadd.f32 %v670_v5, %v1731_v38 }
 0x128   :  { %v817_v7 = vpop.f32.mrf.mxu0 }
 0x129   :  { %v816_v39 = vadd.f32 %v815_v63, %v767_v23 }
 0x12b   :  { %v837_v15 = vmax.f32 %v816_v39, 0.0 }
 0x12c   :  { %v719_v8 = vpop.f32.mrf.mxu2 }
 0x12d   :  { %v720_v9 = vadd.f32 %v719_v8, %v671_v6 }
 0x12e   :  { %v768_v10 = vpop.f32.mrf.mxu3  ;;  %v673_v11 = vpop.f32.mrf.mxu1 }
 0x12f   :  { %v769_v12 = vadd.f32 %v768_v10, %v720_v9  ;;  %v674_v19 = vadd.f32 %v673_v11, %v1740_v46 }
 0x130   :  { %v820_v24 = vpop.f32.mrf.mxu0 }
 0x131   :  { %v818_v13 = vadd.f32 %v817_v7, %v769_v12 }
 0x133   :  { %v838_v22 = vmax.f32 %v818_v13, 0.0 }
 0x134   :  { %v722_v16 = vpop.f32.mrf.mxu2 }
 0x135   :  { %v1298_v17 = vpack.c.bf16 %v838_v22, %v837_v15  ;;  %v723_v38 = vadd.f32 %v722_v16, %v674_v19 }
 0x136   :  { %v771_v21 = vpop.f32.mrf.mxu3  ;;  %v675_v25 = vpop.f32.mrf.mxu1 }
 0x137   :  { %1310 = vst [vmem:[%s1797_s3 + $0x30] sm:$0xff] %v1298_v17   ;;  %v772_v26 = vadd.f32 %v771_v21, %v723_v38  ;;  %v676_v27 = vadd.f32 %v675_v25, %v1748_v52 }
 0x138   :  { %v822_v31 = vpop.f32.mrf.mxu0 }
 0x139   :  { %v821_v47 = vadd.f32 %v820_v24, %v772_v26 }
 0x13b   :  { %v839_v33 = vmax.f32 %v821_v47, 0.0 }
 0x13c   :  { %v724_v28 = vpop.f32.mrf.mxu2 }
 0x13d   :  { %v725_v29 = vadd.f32 %v724_v28, %v676_v27 }
 0x13e   :  { %v773_v18 = vpop.f32.mrf.mxu3 }
 0x13f   :  { %v774_v30 = vadd.f32 %v773_v18, %v725_v29 }
 0x141   :  { %v823_v32 = vadd.f32 %v822_v31, %v774_v30 }
 0x143   :  { %v840_v46 = vmax.f32 %v823_v32, 0.0 }
 0x145   :  { %v1303_v35 = vpack.c.bf16 %v840_v46, %v839_v33 }
 0x147   :  { %1311 = vst [vmem:[%s1797_s3 + $0x38] sm:$0xff] %v1303_v35  }

// kernel: align_net_forward.23
= control target key start
LH: loop header
LB: loop body
LE: loop exit
PB: predicated region body
PF: predicated region fallthrough
CT: control target
= control target key end

     0   :  { %vm443_vm0 = vcmask 130048   ;;  %s2219_s1 = inlined_call_operand.vmem [shape: bf16[144,128], index: 1, kind: input, shape index: {}]   ;;  %s2220_s0 = inlined_call_operand.vmem [shape: bf16[512,144], index: 0, kind: input, shape index: {}]   ;;  %s2221_s2 = inlined_call_operand.vmem [shape: f32[1,128], index: 2, kind: input, shape index: {}]   ;;  %s2222_s3 = inlined_call_operand.vmem [shape: f32[512,128], index: 3, kind: output, shape index: {}]  }
   0x1   :  { %v1405_v0 = vld [vmem:[%s2219_s1 + $0x38] sm:$0xff]  ;;  %v1406_v1 = vld [vmem:[%s2219_s1 + $0x40] sm:$0xff]  ;;  %v1014_v3 = vld [vmem:[%s2220_s0 + $0x8] sm:$0xf0] }
   0x2   :  { %v1334_v2 = vld [vmem:[%s2220_s0 + $0x4] sm:$0xf]  ;;  %540 = vmatpush.bf16.msra.mxu0 %v1405_v0  ;;  %1407 = vmatpush.bf16.msra.mxu2 %v1405_v0  ;;  %v1404_v5 = vld [vmem:[%s2219_s1 + $0x30] sm:$0xff]  ;;  %v1403_v6 = vld [vmem:[%s2219_s1 + $0x28] sm:$0xff] }
   0x3   :  { %v1017_v4 = vor.u32 %v1334_v2, %v1014_v3  ;;  %716 = vmatpush.bf16.msra.mxu1 %v1406_v1  ;;  %1415 = vmatpush.bf16.msra.mxu3 %v1406_v1  ;;  %v1368_v7 = vld [vmem:[%s2220_s0 + $0x114] sm:$0xf]  ;;  %v1150_v8 = vld [vmem:[%s2220_s0 + $0x118] sm:$0xf0]  ;;  %v1402_v10 = vld [vmem:[%s2219_s1 + $0x20] sm:$0xff] }
   0x4   :  { %v1153_v9 = vor.u32 %v1368_v7, %v1150_v8  ;;  %v1401_v11 = vld [vmem:[%s2219_s1 + $0x18] sm:$0xff]  ;;  %v1336_v12 = vld [vmem:[%s2220_s0 + $0x14] sm:$0xf]  ;;  %v1399_v16 = vld [vmem:[%s2219_s1 + $0x8] sm:$0xff] }
   0x5   :  { %v1022_v13 = vld [vmem:[%s2220_s0 + $0x18] sm:$0xf0]  ;;  %v1400_v15 = vld [vmem:[%s2219_s1 + $0x10] sm:$0xff]  ;;  %v1370_v17 = vld [vmem:[%s2220_s0 + $0x124] sm:$0xf] }
   0x6   :  { %1302 = vmatmul.msk.bf16.vlgmr.msra.gmra.mxu1 %vm443_vm0, %v1017_v4  ;;  %541 = vmatpush.bf16.msra.mxu0 %v1404_v5  ;;  %v1025_v14 = vor.u32 %v1336_v12, %v1022_v13  ;;  %v1158_v18 = vld [vmem:[%s2220_s0 + $0x128] sm:$0xf0]  ;;  %v1398_v20 = vld [vmem:[%s2219_s1] sm:$0xff]  ;;  %v1335_v22 = vld [vmem:[%s2220_s0 + $0x4] sm:$0xf0] }
   0x7   :  { %1408 = vmatpush.bf16.msra.mxu2 %v1404_v5  ;;  %1319 = vmatmul.msk.bf16.vlgmr.msra.gmra.mxu3 %vm443_vm0, %v1153_v9  ;;  %v1161_v19 = vor.u32 %v1370_v17, %v1158_v18  ;;  %v1012_v21 = vld [vmem:[%s2220_s0] sm:$0xf]  ;;  %v1367_v24 = vld [vmem:[%s2220_s0 + $0x104] sm:$0xf0]  ;;  %v1338_v27 = vld [vmem:[%s2220_s0 + $0x24] sm:$0xf] }
   0x8   :  { %v1140_v23 = vld [vmem:[%s2220_s0 + $0x100] sm:$0xf]  ;;  %v1013_v25 = vor.u32 %v1335_v22, %v1012_v21  ;;  %v1030_v28 = vld [vmem:[%s2220_s0 + $0x28] sm:$0xf0]  ;;  %v1372_v30 = vld [vmem:[%s2220_s0 + $0x134] sm:$0xf] }
   0x9   :  { %v1141_v26 = vor.u32 %v1367_v24, %v1140_v23  ;;  %v1033_v29 = vor.u32 %v1338_v27, %v1030_v28  ;;  %v1166_v31 = vld [vmem:[%s2220_s0 + $0x138] sm:$0xf0]  ;;  %v1020_v33 = vld [vmem:[%s2220_s0 + $0x10] sm:$0xf]  ;;  %v1337_v34 = vld [vmem:[%s2220_s0 + $0x14] sm:$0xf0] }
   0xa   :  { %542 = vmatpush.bf16.msra.mxu0 %v1403_v6  ;;  %v1169_v32 = vor.u32 %v1372_v30, %v1166_v31  ;;  %v1148_v35 = vld [vmem:[%s2220_s0 + $0x110] sm:$0xf]  ;;  %v1369_v36 = vld [vmem:[%s2220_s0 + $0x114] sm:$0xf0]  ;;  %v1021_v37 = vor.u32 %v1337_v34, %v1020_v33  ;;  %v1340_v39 = vld [vmem:[%s2220_s0 + $0x34] sm:$0xf] }
   0xb   :  { %1409 = vmatpush.bf16.msra.mxu2 %v1403_v6  ;;  %v1149_v38 = vor.u32 %v1369_v36, %v1148_v35  ;;  %v1038_v40 = vld [vmem:[%s2220_s0 + $0x38] sm:$0xf0]  ;;  %v1374_v42 = vld [vmem:[%s2220_s0 + $0x144] sm:$0xf]  ;;  %v1174_v43 = vld [vmem:[%s2220_s0 + $0x148] sm:$0xf0] }
   0xc   :  { %v1041_v41 = vor.u32 %v1340_v39, %v1038_v40  ;;  %v1177_v44 = vor.u32 %v1374_v42, %v1174_v43  ;;  %v1028_v45 = vld [vmem:[%s2220_s0 + $0x20] sm:$0xf]  ;;  %v1339_v46 = vld [vmem:[%s2220_s0 + $0x24] sm:$0xf0]  ;;  %v1342_v51 = vld [vmem:[%s2220_s0 + $0x44] sm:$0xf] }
   0xd   :  { %v1156_v47 = vld [vmem:[%s2220_s0 + $0x120] sm:$0xf]  ;;  %v1371_v48 = vld [vmem:[%s2220_s0 + $0x124] sm:$0xf0]  ;;  %v1029_v49 = vor.u32 %v1339_v46, %v1028_v45  ;;  %v1046_v52 = vld [vmem:[%s2220_s0 + $0x48] sm:$0xf0] }
   0xe   :  { %543 = vmatpush.bf16.msra.mxu0 %v1402_v10  ;;  %v1157_v50 = vor.u32 %v1371_v48, %v1156_v47  ;;  %v1049_v53 = vor.u32 %v1342_v51, %v1046_v52  ;;  %v1376_v54 = vld [vmem:[%s2220_s0 + $0x154] sm:$0xf]  ;;  %v1182_v55 = vld [vmem:[%s2220_s0 + $0x158] sm:$0xf0]  ;;  %v1036_v57 = vld [vmem:[%s2220_s0 + $0x30] sm:$0xf] }
   0xf   :  { %1410 = vmatpush.bf16.msra.mxu2 %v1402_v10  ;;  %v1185_v56 = vor.u32 %v1376_v54, %v1182_v55  ;;  %v1341_v58 = vld [vmem:[%s2220_s0 + $0x34] sm:$0xf0]  ;;  %v1164_v59 = vld [vmem:[%s2220_s0 + $0x130] sm:$0xf]  ;;  %v1344_v63 = vld [vmem:[%s2220_s0 + $0x54] sm:$0xf] }
  0x10   :  { %v1373_v60 = vld [vmem:[%s2220_s0 + $0x134] sm:$0xf0]  ;;  %v1037_v61 = vor.u32 %v1341_v58, %v1036_v57  ;;  %v1054_v0 = vld [vmem:[%s2220_s0 + $0x58] sm:$0xf0]  ;;  %v1378_v2 = vld [vmem:[%s2220_s0 + $0x164] sm:$0xf] }
  0x11   :  { %v1165_v62 = vor.u32 %v1373_v60, %v1164_v59  ;;  %v1057_v1 = vor.u32 %v1344_v63, %v1054_v0  ;;  %v1190_v3 = vld [vmem:[%s2220_s0 + $0x168] sm:$0xf0]  ;;  %v1044_v5 = vld [vmem:[%s2220_s0 + $0x40] sm:$0xf]  ;;  %v1343_v6 = vld [vmem:[%s2220_s0 + $0x44] sm:$0xf0] }
  0x12   :  { %544 = vmatpush.bf16.msra.mxu0 %v1401_v11  ;;  %v1193_v4 = vor.u32 %v1378_v2, %v1190_v3  ;;  %v1172_v7 = vld [vmem:[%s2220_s0 + $0x140] sm:$0xf]  ;;  %v1375_v8 = vld [vmem:[%s2220_s0 + $0x144] sm:$0xf0]  ;;  %v1045_v9 = vor.u32 %v1343_v6, %v1044_v5  ;;  %v1062_v12 = vld [vmem:[%s2220_s0 + $0x68] sm:$0xf0] }
  0x13   :  { %1411 = vmatpush.bf16.msra.mxu2 %v1401_v11  ;;  %v1173_v10 = vor.u32 %v1375_v8, %v1172_v7  ;;  %v1346_v11 = vld [vmem:[%s2220_s0 + $0x64] sm:$0xf]  ;;  %v1345_v17 = vld [vmem:[%s2220_s0 + $0x54] sm:$0xf0]  ;;  %v1348_v23 = vld [vmem:[%s2220_s0 + $0x74] sm:$0xf] }
  0x14   :  { %v1065_v13 = vor.u32 %v1346_v11, %v1062_v12  ;;  %v1070_v24 = vld [vmem:[%s2220_s0 + $0x78] sm:$0xf0]  ;;  %v1206_v27 = vld [vmem:[%s2220_s0 + $0x188] sm:$0xf0]  ;;  %v1060_v28 = vld [vmem:[%s2220_s0 + $0x60] sm:$0xf] }
  0x15   :  { %v1188_v31 = vld [vmem:[%s2220_s0 + $0x160] sm:$0xf]  ;;  %v1350_v35 = vld [vmem:[%s2220_s0 + $0x84] sm:$0xf]  ;;  %v1078_v36 = vld [vmem:[%s2220_s0 + $0x88] sm:$0xf0] }
  0x16   :  { %1303 = vmatmul.msk.bf16.gmra.mxu1 %vm443_vm0, %v1025_v14  ;;  %545 = vmatpush.bf16.msra.mxu0 %v1400_v15  ;;  %v1380_v14 = vld [vmem:[%s2220_s0 + $0x174] sm:$0xf]  ;;  %v1214_v40 = vld [vmem:[%s2220_s0 + $0x198] sm:$0xf0]  ;;  %v1349_v42 = vld [vmem:[%s2220_s0 + $0x74] sm:$0xf0] }
  0x17   :  { %1412 = vmatpush.bf16.msra.mxu2 %v1400_v15  ;;  %1320 = vmatmul.msk.bf16.gmra.mxu3 %vm443_vm0, %v1161_v19  ;;  %v1198_v15 = vld [vmem:[%s2220_s0 + $0x178] sm:$0xf0]  ;;  %v1180_v19 = vld [vmem:[%s2220_s0 + $0x150] sm:$0xf]  ;;  %v1384_v39 = vld [vmem:[%s2220_s0 + $0x194] sm:$0xf] }
  0x18   :  { %v1201_v18 = vor.u32 %v1380_v14, %v1198_v15  ;;  %v1217_v43 = vor.u32 %v1384_v39, %v1214_v40  ;;  %v1196_v45 = vld [vmem:[%s2220_s0 + $0x170] sm:$0xf]  ;;  %v1381_v46 = vld [vmem:[%s2220_s0 + $0x174] sm:$0xf0]  ;;  %v1386_v55 = vld [vmem:[%s2220_s0 + $0x1a4] sm:$0xf] }
  0x19   :  { %v1197_v48 = vor.u32 %v1381_v46, %v1196_v45  ;;  %v1076_v57 = vld [vmem:[%s2220_s0 + $0x80] sm:$0xf]  ;;  %v1351_v58 = vld [vmem:[%s2220_s0 + $0x84] sm:$0xf0]  ;;  %v1094_v5 = vld [vmem:[%s2220_s0 + $0xa8] sm:$0xf0] }
  0x1a   :  { %546 = vmatpush.bf16.msra.mxu0 %v1399_v16  ;;  %v1383_v63 = vld [vmem:[%s2220_s0 + $0x184] sm:$0xf0]  ;;  %v1077_v0 = vor.u32 %v1351_v58, %v1076_v57  ;;  %v1238_v45 = vld [vmem:[%s2220_s0 + $0x1c8] sm:$0xf0] }
  0x1b   :  { %1413 = vmatpush.bf16.msra.mxu2 %v1399_v16  ;;  %v1052_v16 = vld [vmem:[%s2220_s0 + $0x50] sm:$0xf] }
  0x1c   :  { %v1053_v21 = vor.u32 %v1345_v17, %v1052_v16  ;;  %v1388_v16 = vld [vmem:[%s2220_s0 + $0x1b4] sm:$0xf]  ;;  %v1230_v17 = vld [vmem:[%s2220_s0 + $0x1b8] sm:$0xf0] }
  0x1e   :  { %547 = vmatpush.bf16.msra.mxu0 %v1398_v20 }
  0x1f   :  { %1414 = vmatpush.bf16.msra.mxu2 %v1398_v20  ;;  %v1377_v20 = vld [vmem:[%s2220_s0 + $0x154] sm:$0xf0] }
  0x20   :  { %v1181_v22 = vor.u32 %v1377_v20, %v1180_v19  ;;  %v1353_v19 = vld [vmem:[%s2220_s0 + $0x94] sm:$0xf0]  ;;  %v1233_v20 = vor.u32 %v1388_v16, %v1230_v17  ;;  %v1392_v16 = vld [vmem:[%s2220_s0 + $0x1d4] sm:$0xf]  ;;  %v1246_v17 = vld [vmem:[%s2220_s0 + $0x1d8] sm:$0xf0] }
  0x21   :  { %548 = vmatmul.bf16.vlgmr.msra.gmra.mxu0 %v1013_v25  ;;  %v1073_v25 = vor.u32 %v1348_v23, %v1070_v24  ;;  %v1212_v23 = vld [vmem:[%s2220_s0 + $0x190] sm:$0xf]  ;;  %v1385_v24 = vld [vmem:[%s2220_s0 + $0x194] sm:$0xf0] }
  0x22   :  { %628 = vmatmul.bf16.vlgmr.msra.gmra.mxu2 %v1141_v26  ;;  %v1382_v26 = vld [vmem:[%s2220_s0 + $0x184] sm:$0xf] }
  0x23   :  { %v1209_v30 = vor.u32 %v1382_v26, %v1206_v27 }
  0x26   :  { %1304 = vmatmul.msk.bf16.gmra.mxu1 %vm443_vm0, %v1033_v29  ;;  %v1347_v29 = vld [vmem:[%s2220_s0 + $0x64] sm:$0xf0] }
  0x27   :  { %1321 = vmatmul.msk.bf16.gmra.mxu3 %vm443_vm0, %v1169_v32  ;;  %v1379_v32 = vld [vmem:[%s2220_s0 + $0x164] sm:$0xf0]  ;;  %v1061_v33 = vor.u32 %v1347_v29, %v1060_v28  ;;  %v1213_v28 = vor.u32 %v1385_v24, %v1212_v23  ;;  %v1228_v23 = vld [vmem:[%s2220_s0 + $0x1b0] sm:$0xf]  ;;  %v1389_v24 = vld [vmem:[%s2220_s0 + $0x1b4] sm:$0xf0] }
  0x28   :  { %v1189_v34 = vor.u32 %v1379_v32, %v1188_v31  ;;  %v1102_v31 = vld [vmem:[%s2220_s0 + $0xb8] sm:$0xf0] }
  0x31   :  { %553 = vmatmul.bf16.gmra.mxu0 %v1021_v37  ;;  %v1081_v37 = vor.u32 %v1350_v35, %v1078_v36 }
  0x32   :  { %633 = vmatmul.bf16.gmra.mxu2 %v1149_v38 }
  0x36   :  { %1305 = vmatmul.msk.bf16.gmra.mxu1 %vm443_vm0, %v1041_v41  ;;  %v1068_v41 = vld [vmem:[%s2220_s0 + $0x70] sm:$0xf] }
  0x37   :  { %1322 = vmatmul.msk.bf16.gmra.mxu3 %vm443_vm0, %v1177_v44  ;;  %v1069_v47 = vor.u32 %v1349_v42, %v1068_v41 }
  0x41   :  { %558 = vmatmul.bf16.gmra.mxu0 %v1029_v49  ;;  %v1352_v49 = vld [vmem:[%s2220_s0 + $0x94] sm:$0xf] }
  0x42   :  { %638 = vmatmul.bf16.gmra.mxu2 %v1157_v50  ;;  %v1086_v50 = vld [vmem:[%s2220_s0 + $0x98] sm:$0xf0] }
  0x43   :  { %v1089_v52 = vor.u32 %v1352_v49, %v1086_v50 }
  0x46   :  { %1306 = vmatmul.msk.bf16.gmra.mxu1 %vm443_vm0, %v1049_v53 }
  0x47   :  { %1323 = vmatmul.msk.bf16.gmra.mxu3 %vm443_vm0, %v1185_v56  ;;  %v1222_v56 = vld [vmem:[%s2220_s0 + $0x1a8] sm:$0xf0] }
  0x48   :  { %v1225_v59 = vor.u32 %v1386_v55, %v1222_v56 }
  0x51   :  { %563 = vmatmul.bf16.gmra.mxu0 %v1037_v61  ;;  %v1712_v61 = vld [vmem:[%s2221_s2] ss:$0 sm:$0xff] }
  0x52   :  { %643 = vmatmul.bf16.gmra.mxu2 %v1165_v62  ;;  %v1204_v62 = vld [vmem:[%s2220_s0 + $0x180] sm:$0xf] }
  0x53   :  { %v1205_v2 = vor.u32 %v1383_v63, %v1204_v62  ;;  %v1358_v62 = vld [vmem:[%s2220_s0 + $0xc4] sm:$0xf]  ;;  %v1110_v63 = vld [vmem:[%s2220_s0 + $0xc8] sm:$0xf0] }
  0x56   :  { %1307 = vmatmul.msk.bf16.gmra.mxu1 %vm443_vm0, %v1057_v1 }
  0x57   :  { %1324 = vmatmul.msk.bf16.gmra.mxu3 %vm443_vm0, %v1193_v4  ;;  %v1354_v4 = vld [vmem:[%s2220_s0 + $0xa4] sm:$0xf] }
  0x58   :  { %v1097_v8 = vor.u32 %v1354_v4, %v1094_v5  ;;  %v1113_v4 = vor.u32 %v1358_v62, %v1110_v63 }
  0x61   :  { %568 = vmatmul.bf16.gmra.mxu0 %v1045_v9 }
  0x62   :  { %648 = vmatmul.bf16.gmra.mxu2 %v1173_v10 }
  0x66   :  { %1308 = vmatmul.msk.bf16.gmra.mxu1 %vm443_vm0, %v1065_v13 }
  0x67   :  { %1325 = vmatmul.msk.bf16.gmra.mxu3 %vm443_vm0, %v1201_v18  ;;  %v1084_v18 = vld [vmem:[%s2220_s0 + $0x90] sm:$0xf] }
  0x68   :  { %v1085_v26 = vor.u32 %v1353_v19, %v1084_v18  ;;  %v1100_v19 = vld [vmem:[%s2220_s0 + $0xb0] sm:$0xf] }
  0x71   :  { %573 = vmatmul.bf16.gmra.mxu0 %v1053_v21 }
  0x72   :  { %653 = vmatmul.bf16.gmra.mxu2 %v1181_v22 }
  0x76   :  { %1309 = vmatmul.msk.bf16.gmra.mxu1 %vm443_vm0, %v1073_v25 }
  0x77   :  { %1326 = vmatmul.msk.bf16.gmra.mxu3 %vm443_vm0, %v1209_v30  ;;  %v1356_v30 = vld [vmem:[%s2220_s0 + $0xb4] sm:$0xf] }
  0x81   :  { %578 = vmatmul.bf16.gmra.mxu0 %v1061_v33 }
  0x82   :  { %658 = vmatmul.bf16.gmra.mxu2 %v1189_v34  ;;  %v1105_v34 = vor.u32 %v1356_v30, %v1102_v31  ;;  %v1229_v30 = vor.u32 %v1389_v24, %v1228_v23  ;;  %v1116_v23 = vld [vmem:[%s2220_s0 + $0xd0] sm:$0xf]  ;;  %v1361_v24 = vld [vmem:[%s2220_s0 + $0xd4] sm:$0xf0] }
  0x83   :  { %v718_v38 = vpop.f32.mrf.mxu1 }
  0x86   :  { %1310 = vmatmul.msk.bf16.gmra.mxu1 %vm443_vm0, %v1081_v37 }
  0x87   :  { %1327 = vmatmul.msk.bf16.gmra.mxu3 %vm443_vm0, %v1217_v43 }
  0x8a   :  { %v1692_v51 = vpop.f32.mrf.mxu3 }
  0x8b   :  { %v720_v44 = vpop.f32.mrf.mxu1 }
  0x91   :  { %583 = vmatmul.bf16.gmra.mxu0 %v1069_v47  ;;  %v1092_v47 = vld [vmem:[%s2220_s0 + $0xa0] sm:$0xf] }
  0x92   :  { %663 = vmatmul.bf16.gmra.mxu2 %v1197_v48  ;;  %v1695_v54 = vpop.f32.mrf.mxu3  ;;  %v1355_v48 = vld [vmem:[%s2220_s0 + $0xa4] sm:$0xf0] }
  0x93   :  { %v723_v53 = vpop.f32.mrf.mxu1  ;;  %v1093_v56 = vor.u32 %v1355_v48, %v1092_v47 }
  0x96   :  { %1311 = vmatmul.msk.bf16.gmra.mxu1 %vm443_vm0, %v1089_v52  ;;  %v1220_v52 = vld [vmem:[%s2220_s0 + $0x1a0] sm:$0xf] }
  0x97   :  { %1328 = vmatmul.msk.bf16.gmra.mxu3 %vm443_vm0, %v1225_v59 }
  0x9a   :  { %v1728_v6 = vpop.f32.mrf.mxu3 }
  0x9b   :  { %v725_v60 = vpop.f32.mrf.mxu1 }
  0x9e   :  { %v549_v1 = vpop.f32.mrf.mxu0 }
  0x9f   :  { %v550_v3 = vadd.f32 %v1712_v61, %v549_v1 }
  0xa1   :  { %v719_v7 = vadd.f32 %v718_v38, %v550_v3  ;;  %588 = vmatmul.bf16.gmra.mxu0 %v1077_v0 }
  0xa2   :  { %668 = vmatmul.bf16.gmra.mxu2 %v1205_v2  ;;  %v1739_v14 = vpop.f32.mrf.mxu3 }
  0xa3   :  { %v878_v9 = vmax.f32 %v719_v7, 0.0  ;;  %v1730_v10 = vpop.f32.mrf.mxu1 }
  0xa5   :  { %942 = vst [vmem:[%s2222_s3] sm:$0xff] %v878_v9  ;;  %v1735_v11 = vpop.f32.mrf.mxu2 }
  0xa6   :  { %1312 = vmatmul.msk.bf16.gmra.mxu1 %vm443_vm0, %v1097_v8  ;;  %v551_v12 = vpop.f32.mrf.mxu0 }
  0xa7   :  { %v552_v13 = vadd.f32 %v1712_v61, %v551_v12  ;;  %1329 = vmatmul.msk.bf16.gmra.mxu3 %vm443_vm0, %v1233_v20  ;;  %v1357_v20 = vld [vmem:[%s2220_s0 + $0xb4] sm:$0xf0] }
  0xa9   :  { %v721_v15 = vadd.f32 %v720_v44, %v552_v13  ;;  %v1390_v44 = vld [vmem:[%s2220_s0 + $0x1c4] sm:$0xf] }
  0xaa   :  { %v1774_v32 = vpop.f32.mrf.mxu3  ;;  %v1241_v49 = vor.u32 %v1390_v44, %v1238_v45 }
  0xab   :  { %v879_v21 = vmax.f32 %v721_v15, 0.0  ;;  %v1753_v22 = vpop.f32.mrf.mxu1 }
  0xad   :  { %943 = vst [vmem:[%s2222_s3 + $0x8] sm:$0xff] %v879_v21  ;;  %v1765_v25 = vpop.f32.mrf.mxu2 }
  0xae   :  { %v554_v27 = vpop.f32.mrf.mxu0 }
  0xaf   :  { %v555_v29 = vadd.f32 %v1712_v61, %v554_v27  ;;  %v1101_v27 = vor.u32 %v1357_v20, %v1100_v19  ;;  %v1396_v20 = vld [vmem:[%s2220_s0 + $0x1f4] sm:$0xf] }
  0xb1   :  { %v724_v33 = vadd.f32 %v723_v53, %v555_v29  ;;  %593 = vmatmul.bf16.gmra.mxu0 %v1085_v26  ;;  %v1387_v53 = vld [vmem:[%s2220_s0 + $0x1a4] sm:$0xf0] }
  0xb2   :  { %673 = vmatmul.bf16.gmra.mxu2 %v1213_v28  ;;  %v1784_v41 = vpop.f32.mrf.mxu3  ;;  %v1221_v59 = vor.u32 %v1387_v53, %v1220_v52  ;;  %v1108_v53 = vld [vmem:[%s2220_s0 + $0xc0] sm:$0xf] }
  0xb3   :  { %v880_v35 = vmax.f32 %v724_v33, 0.0  ;;  %v1776_v36 = vpop.f32.mrf.mxu1  ;;  %v1360_v33 = vld [vmem:[%s2220_s0 + $0xd4] sm:$0xf] }
  0xb5   :  { %944 = vst [vmem:[%s2222_s3 + $0x10] sm:$0xff] %v880_v35  ;;  %v634_v37 = vpop.f32.mrf.mxu2 }
  0xb6   :  { %v635_v38 = vadd.f32 %v1712_v61, %v634_v37  ;;  %1313 = vmatmul.msk.bf16.gmra.mxu1 %vm443_vm0, %v1105_v34  ;;  %v556_v39 = vpop.f32.mrf.mxu0  ;;  %v1118_v34 = vld [vmem:[%s2220_s0 + $0xd8] sm:$0xf0] }
  0xb7   :  { %v557_v40 = vadd.f32 %v1712_v61, %v556_v39  ;;  %1330 = vmatmul.msk.bf16.gmra.mxu3 %vm443_vm0, %v1241_v49  ;;  %v1394_v49 = vld [vmem:[%s2220_s0 + $0x1e4] sm:$0xf] }
  0xb8   :  { %v804_v42 = vadd.f32 %v1692_v51, %v635_v38 }
  0xb9   :  { %v726_v43 = vadd.f32 %v725_v60, %v557_v40  ;;  %v1121_v40 = vor.u32 %v1360_v33, %v1118_v34 }
  0xba   :  { %v912_v46 = vmax.f32 %v804_v42, 0.0  ;;  %v1822_v0 = vpop.f32.mrf.mxu3 }
  0xbb   :  { %v881_v50 = vmax.f32 %v726_v43, 0.0  ;;  %v1799_v51 = vpop.f32.mrf.mxu1 }
  0xbc   :  { %976 = vst [vmem:[%s2222_s3 + $0x110] sm:$0xff] %v912_v46 }
  0xbd   :  { %945 = vst [vmem:[%s2222_s3 + $0x18] sm:$0xff] %v881_v50  ;;  %v636_v55 = vpop.f32.mrf.mxu2  ;;  %v1254_v50 = vld [vmem:[%s2220_s0 + $0x1e8] sm:$0xf0] }
  0xbe   :  { %v637_v57 = vadd.f32 %v1712_v61, %v636_v55  ;;  %v559_v58 = vpop.f32.mrf.mxu0  ;;  %v1359_v55 = vld [vmem:[%s2220_s0 + $0xc4] sm:$0xf0] }
  0xbf   :  { %v560_v60 = vadd.f32 %v1712_v61, %v559_v58  ;;  %v1391_v58 = vld [vmem:[%s2220_s0 + $0x1c4] sm:$0xf0] }
  0xc0   :  { %v806_v1 = vadd.f32 %v1695_v54, %v637_v57  ;;  %v1236_v57 = vld [vmem:[%s2220_s0 + $0x1c0] sm:$0xf] }
  0xc1   :  { %v729_v2 = vadd.f32 %v1730_v10, %v560_v60  ;;  %598 = vmatmul.bf16.gmra.mxu0 %v1093_v56  ;;  %v1109_v60 = vor.u32 %v1359_v55, %v1108_v53 }
  0xc2   :  { %v913_v3 = vmax.f32 %v806_v1, 0.0  ;;  %678 = vmatmul.bf16.gmra.mxu2 %v1221_v59  ;;  %v1837_v12 = vpop.f32.mrf.mxu3  ;;  %v1237_v1 = vor.u32 %v1391_v58, %v1236_v57 }
  0xc3   :  { %v882_v5 = vmax.f32 %v729_v2, 0.0  ;;  %v1826_v7 = vpop.f32.mrf.mxu1 }
  0xc4   :  { %977 = vst [vmem:[%s2222_s3 + $0x118] sm:$0xff] %v913_v3  ;;  %v1362_v3 = vld [vmem:[%s2220_s0 + $0xe4] sm:$0xf] }
  0xc5   :  { %946 = vst [vmem:[%s2222_s3 + $0x20] sm:$0xff] %v882_v5  ;;  %v639_v8 = vpop.f32.mrf.mxu2 }
  0xc6   :  { %v640_v54 = vadd.f32 %v1712_v61, %v639_v8  ;;  %1314 = vmatmul.msk.bf16.gmra.mxu1 %vm443_vm0, %v1113_v4  ;;  %v561_v9 = vpop.f32.mrf.mxu0  ;;  %v1126_v4 = vld [vmem:[%s2220_s0 + $0xe8] sm:$0xf0] }
  0xc7   :  { %v562_v10 = vadd.f32 %v1712_v61, %v561_v9 }
  0xc8   :  { %v809_v13 = vadd.f32 %v1728_v6, %v640_v54  ;;  %v1249_v6 = vor.u32 %v1392_v16, %v1246_v17 }
  0xc9   :  { %v731_v15 = vadd.f32 %v1753_v22, %v562_v10  ;;  %v1129_v10 = vor.u32 %v1362_v3, %v1126_v4  ;;  %v1366_v3 = vld [vmem:[%s2220_s0 + $0x104] sm:$0xf]  ;;  %v1142_v4 = vld [vmem:[%s2220_s0 + $0x108] sm:$0xf0] }
  0xca   :  { %v914_v18 = vmax.f32 %v809_v13, 0.0  ;;  %1331 = vmatmul.msk.bf16.gmra.mxu3 %vm443_vm0, %v1249_v6  ;;  %v1876_v35 = vpop.f32.mrf.mxu3  ;;  %v1262_v6 = vld [vmem:[%s2220_s0 + $0x1f8] sm:$0xf0] }
  0xcb   :  { %v883_v21 = vmax.f32 %v731_v15, 0.0  ;;  %v1853_v22 = vpop.f32.mrf.mxu1 }
  0xcc   :  { %978 = vst [vmem:[%s2222_s3 + $0x120] sm:$0xff] %v914_v18 }
  0xcd   :  { %947 = vst [vmem:[%s2222_s3 + $0x28] sm:$0xff] %v883_v21  ;;  %v641_v26 = vpop.f32.mrf.mxu2 }
  0xce   :  { %v642_v28 = vadd.f32 %v1712_v61, %v641_v26  ;;  %v564_v29 = vpop.f32.mrf.mxu0 }
  0xcf   :  { %v565_v31 = vadd.f32 %v1712_v61, %v564_v29 }
  0xd0   :  { %v811_v37 = vadd.f32 %v1739_v14, %v642_v28  ;;  %v1393_v28 = vld [vmem:[%s2220_s0 + $0x1d4] sm:$0xf0] }
  0xd1   :  { %v734_v38 = vadd.f32 %v1776_v36, %v565_v31  ;;  %603 = vmatmul.bf16.gmra.mxu0 %v1101_v27  ;;  %v1244_v27 = vld [vmem:[%s2220_s0 + $0x1d0] sm:$0xf]  ;;  %v1117_v31 = vor.u32 %v1361_v24, %v1116_v23  ;;  %v1365_v23 = vld [vmem:[%s2220_s0 + $0xf4] sm:$0xf0] }
  0xd2   :  { %v915_v39 = vmax.f32 %v811_v37, 0.0  ;;  %683 = vmatmul.bf16.gmra.mxu2 %v1229_v30  ;;  %v1891_v46 = vpop.f32.mrf.mxu3  ;;  %v1245_v37 = vor.u32 %v1393_v28, %v1244_v27 }
  0xd3   :  { %v884_v42 = vmax.f32 %v734_v38, 0.0  ;;  %v1880_v43 = vpop.f32.mrf.mxu1 }
  0xd4   :  { %979 = vst [vmem:[%s2222_s3 + $0x128] sm:$0xff] %v915_v39  ;;  %v1364_v39 = vld [vmem:[%s2220_s0 + $0xf4] sm:$0xf] }
  0xd5   :  { %948 = vst [vmem:[%s2222_s3 + $0x30] sm:$0xff] %v884_v42  ;;  %v644_v44 = vpop.f32.mrf.mxu2 }
  0xd6   :  { %v645_v14 = vadd.f32 %v1712_v61, %v644_v44  ;;  %1315 = vmatmul.msk.bf16.gmra.mxu1 %vm443_vm0, %v1121_v40  ;;  %v566_v36 = vpop.f32.mrf.mxu0  ;;  %v1134_v40 = vld [vmem:[%s2220_s0 + $0xf8] sm:$0xf0] }
  0xd7   :  { %v567_v45 = vadd.f32 %v1712_v61, %v566_v36  ;;  %v1137_v36 = vor.u32 %v1364_v39, %v1134_v40 }
  0xd8   :  { %v814_v47 = vadd.f32 %v1774_v32, %v645_v14  ;;  %v1257_v32 = vor.u32 %v1394_v49, %v1254_v50 }
  0xd9   :  { %v736_v48 = vadd.f32 %v1799_v51, %v567_v45 }
  0xda   :  { %v916_v52 = vmax.f32 %v814_v47, 0.0  ;;  %1332 = vmatmul.msk.bf16.gmra.mxu3 %vm443_vm0, %v1257_v32  ;;  %v1932_v54 = vpop.f32.mrf.mxu3  ;;  %v1124_v32 = vld [vmem:[%s2220_s0 + $0xe0] sm:$0xf] }
  0xdb   :  { %v885_v56 = vmax.f32 %v736_v48, 0.0  ;;  %v1907_v51 = vpop.f32.mrf.mxu1 }
  0xdc   :  { %980 = vst [vmem:[%s2222_s3 + $0x130] sm:$0xff] %v916_v52 }
  0xdd   :  { %949 = vst [vmem:[%s2222_s3 + $0x38] sm:$0xff] %v885_v56  ;;  %v646_v59 = vpop.f32.mrf.mxu2  ;;  %v1363_v56 = vld [vmem:[%s2220_s0 + $0xe4] sm:$0xf0] }
  0xde   :  { %v647_v62 = vadd.f32 %v1712_v61, %v646_v59  ;;  %v569_v63 = vpop.f32.mrf.mxu0  ;;  %v1252_v59 = vld [vmem:[%s2220_s0 + $0x1e0] sm:$0xf] }
  0xdf   :  { %v570_v2 = vadd.f32 %v1712_v61, %v569_v63 }
  0xe0   :  { %v816_v5 = vadd.f32 %v1784_v41, %v647_v62 }
  0xe1   :  { %v739_v8 = vadd.f32 %v1826_v7, %v570_v2  ;;  %608 = vmatmul.bf16.gmra.mxu0 %v1109_v60  ;;  %v1125_v60 = vor.u32 %v1363_v56, %v1124_v32 }
  0xe2   :  { %v917_v9 = vmax.f32 %v816_v5, 0.0  ;;  %688 = vmatmul.bf16.gmra.mxu2 %v1237_v1  ;;  %v1967_v29 = vpop.f32.mrf.mxu3 }
  0xe3   :  { %v886_v13 = vmax.f32 %v739_v8, 0.0  ;;  %v1934_v15 = vpop.f32.mrf.mxu1 }
  0xe4   :  { %981 = vst [vmem:[%s2222_s3 + $0x138] sm:$0xff] %v917_v9 }
  0xe5   :  { %950 = vst [vmem:[%s2222_s3 + $0x40] sm:$0xff] %v886_v13  ;;  %v649_v41 = vpop.f32.mrf.mxu2  ;;  %v1145_v13 = vor.u32 %v1366_v3, %v1142_v4 }
  0xe6   :  { %v650_v7 = vadd.f32 %v1712_v61, %v649_v41  ;;  %1316 = vmatmul.msk.bf16.gmra.mxu1 %vm443_vm0, %v1129_v10  ;;  %v571_v16 = vpop.f32.mrf.mxu0 }
  0xe7   :  { %v572_v17 = vadd.f32 %v1712_v61, %v571_v16 }
  0xe8   :  { %v819_v18 = vadd.f32 %v1822_v0, %v650_v7  ;;  %v1265_v0 = vor.u32 %v1396_v20, %v1262_v6 }
  0xe9   :  { %v741_v19 = vadd.f32 %v1853_v22, %v572_v17 }
  0xea   :  { %v918_v21 = vmax.f32 %v819_v18, 0.0  ;;  %1333 = vmatmul.msk.bf16.gmra.mxu3 %vm443_vm0, %v1265_v0  ;;  %v1994_v49 = vpop.f32.mrf.mxu3 }
  0xeb   :  { %v887_v26 = vmax.f32 %v741_v19, 0.0  ;;  %v1959_v22 = vpop.f32.mrf.mxu1 }
  0xec   :  { %982 = vst [vmem:[%s2222_s3 + $0x140] sm:$0xff] %v918_v21  ;;  %v1132_v21 = vld [vmem:[%s2220_s0 + $0xf0] sm:$0xf] }
  0xed   :  { %951 = vst [vmem:[%s2222_s3 + $0x48] sm:$0xff] %v887_v26  ;;  %v651_v30 = vpop.f32.mrf.mxu2  ;;  %v1260_v26 = vld [vmem:[%s2220_s0 + $0x1f0] sm:$0xf]  ;;  %v1133_v27 = vor.u32 %v1365_v23, %v1132_v21 }
  0xee   :  { %v652_v33 = vadd.f32 %v1712_v61, %v651_v30  ;;  %v574_v34 = vpop.f32.mrf.mxu0 }
  0xef   :  { %v575_v38 = vadd.f32 %v1712_v61, %v574_v34 }
  0xf0   :  { %v821_v42 = vadd.f32 %v1837_v12, %v652_v33 }
  0xf1   :  { %v744_v44 = vadd.f32 %v1880_v43, %v575_v38  ;;  %613 = vmatmul.bf16.gmra.mxu0 %v1117_v31 }
  0xf2   :  { %v919_v14 = vmax.f32 %v821_v42, 0.0  ;;  %693 = vmatmul.bf16.gmra.mxu2 %v1245_v37  ;;  %v835_v5 = vpop.f32.mrf.mxu3 }
  0xf3   :  { %v888_v45 = vmax.f32 %v744_v44, 0.0  ;;  %v1986_v47 = vpop.f32.mrf.mxu1 }
  0xf4   :  { %983 = vst [vmem:[%s2222_s3 + $0x148] sm:$0xff] %v919_v14 }
  0xf5   :  { %952 = vst [vmem:[%s2222_s3 + $0x50] sm:$0xff] %v888_v45  ;;  %v654_v48 = vpop.f32.mrf.mxu2 }
  0xf6   :  { %v655_v12 = vadd.f32 %v1712_v61, %v654_v48  ;;  %1317 = vmatmul.msk.bf16.gmra.mxu1 %vm443_vm0, %v1137_v36  ;;  %v576_v43 = vpop.f32.mrf.mxu0 }
  0xf7   :  { %v577_v50 = vadd.f32 %v1712_v61, %v576_v43 }
  0xf8   :  { %v824_v52 = vadd.f32 %v1876_v35, %v655_v12  ;;  %v1395_v35 = vld [vmem:[%s2220_s0 + $0x1e4] sm:$0xf0] }
  0xf9   :  { %v746_v53 = vadd.f32 %v1907_v51, %v577_v50  ;;  %v1253_v1 = vor.u32 %v1395_v35, %v1252_v59 }
  0xfa   :  { %v920_v55 = vmax.f32 %v824_v52, 0.0  ;;  %v838_v20 = vpop.f32.mrf.mxu3 }
  0xfb   :  { %v889_v57 = vmax.f32 %v746_v53, 0.0  ;;  %v755_v58 = vpop.f32.mrf.mxu1 }
  0xfc   :  { %984 = vst [vmem:[%s2222_s3 + $0x150] sm:$0xff] %v920_v55 }
  0xfd   :  { %953 = vst [vmem:[%s2222_s3 + $0x58] sm:$0xff] %v889_v57  ;;  %v656_v51 = vpop.f32.mrf.mxu2 }
  0xfe   :  { %v657_v62 = vadd.f32 %v1712_v61, %v656_v51  ;;  %v579_v63 = vpop.f32.mrf.mxu0 }
  0xff   :  { %v580_v2 = vadd.f32 %v1712_v61, %v579_v63 }
 0x100   :  { %v826_v8 = vadd.f32 %v1891_v46, %v657_v62 }
 0x101   :  { %v749_v9 = vadd.f32 %v1934_v15, %v580_v2  ;;  %618 = vmatmul.bf16.gmra.mxu0 %v1125_v60 }
 0x102   :  { %v921_v10 = vmax.f32 %v826_v8, 0.0  ;;  %698 = vmatmul.bf16.gmra.mxu2 %v1253_v1  ;;  %v840_v42 = vpop.f32.mrf.mxu3 }
 0x103   :  { %v890_v41 = vmax.f32 %v749_v9, 0.0  ;;  %v758_v7 = vpop.f32.mrf.mxu1 }
 0x104   :  { %985 = vst [vmem:[%s2222_s3 + $0x158] sm:$0xff] %v921_v10 }
 0x105   :  { %954 = vst [vmem:[%s2222_s3 + $0x60] sm:$0xff] %v890_v41  ;;  %v659_v16 = vpop.f32.mrf.mxu2 }
 0x106   :  { %v660_v17 = vadd.f32 %v1712_v61, %v659_v16  ;;  %1318 = vmatmul.msk.bf16.gmra.mxu1 %vm443_vm0, %v1145_v13  ;;  %v581_v46 = vpop.f32.mrf.mxu0 }
 0x107   :  { %v582_v15 = vadd.f32 %v1712_v61, %v581_v46 }
 0x108   :  { %v829_v18 = vadd.f32 %v1932_v54, %v660_v17  ;;  %v1397_v54 = vld [vmem:[%s2220_s0 + $0x1f4] sm:$0xf0] }
 0x109   :  { %v751_v19 = vadd.f32 %v1959_v22, %v582_v15  ;;  %v1261_v31 = vor.u32 %v1397_v54, %v1260_v26 }
 0x10a   :  { %v922_v6 = vmax.f32 %v829_v18, 0.0  ;;  %v843_v52 = vpop.f32.mrf.mxu3 }
 0x10b   :  { %v891_v24 = vmax.f32 %v751_v19, 0.0  ;;  %v760_v0 = vpop.f32.mrf.mxu1 }
 0x10c   :  { %986 = vst [vmem:[%s2222_s3 + $0x160] sm:$0xff] %v922_v6 }
 0x10d   :  { %955 = vst [vmem:[%s2222_s3 + $0x68] sm:$0xff] %v891_v24  ;;  %v661_v22 = vpop.f32.mrf.mxu2 }
 0x10e   :  { %v662_v28 = vadd.f32 %v1712_v61, %v661_v22  ;;  %v584_v30 = vpop.f32.mrf.mxu0 }
 0x10f   :  { %v585_v33 = vadd.f32 %v1712_v61, %v584_v30 }
 0x110   :  { %v831_v34 = vadd.f32 %v1967_v29, %v662_v28 }
 0x111   :  { %v754_v37 = vadd.f32 %v1986_v47, %v585_v33  ;;  %623 = vmatmul.bf16.gmra.mxu0 %v1133_v27 }
 0x112   :  { %v923_v38 = vmax.f32 %v831_v34, 0.0  ;;  %703 = vmatmul.bf16.gmra.mxu2 %v1261_v31  ;;  %v845_v63 = vpop.f32.mrf.mxu3 }
 0x113   :  { %v892_v39 = vmax.f32 %v754_v37, 0.0  ;;  %v763_v40 = vpop.f32.mrf.mxu1 }
 0x114   :  { %987 = vst [vmem:[%s2222_s3 + $0x168] sm:$0xff] %v923_v38 }
 0x115   :  { %956 = vst [vmem:[%s2222_s3 + $0x70] sm:$0xff] %v892_v39  ;;  %v664_v44 = vpop.f32.mrf.mxu2 }
 0x116   :  { %v665_v14 = vadd.f32 %v1712_v61, %v664_v44  ;;  %v586_v29 = vpop.f32.mrf.mxu0 }
 0x117   :  { %v587_v36 = vadd.f32 %v1712_v61, %v586_v29 }
 0x118   :  { %v834_v45 = vadd.f32 %v1994_v49, %v665_v14 }
 0x119   :  { %v756_v47 = vadd.f32 %v755_v58, %v587_v36 }
 0x11a   :  { %v924_v48 = vmax.f32 %v834_v45, 0.0  ;;  %v848_v16 = vpop.f32.mrf.mxu3 }
 0x11b   :  { %v893_v12 = vmax.f32 %v756_v47, 0.0  ;;  %v765_v43 = vpop.f32.mrf.mxu1 }
 0x11c   :  { %988 = vst [vmem:[%s2222_s3 + $0x170] sm:$0xff] %v924_v48 }
 0x11d   :  { %957 = vst [vmem:[%s2222_s3 + $0x78] sm:$0xff] %v893_v12  ;;  %v666_v50 = vpop.f32.mrf.mxu2 }
 0x11e   :  { %v667_v53 = vadd.f32 %v1712_v61, %v666_v50  ;;  %v589_v55 = vpop.f32.mrf.mxu0 }
 0x11f   :  { %v590_v32 = vadd.f32 %v1712_v61, %v589_v55 }
 0x120   :  { %v836_v49 = vadd.f32 %v835_v5, %v667_v53 }
 0x121   :  { %v759_v56 = vadd.f32 %v758_v7, %v590_v32 }
 0x122   :  { %v925_v57 = vmax.f32 %v836_v49, 0.0  ;;  %v850_v54 = vpop.f32.mrf.mxu3 }
 0x123   :  { %v894_v58 = vmax.f32 %v759_v56, 0.0  ;;  %v768_v59 = vpop.f32.mrf.mxu1 }
 0x124   :  { %989 = vst [vmem:[%s2222_s3 + $0x178] sm:$0xff] %v925_v57 }
 0x125   :  { %958 = vst [vmem:[%s2222_s3 + $0x80] sm:$0xff] %v894_v58  ;;  %v669_v35 = vpop.f32.mrf.mxu2 }
 0x126   :  { %v670_v51 = vadd.f32 %v1712_v61, %v669_v35  ;;  %v591_v60 = vpop.f32.mrf.mxu0 }
 0x127   :  { %v592_v62 = vadd.f32 %v1712_v61, %v591_v60 }
 0x128   :  { %v839_v1 = vadd.f32 %v838_v20, %v670_v51 }
 0x129   :  { %v761_v2 = vadd.f32 %v760_v0, %v592_v62 }
 0x12a   :  { %v926_v3 = vmax.f32 %v839_v1, 0.0 }
 0x12b   :  { %v895_v4 = vmax.f32 %v761_v2, 0.0  ;;  %v770_v5 = vpop.f32.mrf.mxu1 }
 0x12c   :  { %990 = vst [vmem:[%s2222_s3 + $0x180] sm:$0xff] %v926_v3 }
 0x12d   :  { %959 = vst [vmem:[%s2222_s3 + $0x88] sm:$0xff] %v895_v4  ;;  %v671_v8 = vpop.f32.mrf.mxu2 }
 0x12e   :  { %v672_v9 = vadd.f32 %v1712_v61, %v671_v8  ;;  %v594_v10 = vpop.f32.mrf.mxu0 }
 0x12f   :  { %v595_v13 = vadd.f32 %v1712_v61, %v594_v10 }
 0x130   :  { %v841_v41 = vadd.f32 %v840_v42, %v672_v9 }
 0x131   :  { %v764_v7 = vadd.f32 %v763_v40, %v595_v13  ;;  %v853_v40 = vpop.f32.mrf.mxu3 }
 0x132   :  { %v927_v17 = vmax.f32 %v841_v41, 0.0 }
 0x133   :  { %v896_v46 = vmax.f32 %v764_v7, 0.0  ;;  %v773_v15 = vpop.f32.mrf.mxu1 }
 0x134   :  { %991 = vst [vmem:[%s2222_s3 + $0x188] sm:$0xff] %v927_v17 }
 0x135   :  { %960 = vst [vmem:[%s2222_s3 + $0x90] sm:$0xff] %v896_v46  ;;  %v674_v18 = vpop.f32.mrf.mxu2 }
 0x136   :  { %v675_v19 = vadd.f32 %v1712_v61, %v674_v18  ;;  %v596_v20 = vpop.f32.mrf.mxu0 }
 0x137   :  { %v597_v6 = vadd.f32 %v1712_v61, %v596_v20 }
 0x138   :  { %v844_v21 = vadd.f32 %v843_v52, %v675_v19 }
 0x139   :  { %v766_v23 = vadd.f32 %v765_v43, %v597_v6  ;;  %v855_v53 = vpop.f32.mrf.mxu3 }
 0x13a   :  { %v928_v24 = vmax.f32 %v844_v21, 0.0 }
 0x13b   :  { %v897_v0 = vmax.f32 %v766_v23, 0.0  ;;  %v775_v26 = vpop.f32.mrf.mxu1 }
 0x13c   :  { %992 = vst [vmem:[%s2222_s3 + $0x190] sm:$0xff] %v928_v24 }
 0x13d   :  { %961 = vst [vmem:[%s2222_s3 + $0x98] sm:$0xff] %v897_v0  ;;  %v676_v22 = vpop.f32.mrf.mxu2 }
 0x13e   :  { %v677_v27 = vadd.f32 %v1712_v61, %v676_v22  ;;  %v599_v28 = vpop.f32.mrf.mxu0 }
 0x13f   :  { %v600_v30 = vadd.f32 %v1712_v61, %v599_v28 }
 0x140   :  { %v846_v31 = vadd.f32 %v845_v63, %v677_v27 }
 0x141   :  { %v769_v33 = vadd.f32 %v768_v59, %v600_v30  ;;  %v858_v63 = vpop.f32.mrf.mxu3 }
 0x142   :  { %v929_v34 = vmax.f32 %v846_v31, 0.0 }
 0x143   :  { %v898_v37 = vmax.f32 %v769_v33, 0.0  ;;  %v778_v38 = vpop.f32.mrf.mxu1 }
 0x144   :  { %993 = vst [vmem:[%s2222_s3 + $0x198] sm:$0xff] %v929_v34 }
 0x145   :  { %962 = vst [vmem:[%s2222_s3 + $0xa0] sm:$0xff] %v898_v37  ;;  %v679_v39 = vpop.f32.mrf.mxu2 }
 0x146   :  { %v680_v42 = vadd.f32 %v1712_v61, %v679_v39  ;;  %v601_v44 = vpop.f32.mrf.mxu0 }
 0x147   :  { %v602_v14 = vadd.f32 %v1712_v61, %v601_v44 }
 0x148   :  { %v849_v29 = vadd.f32 %v848_v16, %v680_v42 }
 0x149   :  { %v771_v36 = vadd.f32 %v770_v5, %v602_v14  ;;  %v860_v17 = vpop.f32.mrf.mxu3 }
 0x14a   :  { %v930_v45 = vmax.f32 %v849_v29, 0.0 }
 0x14b   :  { %v899_v47 = vmax.f32 %v771_v36, 0.0  ;;  %v780_v48 = vpop.f32.mrf.mxu1 }
 0x14c   :  { %994 = vst [vmem:[%s2222_s3 + $0x1a0] sm:$0xff] %v930_v45 }
 0x14d   :  { %963 = vst [vmem:[%s2222_s3 + $0xa8] sm:$0xff] %v899_v47  ;;  %v681_v12 = vpop.f32.mrf.mxu2 }
 0x14e   :  { %v682_v43 = vadd.f32 %v1712_v61, %v681_v12  ;;  %v604_v50 = vpop.f32.mrf.mxu0 }
 0x14f   :  { %v605_v52 = vadd.f32 %v1712_v61, %v604_v50 }
 0x150   :  { %v851_v55 = vadd.f32 %v850_v54, %v682_v43 }
 0x151   :  { %v774_v32 = vadd.f32 %v773_v15, %v605_v52 }
 0x152   :  { %v931_v49 = vmax.f32 %v851_v55, 0.0  ;;  %v630_v55 = vadd.f32 %v1712_v61, %v1735_v11 }
 0x153   :  { %v900_v56 = vmax.f32 %v774_v32, 0.0  ;;  %v783_v57 = vpop.f32.mrf.mxu1 }
 0x154   :  { %995 = vst [vmem:[%s2222_s3 + $0x1a8] sm:$0xff] %v931_v49 }
 0x155   :  { %964 = vst [vmem:[%s2222_s3 + $0xb0] sm:$0xff] %v900_v56  ;;  %v684_v58 = vpop.f32.mrf.mxu2 }
 0x156   :  { %v685_v59 = vadd.f32 %v1712_v61, %v684_v58  ;;  %v606_v35 = vpop.f32.mrf.mxu0 }
 0x157   :  { %v607_v51 = vadd.f32 %v1712_v61, %v606_v35 }
 0x158   :  { %v854_v60 = vadd.f32 %v853_v40, %v685_v59 }
 0x159   :  { %v776_v62 = vadd.f32 %v775_v26, %v607_v51  ;;  %v863_v26 = vpop.f32.mrf.mxu3 }
 0x15a   :  { %v932_v1 = vmax.f32 %v854_v60, 0.0 }
 0x15b   :  { %v901_v2 = vmax.f32 %v776_v62, 0.0  ;;  %v785_v3 = vpop.f32.mrf.mxu1 }
 0x15c   :  { %996 = vst [vmem:[%s2222_s3 + $0x1b0] sm:$0xff] %v932_v1 }
 0x15d   :  { %965 = vst [vmem:[%s2222_s3 + $0xb8] sm:$0xff] %v901_v2  ;;  %v686_v4 = vpop.f32.mrf.mxu2 }
 0x15e   :  { %v687_v5 = vadd.f32 %v1712_v61, %v686_v4  ;;  %v609_v8 = vpop.f32.mrf.mxu0 }
 0x15f   :  { %v610_v9 = vadd.f32 %v1712_v61, %v609_v8 }
 0x160   :  { %v856_v10 = vadd.f32 %v855_v53, %v687_v5 }
 0x161   :  { %v779_v13 = vadd.f32 %v778_v38, %v610_v9  ;;  %v865_v42 = vpop.f32.mrf.mxu3 }
 0x162   :  { %v933_v41 = vmax.f32 %v856_v10, 0.0 }
 0x163   :  { %v902_v7 = vmax.f32 %v779_v13, 0.0  ;;  %v788_v16 = vpop.f32.mrf.mxu1 }
 0x164   :  { %997 = vst [vmem:[%s2222_s3 + $0x1b8] sm:$0xff] %v933_v41 }
 0x165   :  { %966 = vst [vmem:[%s2222_s3 + $0xc0] sm:$0xff] %v902_v7  ;;  %v689_v46 = vpop.f32.mrf.mxu2 }
 0x166   :  { %v690_v15 = vadd.f32 %v1712_v61, %v689_v46  ;;  %v611_v18 = vpop.f32.mrf.mxu0 }
 0x167   :  { %v612_v19 = vadd.f32 %v1712_v61, %v611_v18 }
 0x168   :  { %v859_v20 = vadd.f32 %v858_v63, %v690_v15  ;;  %v632_v63 = vadd.f32 %v1712_v61, %v1765_v25 }
 0x169   :  { %v781_v6 = vadd.f32 %v780_v48, %v612_v19  ;;  %v868_v53 = vpop.f32.mrf.mxu3 }
 0x16a   :  { %v934_v21 = vmax.f32 %v859_v20, 0.0 }
 0x16b   :  { %v903_v23 = vmax.f32 %v781_v6, 0.0  ;;  %v790_v24 = vpop.f32.mrf.mxu1 }
 0x16c   :  { %998 = vst [vmem:[%s2222_s3 + $0x1c0] sm:$0xff] %v934_v21 }
 0x16d   :  { %967 = vst [vmem:[%s2222_s3 + $0xc8] sm:$0xff] %v903_v23  ;;  %v691_v0 = vpop.f32.mrf.mxu2 }
 0x16e   :  { %v692_v54 = vadd.f32 %v1712_v61, %v691_v0  ;;  %v614_v22 = vpop.f32.mrf.mxu0 }
 0x16f   :  { %v615_v27 = vadd.f32 %v1712_v61, %v614_v22 }
 0x170   :  { %v861_v28 = vadd.f32 %v860_v17, %v692_v54 }
 0x171   :  { %v784_v30 = vadd.f32 %v783_v57, %v615_v27 }
 0x172   :  { %v935_v31 = vmax.f32 %v861_v28, 0.0 }
 0x173   :  { %v904_v33 = vmax.f32 %v784_v30, 0.0  ;;  %v793_v34 = vpop.f32.mrf.mxu1 }
 0x174   :  { %999 = vst [vmem:[%s2222_s3 + $0x1c8] sm:$0xff] %v935_v31 }
 0x175   :  { %968 = vst [vmem:[%s2222_s3 + $0xd0] sm:$0xff] %v904_v33  ;;  %v694_v37 = vpop.f32.mrf.mxu2 }
 0x176   :  { %v695_v38 = vadd.f32 %v1712_v61, %v694_v37  ;;  %v616_v39 = vpop.f32.mrf.mxu0 }
 0x177   :  { %v617_v40 = vadd.f32 %v1712_v61, %v616_v39 }
 0x178   :  { %v864_v44 = vadd.f32 %v863_v26, %v695_v38 }
 0x179   :  { %v786_v14 = vadd.f32 %v785_v3, %v617_v40  ;;  %v870_v3 = vpop.f32.mrf.mxu3 }
 0x17a   :  { %v936_v29 = vmax.f32 %v864_v44, 0.0 }
 0x17b   :  { %v905_v36 = vmax.f32 %v786_v14, 0.0  ;;  %v795_v45 = vpop.f32.mrf.mxu1 }
 0x17c   :  { %1000 = vst [vmem:[%s2222_s3 + $0x1d0] sm:$0xff] %v936_v29 }
 0x17d   :  { %969 = vst [vmem:[%s2222_s3 + $0xd8] sm:$0xff] %v905_v36  ;;  %v696_v47 = vpop.f32.mrf.mxu2 }
 0x17e   :  { %v697_v48 = vadd.f32 %v1712_v61, %v696_v47  ;;  %v619_v12 = vpop.f32.mrf.mxu0 }
 0x17f   :  { %v620_v43 = vadd.f32 %v1712_v61, %v619_v12 }
 0x180   :  { %v866_v50 = vadd.f32 %v865_v42, %v697_v48 }
 0x181   :  { %v789_v52 = vadd.f32 %v788_v16, %v620_v43  ;;  %v873_v46 = vpop.f32.mrf.mxu3 }
 0x182   :  { %v937_v32 = vmax.f32 %v866_v50, 0.0 }
 0x183   :  { %v906_v49 = vmax.f32 %v789_v52, 0.0  ;;  %v798_v56 = vpop.f32.mrf.mxu1 }
 0x184   :  { %1001 = vst [vmem:[%s2222_s3 + $0x1d8] sm:$0xff] %v937_v32  ;;  %v799_v57 = vadd.f32 %v798_v56, %v630_v55 }
 0x185   :  { %970 = vst [vmem:[%s2222_s3 + $0xe0] sm:$0xff] %v906_v49  ;;  %v699_v58 = vpop.f32.mrf.mxu2 }
 0x186   :  { %v910_v59 = vmax.f32 %v799_v57, 0.0  ;;  %v700_v35 = vadd.f32 %v1712_v61, %v699_v58  ;;  %v621_v51 = vpop.f32.mrf.mxu0 }
 0x187   :  { %v622_v60 = vadd.f32 %v1712_v61, %v621_v51 }
 0x188   :  { %974 = vst [vmem:[%s2222_s3 + $0x100] sm:$0xff] %v910_v59  ;;  %v869_v11 = vadd.f32 %v868_v53, %v700_v35 }
 0x189   :  { %v791_v62 = vadd.f32 %v790_v24, %v622_v60  ;;  %v875_v54 = vpop.f32.mrf.mxu3 }
 0x18a   :  { %v938_v1 = vmax.f32 %v869_v11, 0.0 }
 0x18b   :  { %v907_v2 = vmax.f32 %v791_v62, 0.0  ;;  %v800_v4 = vpop.f32.mrf.mxu1 }
 0x18c   :  { %1002 = vst [vmem:[%s2222_s3 + $0x1e0] sm:$0xff] %v938_v1  ;;  %v801_v5 = vadd.f32 %v800_v4, %v632_v63 }
 0x18d   :  { %971 = vst [vmem:[%s2222_s3 + $0xe8] sm:$0xff] %v907_v2  ;;  %v701_v8 = vpop.f32.mrf.mxu2 }
 0x18e   :  { %v911_v9 = vmax.f32 %v801_v5, 0.0  ;;  %v702_v10 = vadd.f32 %v1712_v61, %v701_v8  ;;  %v624_v13 = vpop.f32.mrf.mxu0 }
 0x18f   :  { %v625_v25 = vadd.f32 %v1712_v61, %v624_v13 }
 0x190   :  { %975 = vst [vmem:[%s2222_s3 + $0x108] sm:$0xff] %v911_v9  ;;  %v871_v41 = vadd.f32 %v870_v3, %v702_v10 }
 0x191   :  { %v794_v7 = vadd.f32 %v793_v34, %v625_v25 }
 0x192   :  { %v939_v16 = vmax.f32 %v871_v41, 0.0 }
 0x193   :  { %v908_v17 = vmax.f32 %v794_v7, 0.0 }
 0x194   :  { %1003 = vst [vmem:[%s2222_s3 + $0x1e8] sm:$0xff] %v939_v16 }
 0x195   :  { %972 = vst [vmem:[%s2222_s3 + $0xf0] sm:$0xff] %v908_v17  ;;  %v704_v15 = vpop.f32.mrf.mxu2 }
 0x196   :  { %v705_v18 = vadd.f32 %v1712_v61, %v704_v15  ;;  %v626_v19 = vpop.f32.mrf.mxu0 }
 0x197   :  { %v627_v20 = vadd.f32 %v1712_v61, %v626_v19 }
 0x198   :  { %v874_v6 = vadd.f32 %v873_v46, %v705_v18 }
 0x199   :  { %v796_v21 = vadd.f32 %v795_v45, %v627_v20 }
 0x19a   :  { %v940_v23 = vmax.f32 %v874_v6, 0.0 }
 0x19b   :  { %v909_v24 = vmax.f32 %v796_v21, 0.0 }
 0x19c   :  { %1004 = vst [vmem:[%s2222_s3 + $0x1f0] sm:$0xff] %v940_v23 }
 0x19d   :  { %973 = vst [vmem:[%s2222_s3 + $0xf8] sm:$0xff] %v909_v24  ;;  %v706_v0 = vpop.f32.mrf.mxu2 }
 0x19e   :  { %v707_v26 = vadd.f32 %v1712_v61, %v706_v0 }
 0x1a0   :  { %v876_v22 = vadd.f32 %v875_v54, %v707_v26 }
 0x1a2   :  { %v941_v27 = vmax.f32 %v876_v22, 0.0 }
 0x1a4   :  { %1005 = vst [vmem:[%s2222_s3 + $0x1f8] sm:$0xff] %v941_v27 }

</bundles_post_ra>
